<compile_context>
chip_gen: v7x
topology: tpu7x:2x2x1
jax: 0.10.0
libtpu: 0.0.40
codegen_flags: <defaults>
</compile_context>

<pallas_src>
import numpy as np
import jax
import jax.numpy as jnp
from jax.experimental import pallas as pl
from jax.experimental.pallas import tpu as pltpu


_EPS = 1e-5                 # nn.InstanceNorm2d default eps
_K, _STRIDE, _PAD = 4, 2, 1  # conv_block(k_size=4, stride=2, pad=1)


# --------------------------------------------------------------------------
# Pallas kernels
# --------------------------------------------------------------------------
def _conv0_kernel(a_ref, w_ref, b_ref, o_ref):
    """Block 0 (normalize='none'): o = relu(W @ A + b), stored bf16.

    A: (1, K, HW) bf16 patches of one sample; W: (Cout, K) bf16; b: (Cout,1) f32.
    """
    acc = jnp.dot(w_ref[...], a_ref[0], preferred_element_type=jnp.float32)
    acc = acc + b_ref[...]                      # (Cout, 1) broadcasts over HW lanes
    o_ref[0] = jnp.maximum(acc, 0.0).astype(o_ref.dtype)


def _instance_norm_relu(x):
    """Per-channel InstanceNorm (biased var, eps=1e-5, no affine) + ReLU. f32 math."""
    mean = jnp.mean(x, axis=1, keepdims=True)
    xc = x - mean
    var = jnp.mean(xc * xc, axis=1, keepdims=True)
    return jnp.maximum(xc * jax.lax.rsqrt(var + _EPS), 0.0)


def _tail_kernel(p1_ref, w1_ref, g2_ref, w2_ref, g3_ref, w3_ref, wc_ref, bc_ref,
                 o_ref):
    """Blocks 1-3 (conv + IN + ReLU) + Linear classifier, fused per sample.

    block 1 : matmul on wrapper-provided patches (Cin*16, HW1).
    block 2/3: im2col done in-kernel as 16 per-tap 0/1 gather matmuls; each tap
               value is an exact bf16 copy of an activation (or zero padding).
    classifier: (Cout, HW) row-major == torch's NCHW flatten -> multiply+reduce.
    """
    # ---- Block 1 ------------------------------------------------------------
    acc1 = jnp.dot(w1_ref[...], p1_ref[0], preferred_element_type=jnp.float32)
    act1 = _instance_norm_relu(acc1).astype(jnp.bfloat16)        # (C1, 256)

    # ---- Block 2: in-kernel im2col + conv + IN + ReLU ------------------------
    n_taps = g2_ref.shape[0]
    acc2 = jnp.zeros((w2_ref.shape[1], g2_ref.shape[2]), jnp.float32)
    for t in range(n_taps):                       # 16 taps, unrolled at trace
        tap = jnp.dot(act1, g2_ref[t],
                      preferred_element_type=jnp.float32).astype(jnp.bfloat16)
        acc2 = acc2 + jnp.dot(w2_ref[t], tap, preferred_element_type=jnp.float32)
    act2 = _instance_norm_relu(acc2).astype(jnp.bfloat16)        # (C2, 64)

    # ---- Block 3 -------------------------------------------------------------
    acc3 = jnp.zeros((w3_ref.shape[1], g3_ref.shape[2]), jnp.float32)
    for t in range(n_taps):
        tap = jnp.dot(act2, g3_ref[t],
                      preferred_element_type=jnp.float32).astype(jnp.bfloat16)
        acc3 = acc3 + jnp.dot(w3_ref[t], tap, preferred_element_type=jnp.float32)
    act3 = _instance_norm_relu(acc3)                             # (C3, 16) f32

    # ---- Classifier (num_outputs == 1) ---------------------------------------
    prod = act3 * wc_ref[...]
    s = jnp.sum(jnp.sum(prod, axis=1, keepdims=True), axis=0, keepdims=True)
    logit = s + bc_ref[...]                                      # (1, 1)
    o_ref[...] = jnp.zeros((1, 1, 128), jnp.float32) + logit


# --------------------------------------------------------------------------
# pallas_call wrappers
# --------------------------------------------------------------------------
def _cparams():
    # B grid steps, each independent -> both v7x TensorCores get work.
    return pltpu.CompilerParams(dimension_semantics=("parallel",))


def conv_block0(patches, w2, bias):
    B, K, HW = patches.shape
    Cout = w2.shape[0]
    return pl.pallas_call(
        _conv0_kernel,
        out_shape=jax.ShapeDtypeStruct((B, Cout, HW), jnp.bfloat16),
        grid=(B,),
        in_specs=[
            pl.BlockSpec((1, K, HW), lambda b: (b, 0, 0)),
            pl.BlockSpec((Cout, K), lambda b: (0, 0)),
            pl.BlockSpec((Cout, 1), lambda b: (0, 0)),
        ],
        out_specs=pl.BlockSpec((1, Cout, HW), lambda b: (b, 0, 0)),
        compiler_params=_cparams(),
    )(patches, w2, bias)


def tail_blocks(patches1, w1, g2, w2t, g3, w3t, wc2, bc11):
    B, K1, HW1 = patches1.shape
    out = pl.pallas_call(
        _tail_kernel,
        out_shape=jax.ShapeDtypeStruct((B, 1, 128), jnp.float32),
        grid=(B,),
        in_specs=[
            pl.BlockSpec((1, K1, HW1), lambda b: (b, 0, 0)),
            pl.BlockSpec(w1.shape, lambda b: (0, 0)),
            pl.BlockSpec(g2.shape, lambda b: (0, 0, 0)),
            pl.BlockSpec(w2t.shape, lambda b: (0, 0, 0)),
            pl.BlockSpec(g3.shape, lambda b: (0, 0, 0)),
            pl.BlockSpec(w3t.shape, lambda b: (0, 0, 0)),
            pl.BlockSpec(wc2.shape, lambda b: (0, 0)),
            pl.BlockSpec((1, 1), lambda b: (0, 0)),
        ],
        out_specs=pl.BlockSpec((1, 1, 128), lambda b: (b, 0, 0)),
        compiler_params=_cparams(),
    )(patches1, w1, g2, w2t, g3, w3t, wc2, bc11)
    return out[:, 0, 0]                          # (B,) logits


# --------------------------------------------------------------------------
# XLA glue: bf16 channels-first im2col (patches as (K, HW)) for blocks 0 and 1
# --------------------------------------------------------------------------
def im2col_t(x, k=_K, stride=_STRIDE, pad=_PAD):
    """x: (B, C, H, W) -> patches (B, C*k*k, Ho*Wo) bf16.

    Row (K) order is (c, kh, kw), matching W.reshape(Cout, Cin*k*k);
    column order is (ho, wo), i.e. NCHW spatial flatten.
    """
    B, C, H, W = x.shape
    Ho = (H + 2 * pad - k) // stride + 1
    Wo = (W + 2 * pad - k) // stride + 1
    xp = jnp.pad(x.astype(jnp.bfloat16), ((0, 0), (0, 0), (pad, pad), (pad, pad)))
    cols = []
    for kh in range(k):
        for kw in range(k):
            cols.append(xp[:, :, kh:kh + stride * Ho:stride, kw:kw + stride * Wo:stride])
    pat = jnp.stack(cols, axis=2)                # (B, C, k*k, Ho, Wo)
    return pat.reshape(B, C * k * k, Ho * Wo), Ho, Wo


# --------------------------------------------------------------------------
# One-time parameter / constant preparation (hoisted out of the forward)
# --------------------------------------------------------------------------
def make_tap_gather(hin, win, k=_K, stride=_STRIDE, pad=_PAD):
    """0/1 gather matrices: G[t, p, q] = 1 iff output position q's tap t reads
    input position p (zero columns implement the 1-px zero padding)."""
    ho = (hin + 2 * pad - k) // stride + 1
    wo = (win + 2 * pad - k) // stride + 1
    g = np.zeros((k * k, hin * win, ho * wo), np.float32)
    for kh in range(k):
        for kw in range(k):
            t = kh * k + kw
            for oh in range(ho):
                ih = stride * oh + kh - pad
                if ih < 0 or ih >= hin:
                    continue
                for ow in range(wo):
                    iw = stride * ow + kw - pad
                    if iw < 0 or iw >= win:
                        continue
                    g[t, ih * win + iw, oh * wo + ow] = 1.0
    return jnp.asarray(g, jnp.bfloat16)


def prepare_params(params, input_dim=64):
    ws = params["conv_w"]
    assert len(ws) == 4, "only the input_dim=64 (4 conv blocks) config is supported"
    assert params["classifier_w"].shape[0] == 1, "fused classifier assumes num_outputs == 1"
    sp0 = input_dim // 2          # act0 spatial (32)
    sp1 = sp0 // 2                # act1 spatial (16)
    sp2 = sp1 // 2                # act2 spatial (8)
    sp3 = sp2 // 2                # act3 spatial (4)

    def taps(w):                  # (Cout, Cin, k, k) -> (k*k, Cout, Cin) bf16
        cout, cin, k, _ = w.shape
        return jnp.transpose(w, (2, 3, 0, 1)).reshape(k * k, cout, cin).astype(jnp.bfloat16)

    return {
        "w0": ws[0].reshape(ws[0].shape[0], -1).astype(jnp.bfloat16),
        "b0": params["conv_b0"].reshape(-1, 1).astype(jnp.float32),
        "w1": ws[1].reshape(ws[1].shape[0], -1).astype(jnp.bfloat16),
        "w2t": taps(ws[2]),
        "w3t": taps(ws[3]),
        "g2": make_tap_gather(sp1, sp1),          # (16, 256, 64)  bf16
        "g3": make_tap_gather(sp2, sp2),          # (16,  64, 16)  bf16
        "wc": params["classifier_w"].reshape(ws[3].shape[0], sp3 * sp3).astype(jnp.float32),
        "bc": params["classifier_b"].reshape(1, 1).astype(jnp.float32),
    }


# --------------------------------------------------------------------------
# Forward
# --------------------------------------------------------------------------
def discriminator_forward(img, prep):
    """img: (B, C, H, W) float32 -> (B,) float32 logits (num_outputs == 1)."""
    B = img.shape[0]
    # Block 0: XLA im2col (bf16) + fused matmul + bias + ReLU kernel.
    p0, ho0, wo0 = im2col_t(img)
    act0 = conv_block0(p0, prep["w0"], prep["b0"])            # (B, nf, 1024) bf16
    # Block 1 patches (channels-first activation, free reshape, bf16 glue).
    nf = act0.shape[1]
    p1, _, _ = im2col_t(act0.reshape(B, nf, ho0, wo0))        # (B, nf*16, 256) bf16
    # Blocks 1-3 + classifier fused into one kernel (im2col for 2-3 in-kernel).
    return tail_blocks(p1, prep["w1"], prep["g2"], prep["w2t"],
                       prep["g3"], prep["w3t"], prep["wc"], prep["bc"])


# --------------------------------------------------------------------------
# Deterministic parameter construction (matches the PyTorch module layout)
# --------------------------------------------------------------------------
def init_params(key, *, channels=3, nf=8, num_outputs=1):
    layer_depth = [channels, nf, nf * 2, nf * 4, nf * 8]
    conv_w, conv_b0 = [], None
    for i in range(len(layer_depth) - 1):
        key, kw_, kb_ = jax.random.split(key, 3)
        c_in, c_out = layer_depth[i], layer_depth[i + 1]
        conv_w.append(jax.random.normal(kw_, (c_out, c_in, 4, 4), jnp.float32) * 0.05)
        if i == 0:  # only the un-normalized first block has bias=True
            conv_b0 = jax.random.normal(kb_, (c_out,), jnp.float32) * 0.05
    key, kcw, kcb = jax.random.split(key, 3)
    feat_dim = layer_depth[-1] * 4 ** 2
    wc = jax.random.normal(kcw, (num_outputs, feat_dim), jnp.float32) * 0.02
    bc = jax.random.normal(kcb, (num_outputs,), jnp.float32) * 0.02
    return {"conv_w": conv_w, "conv_b0": conv_b0,
            "classifier_w": wc, "classifier_b": bc}


if __name__ == "__main__":
    key = jax.random.PRNGKey(0)
    key, kimg = jax.random.split(key)

    B, C, H, W = 2, 3, 64, 64                    # input_dim=64 -> final spatial 4x4
    img = jax.random.normal(kimg, (B, C, H, W), jnp.float32)
    params = init_params(key, channels=C, nf=8, num_outputs=1)
    prep = prepare_params(params, input_dim=H)   # one-time weight/constant prep

    fwd = jax.jit(discriminator_forward)
    out = jax.block_until_ready(fwd(img, prep))
    assert out.shape == (B,) and out.dtype == jnp.float32
    assert bool(jnp.all(jnp.isfinite(out)))
    print("KERNEL_OK")
</pallas_src>

<mosaic_0001>
module attributes {stable_mosaic.version = 11 : i64} {
  func.func @_conv0_kernel(%arg0: i32, %arg1: memref<1x48x1024xbf16, #tpu.memory_space<vmem>>, %arg2: memref<8x48xbf16, #tpu.memory_space<vmem>>, %arg3: memref<8x1xf32, #tpu.memory_space<vmem>>, %arg4: memref<1x8x1024xbf16, #tpu.memory_space<vmem>>) attributes {dimension_semantics = [#tpu.dimension_semantics<parallel>], iteration_bounds = array<i64: 2>, scalar_prefetch = 0 : i64, scratch_operands = 0 : i64, tpu.core_type = #tpu.core_type<tc>, window_params = [{transform_indices = @transform_0, window_bounds = array<i64: 1, 48, 1024>}, {pipeline_mode = #tpu.pipeline_mode<synchronous>, transform_indices = @transform_1, window_bounds = array<i64: 8, 48>}, {pipeline_mode = #tpu.pipeline_mode<synchronous>, transform_indices = @transform_2, window_bounds = array<i64: 8, 1>}, {transform_indices = @transform_3, window_bounds = array<i64: 1, 8, 1024>}]} {
    %c0 = arith.constant 0 : index
    %c0_0 = arith.constant 0 : index
    %0 = vector.load %arg2[%c0, %c0_0] : memref<8x48xbf16, #tpu.memory_space<vmem>>, vector<8x48xbf16>
    %c0_1 = arith.constant 0 : index
    %c0_2 = arith.constant 0 : index
    %c0_3 = arith.constant 0 : index
    %1 = vector.load %arg1[%c0_1, %c0_2, %c0_3] : memref<1x48x1024xbf16, #tpu.memory_space<vmem>>, vector<1x48x1024xbf16>
    %2 = vector.shape_cast %1 : vector<1x48x1024xbf16> to vector<48x1024xbf16>
    %cst = arith.constant dense<0.000000e+00> : vector<8x1024xf32>
    %3 = tpu.matmul %0, %2, %cst {dimension_numbers = #tpu.dot_dimension_numbers<[1], [0], [0], [1], [0, 0, 1, 1], [], []>} : vector<8x48xbf16>, vector<48x1024xbf16>, vector<8x1024xf32> -> vector<8x1024xf32>
    %c0_4 = arith.constant 0 : index
    %c0_5 = arith.constant 0 : index
    %4 = vector.load %arg3[%c0_4, %c0_5] : memref<8x1xf32, #tpu.memory_space<vmem>>, vector<8x1xf32>
    %5 = vector.broadcast %4 : vector<8x1xf32> to vector<8x1024xf32>
    %6 = arith.addf %3, %5 : vector<8x1024xf32>
    %cst_6 = arith.constant 0.000000e+00 : f32
    %7 = vector.broadcast %cst_6 : f32 to vector<8x1024xf32>
    %8 = arith.maximumf %6, %7 : vector<8x1024xf32>
    %9 = arith.truncf %8 : vector<8x1024xf32> to vector<8x1024xbf16>
    %c0_7 = arith.constant 0 : index
    %c0_8 = arith.constant 0 : index
    %c0_9 = arith.constant 0 : index
    %10 = vector.load %arg4[%c0_7, %c0_8, %c0_9] : memref<1x8x1024xbf16, #tpu.memory_space<vmem>>, vector<1x8x1024xbf16>
    %11 = vector.shape_cast %10 : vector<1x8x1024xbf16> to vector<8x1024xbf16>
    %12 = vector.shape_cast %9 : vector<8x1024xbf16> to vector<1x8x1024xbf16>
    tpu.vector_store %arg4[%c0_7, %c0_8, %c0_9], %12 {strides = array<i32>} : memref<1x8x1024xbf16, #tpu.memory_space<vmem>>, vector<1x8x1024xbf16>,
    return
  }
  func.func @transform_0(%arg0: i32) -> (i32, i32, i32) {
    %c0_i32 = arith.constant 0 : i32
    %c0_i32_0 = arith.constant 0 : i32
    %c0_i32_1 = arith.constant 0 : i32
    return %arg0, %c0_i32, %c0_i32_0 : i32, i32, i32
  }
  func.func @transform_1(%arg0: i32) -> (i32, i32) {
    %c0_i32 = arith.constant 0 : i32
    %c0_i32_0 = arith.constant 0 : i32
    %c0_i32_1 = arith.constant 0 : i32
    return %c0_i32, %c0_i32_0 : i32, i32
  }
  func.func @transform_2(%arg0: i32) -> (i32, i32) {
    %c0_i32 = arith.constant 0 : i32
    %c0_i32_0 = arith.constant 0 : i32
    %c0_i32_1 = arith.constant 0 : i32
    return %c0_i32, %c0_i32_0 : i32, i32
  }
  func.func @transform_3(%arg0: i32) -> (i32, i32, i32) {
    %c0_i32 = arith.constant 0 : i32
    %c0_i32_0 = arith.constant 0 : i32
    %c0_i32_1 = arith.constant 0 : i32
    return %arg0, %c0_i32, %c0_i32_0 : i32, i32, i32
  }
}

module attributes {stable_mosaic.version = 11 : i64} {
  func.func @_tail_kernel(%arg0: i32, %arg1: memref<1x128x256xbf16, #tpu.memory_space<vmem>>, %arg2: memref<16x128xbf16, #tpu.memory_space<vmem>>, %arg3: memref<16x256x64xbf16, #tpu.memory_space<vmem>>, %arg4: memref<16x32x16xbf16, #tpu.memory_space<vmem>>, %arg5: memref<16x64x16xbf16, #tpu.memory_space<vmem>>, %arg6: memref<16x64x32xbf16, #tpu.memory_space<vmem>>, %arg7: memref<64x16xf32, #tpu.memory_space<vmem>>, %arg8: memref<1x1xf32, #tpu.memory_space<vmem>>, %arg9: memref<1x1x128xf32, #tpu.memory_space<vmem>>) attributes {dimension_semantics = [#tpu.dimension_semantics<parallel>], iteration_bounds = array<i64: 2>, scalar_prefetch = 0 : i64, scratch_operands = 0 : i64, tpu.core_type = #tpu.core_type<tc>, window_params = [{transform_indices = @transform_0, window_bounds = array<i64: 1, 128, 256>}, {pipeline_mode = #tpu.pipeline_mode<synchronous>, transform_indices = @transform_1, window_bounds = array<i64: 16, 128>}, {pipeline_mode = #tpu.pipeline_mode<synchronous>, transform_indices = @transform_2, window_bounds = array<i64: 16, 256, 64>}, {pipeline_mode = #tpu.pipeline_mode<synchronous>, transform_indices = @transform_3, window_bounds = array<i64: 16, 32, 16>}, {pipeline_mode = #tpu.pipeline_mode<synchronous>, transform_indices = @transform_4, window_bounds = array<i64: 16, 64, 16>}, {pipeline_mode = #tpu.pipeline_mode<synchronous>, transform_indices = @transform_5, window_bounds = array<i64: 16, 64, 32>}, {pipeline_mode = #tpu.pipeline_mode<synchronous>, transform_indices = @transform_6, window_bounds = array<i64: 64, 16>}, {pipeline_mode = #tpu.pipeline_mode<synchronous>, transform_indices = @transform_7, window_bounds = array<i64: 1, 1>}, {transform_indices = @transform_8, window_bounds = array<i64: 1, 1, 128>}]} {
    %c0 = arith.constant 0 : index
    %c0_0 = arith.constant 0 : index
    %0 = vector.load %arg2[%c0, %c0_0] : memref<16x128xbf16, #tpu.memory_space<vmem>>, vector<16x128xbf16>
    %c0_1 = arith.constant 0 : index
    %c0_2 = arith.constant 0 : index
    %c0_3 = arith.constant 0 : index
    %1 = vector.load %arg1[%c0_1, %c0_2, %c0_3] : memref<1x128x256xbf16, #tpu.memory_space<vmem>>, vector<1x128x256xbf16>
    %2 = vector.shape_cast %1 : vector<1x128x256xbf16> to vector<128x256xbf16>
    %cst = arith.constant dense<0.000000e+00> : vector<16x256xf32>
    %3 = tpu.matmul %0, %2, %cst {dimension_numbers = #tpu.dot_dimension_numbers<[1], [0], [0], [1], [0, 0, 1, 1], [], []>} : vector<16x128xbf16>, vector<128x256xbf16>, vector<16x256xf32> -> vector<16x256xf32>
    %cst_4 = arith.constant dense<0.000000e+00> : vector<16xf32>
    %4 = vector.multi_reduction <add>, %3, %cst_4 [1] : vector<16x256xf32> to vector<16xf32>
    %5 = vector.shape_cast %4 : vector<16xf32> to vector<16x1xf32>
    %cst_5 = arith.constant 2.560000e+02 : f32
    %6 = vector.broadcast %cst_5 : f32 to vector<16x1xf32>
    %7 = arith.divf %5, %6 : vector<16x1xf32>
    %8 = vector.broadcast %7 : vector<16x1xf32> to vector<16x256xf32>
    %9 = arith.subf %3, %8 : vector<16x256xf32>
    %10 = arith.mulf %9, %9 : vector<16x256xf32>
    %cst_6 = arith.constant dense<0.000000e+00> : vector<16xf32>
    %11 = vector.multi_reduction <add>, %10, %cst_6 [1] : vector<16x256xf32> to vector<16xf32>
    %12 = vector.shape_cast %11 : vector<16xf32> to vector<16x1xf32>
    %cst_7 = arith.constant 2.560000e+02 : f32
    %13 = vector.broadcast %cst_7 : f32 to vector<16x1xf32>
    %14 = arith.divf %12, %13 : vector<16x1xf32>
    %cst_8 = arith.constant 9.99999974E-6 : f32
    %15 = vector.broadcast %cst_8 : f32 to vector<16x1xf32>
    %16 = arith.addf %14, %15 : vector<16x1xf32>
    %17 = math.rsqrt %16 : vector<16x1xf32>
    %18 = vector.broadcast %17 : vector<16x1xf32> to vector<16x256xf32>
    %19 = arith.mulf %9, %18 : vector<16x256xf32>
    %cst_9 = arith.constant 0.000000e+00 : f32
    %20 = vector.broadcast %cst_9 : f32 to vector<16x256xf32>
    %21 = arith.maximumf %19, %20 : vector<16x256xf32>
    %22 = arith.truncf %21 : vector<16x256xf32> to vector<16x256xbf16>
    %cst_10 = arith.constant 0.000000e+00 : f32
    %23 = vector.broadcast %cst_10 : f32 to vector<32x64xf32>
    %c0_11 = arith.constant 0 : index
    %c0_12 = arith.constant 0 : index
    %c0_13 = arith.constant 0 : index
    %24 = vector.load %arg3[%c0_11, %c0_12, %c0_13] : memref<16x256x64xbf16, #tpu.memory_space<vmem>>, vector<1x256x64xbf16>
    %25 = vector.shape_cast %24 : vector<1x256x64xbf16> to vector<256x64xbf16>
    %cst_14 = arith.constant dense<0.000000e+00> : vector<16x64xf32>
    %26 = tpu.matmul %22, %25, %cst_14 {dimension_numbers = #tpu.dot_dimension_numbers<[1], [0], [0], [1], [0, 0, 1, 1], [], []>} : vector<16x256xbf16>, vector<256x64xbf16>, vector<16x64xf32> -> vector<16x64xf32>
    %27 = arith.truncf %26 : vector<16x64xf32> to vector<16x64xbf16>
    %c0_15 = arith.constant 0 : index
    %c0_16 = arith.constant 0 : index
    %c0_17 = arith.constant 0 : index
    %28 = vector.load %arg4[%c0_15, %c0_16, %c0_17] : memref<16x32x16xbf16, #tpu.memory_space<vmem>>, vector<1x32x16xbf16>
    %29 = vector.shape_cast %28 : vector<1x32x16xbf16> to vector<32x16xbf16>
    %cst_18 = arith.constant dense<0.000000e+00> : vector<32x64xf32>
    %30 = tpu.matmul %29, %27, %cst_18 {dimension_numbers = #tpu.dot_dimension_numbers<[1], [0], [0], [1], [0, 0, 1, 1], [], []>} : vector<32x16xbf16>, vector<16x64xbf16>, vector<32x64xf32> -> vector<32x64xf32>
    %31 = arith.addf %23, %30 : vector<32x64xf32>
    %c1 = arith.constant 1 : index
    %c0_19 = arith.constant 0 : index
    %c0_20 = arith.constant 0 : index
    %32 = vector.load %arg3[%c1, %c0_19, %c0_20] : memref<16x256x64xbf16, #tpu.memory_space<vmem>>, vector<1x256x64xbf16>
    %33 = vector.shape_cast %32 : vector<1x256x64xbf16> to vector<256x64xbf16>
    %cst_21 = arith.constant dense<0.000000e+00> : vector<16x64xf32>
    %34 = tpu.matmul %22, %33, %cst_21 {dimension_numbers = #tpu.dot_dimension_numbers<[1], [0], [0], [1], [0, 0, 1, 1], [], []>} : vector<16x256xbf16>, vector<256x64xbf16>, vector<16x64xf32> -> vector<16x64xf32>
    %35 = arith.truncf %34 : vector<16x64xf32> to vector<16x64xbf16>
    %c1_22 = arith.constant 1 : index
    %c0_23 = arith.constant 0 : index
    %c0_24 = arith.constant 0 : index
    %36 = vector.load %arg4[%c1_22, %c0_23, %c0_24] : memref<16x32x16xbf16, #tpu.memory_space<vmem>>, vector<1x32x16xbf16>
    %37 = vector.shape_cast %36 : vector<1x32x16xbf16> to vector<32x16xbf16>
    %cst_25 = arith.constant dense<0.000000e+00> : vector<32x64xf32>
    %38 = tpu.matmul %37, %35, %cst_25 {dimension_numbers = #tpu.dot_dimension_numbers<[1], [0], [0], [1], [0, 0, 1, 1], [], []>} : vector<32x16xbf16>, vector<16x64xbf16>, vector<32x64xf32> -> vector<32x64xf32>
    %39 = arith.addf %31, %38 : vector<32x64xf32>
    %c2 = arith.constant 2 : index
    %c0_26 = arith.constant 0 : index
    %c0_27 = arith.constant 0 : index
    %40 = vector.load %arg3[%c2, %c0_26, %c0_27] : memref<16x256x64xbf16, #tpu.memory_space<vmem>>, vector<1x256x64xbf16>
    %41 = vector.shape_cast %40 : vector<1x256x64xbf16> to vector<256x64xbf16>
    %cst_28 = arith.constant dense<0.000000e+00> : vector<16x64xf32>
    %42 = tpu.matmul %22, %41, %cst_28 {dimension_numbers = #tpu.dot_dimension_numbers<[1], [0], [0], [1], [0, 0, 1, 1], [], []>} : vector<16x256xbf16>, vector<256x64xbf16>, vector<16x64xf32> -> vector<16x64xf32>
    %43 = arith.truncf %42 : vector<16x64xf32> to vector<16x64xbf16>
    %c2_29 = arith.constant 2 : index
    %c0_30 = arith.constant 0 : index
    %c0_31 = arith.constant 0 : index
    %44 = vector.load %arg4[%c2_29, %c0_30, %c0_31] : memref<16x32x16xbf16, #tpu.memory_space<vmem>>, vector<1x32x16xbf16>
    %45 = vector.shape_cast %44 : vector<1x32x16xbf16> to vector<32x16xbf16>
    %cst_32 = arith.constant dense<0.000000e+00> : vector<32x64xf32>
    %46 = tpu.matmul %45, %43, %cst_32 {dimension_numbers = #tpu.dot_dimension_numbers<[1], [0], [0], [1], [0, 0, 1, 1], [], []>} : vector<32x16xbf16>, vector<16x64xbf16>, vector<32x64xf32> -> vector<32x64xf32>
    %47 = arith.addf %39, %46 : vector<32x64xf32>
    %c3 = arith.constant 3 : index
    %c0_33 = arith.constant 0 : index
    %c0_34 = arith.constant 0 : index
    %48 = vector.load %arg3[%c3, %c0_33, %c0_34] : memref<16x256x64xbf16, #tpu.memory_space<vmem>>, vector<1x256x64xbf16>
    %49 = vector.shape_cast %48 : vector<1x256x64xbf16> to vector<256x64xbf16>
    %cst_35 = arith.constant dense<0.000000e+00> : vector<16x64xf32>
    %50 = tpu.matmul %22, %49, %cst_35 {dimension_numbers = #tpu.dot_dimension_numbers<[1], [0], [0], [1], [0, 0, 1, 1], [], []>} : vector<16x256xbf16>, vector<256x64xbf16>, vector<16x64xf32> -> vector<16x64xf32>
    %51 = arith.truncf %50 : vector<16x64xf32> to vector<16x64xbf16>
    %c3_36 = arith.constant 3 : index
    %c0_37 = arith.constant 0 : index
    %c0_38 = arith.constant 0 : index
    %52 = vector.load %arg4[%c3_36, %c0_37, %c0_38] : memref<16x32x16xbf16, #tpu.memory_space<vmem>>, vector<1x32x16xbf16>
    %53 = vector.shape_cast %52 : vector<1x32x16xbf16> to vector<32x16xbf16>
    %cst_39 = arith.constant dense<0.000000e+00> : vector<32x64xf32>
    %54 = tpu.matmul %53, %51, %cst_39 {dimension_numbers = #tpu.dot_dimension_numbers<[1], [0], [0], [1], [0, 0, 1, 1], [], []>} : vector<32x16xbf16>, vector<16x64xbf16>, vector<32x64xf32> -> vector<32x64xf32>
    %55 = arith.addf %47, %54 : vector<32x64xf32>
    %c4 = arith.constant 4 : index
    %c0_40 = arith.constant 0 : index
    %c0_41 = arith.constant 0 : index
    %56 = vector.load %arg3[%c4, %c0_40, %c0_41] : memref<16x256x64xbf16, #tpu.memory_space<vmem>>, vector<1x256x64xbf16>
    %57 = vector.shape_cast %56 : vector<1x256x64xbf16> to vector<256x64xbf16>
    %cst_42 = arith.constant dense<0.000000e+00> : vector<16x64xf32>
    %58 = tpu.matmul %22, %57, %cst_42 {dimension_numbers = #tpu.dot_dimension_numbers<[1], [0], [0], [1], [0, 0, 1, 1], [], []>} : vector<16x256xbf16>, vector<256x64xbf16>, vector<16x64xf32> -> vector<16x64xf32>
    %59 = arith.truncf %58 : vector<16x64xf32> to vector<16x64xbf16>
    %c4_43 = arith.constant 4 : index
    %c0_44 = arith.constant 0 : index
    %c0_45 = arith.constant 0 : index
    %60 = vector.load %arg4[%c4_43, %c0_44, %c0_45] : memref<16x32x16xbf16, #tpu.memory_space<vmem>>, vector<1x32x16xbf16>
    %61 = vector.shape_cast %60 : vector<1x32x16xbf16> to vector<32x16xbf16>
    %cst_46 = arith.constant dense<0.000000e+00> : vector<32x64xf32>
    %62 = tpu.matmul %61, %59, %cst_46 {dimension_numbers = #tpu.dot_dimension_numbers<[1], [0], [0], [1], [0, 0, 1, 1], [], []>} : vector<32x16xbf16>, vector<16x64xbf16>, vector<32x64xf32> -> vector<32x64xf32>
    %63 = arith.addf %55, %62 : vector<32x64xf32>
    %c5 = arith.constant 5 : index
    %c0_47 = arith.constant 0 : index
    %c0_48 = arith.constant 0 : index
    %64 = vector.load %arg3[%c5, %c0_47, %c0_48] : memref<16x256x64xbf16, #tpu.memory_space<vmem>>, vector<1x256x64xbf16>
    %65 = vector.shape_cast %64 : vector<1x256x64xbf16> to vector<256x64xbf16>
    %cst_49 = arith.constant dense<0.000000e+00> : vector<16x64xf32>
    %66 = tpu.matmul %22, %65, %cst_49 {dimension_numbers = #tpu.dot_dimension_numbers<[1], [0], [0], [1], [0, 0, 1, 1], [], []>} : vector<16x256xbf16>, vector<256x64xbf16>, vector<16x64xf32> -> vector<16x64xf32>
    %67 = arith.truncf %66 : vector<16x64xf32> to vector<16x64xbf16>
    %c5_50 = arith.constant 5 : index
    %c0_51 = arith.constant 0 : index
    %c0_52 = arith.constant 0 : index
    %68 = vector.load %arg4[%c5_50, %c0_51, %c0_52] : memref<16x32x16xbf16, #tpu.memory_space<vmem>>, vector<1x32x16xbf16>
    %69 = vector.shape_cast %68 : vector<1x32x16xbf16> to vector<32x16xbf16>
    %cst_53 = arith.constant dense<0.000000e+00> : vector<32x64xf32>
    %70 = tpu.matmul %69, %67, %cst_53 {dimension_numbers = #tpu.dot_dimension_numbers<[1], [0], [0], [1], [0, 0, 1, 1], [], []>} : vector<32x16xbf16>, vector<16x64xbf16>, vector<32x64xf32> -> vector<32x64xf32>
    %71 = arith.addf %63, %70 : vector<32x64xf32>
    %c6 = arith.constant 6 : index
    %c0_54 = arith.constant 0 : index
    %c0_55 = arith.constant 0 : index
    %72 = vector.load %arg3[%c6, %c0_54, %c0_55] : memref<16x256x64xbf16, #tpu.memory_space<vmem>>, vector<1x256x64xbf16>
    %73 = vector.shape_cast %72 : vector<1x256x64xbf16> to vector<256x64xbf16>
    %cst_56 = arith.constant dense<0.000000e+00> : vector<16x64xf32>
    %74 = tpu.matmul %22, %73, %cst_56 {dimension_numbers = #tpu.dot_dimension_numbers<[1], [0], [0], [1], [0, 0, 1, 1], [], []>} : vector<16x256xbf16>, vector<256x64xbf16>, vector<16x64xf32> -> vector<16x64xf32>
    %75 = arith.truncf %74 : vector<16x64xf32> to vector<16x64xbf16>
    %c6_57 = arith.constant 6 : index
    %c0_58 = arith.constant 0 : index
    %c0_59 = arith.constant 0 : index
    %76 = vector.load %arg4[%c6_57, %c0_58, %c0_59] : memref<16x32x16xbf16, #tpu.memory_space<vmem>>, vector<1x32x16xbf16>
    %77 = vector.shape_cast %76 : vector<1x32x16xbf16> to vector<32x16xbf16>
    %cst_60 = arith.constant dense<0.000000e+00> : vector<32x64xf32>
    %78 = tpu.matmul %77, %75, %cst_60 {dimension_numbers = #tpu.dot_dimension_numbers<[1], [0], [0], [1], [0, 0, 1, 1], [], []>} : vector<32x16xbf16>, vector<16x64xbf16>, vector<32x64xf32> -> vector<32x64xf32>
    %79 = arith.addf %71, %78 : vector<32x64xf32>
    %c7 = arith.constant 7 : index
    %c0_61 = arith.constant 0 : index
    %c0_62 = arith.constant 0 : index
    %80 = vector.load %arg3[%c7, %c0_61, %c0_62] : memref<16x256x64xbf16, #tpu.memory_space<vmem>>, vector<1x256x64xbf16>
    %81 = vector.shape_cast %80 : vector<1x256x64xbf16> to vector<256x64xbf16>
    %cst_63 = arith.constant dense<0.000000e+00> : vector<16x64xf32>
    %82 = tpu.matmul %22, %81, %cst_63 {dimension_numbers = #tpu.dot_dimension_numbers<[1], [0], [0], [1], [0, 0, 1, 1], [], []>} : vector<16x256xbf16>, vector<256x64xbf16>, vector<16x64xf32> -> vector<16x64xf32>
    %83 = arith.truncf %82 : vector<16x64xf32> to vector<16x64xbf16>
    %c7_64 = arith.constant 7 : index
    %c0_65 = arith.constant 0 : index
    %c0_66 = arith.constant 0 : index
    %84 = vector.load %arg4[%c7_64, %c0_65, %c0_66] : memref<16x32x16xbf16, #tpu.memory_space<vmem>>, vector<1x32x16xbf16>
    %85 = vector.shape_cast %84 : vector<1x32x16xbf16> to vector<32x16xbf16>
    %cst_67 = arith.constant dense<0.000000e+00> : vector<32x64xf32>
    %86 = tpu.matmul %85, %83, %cst_67 {dimension_numbers = #tpu.dot_dimension_numbers<[1], [0], [0], [1], [0, 0, 1, 1], [], []>} : vector<32x16xbf16>, vector<16x64xbf16>, vector<32x64xf32> -> vector<32x64xf32>
    %87 = arith.addf %79, %86 : vector<32x64xf32>
    %c8 = arith.constant 8 : index
    %c0_68 = arith.constant 0 : index
    %c0_69 = arith.constant 0 : index
    %88 = vector.load %arg3[%c8, %c0_68, %c0_69] : memref<16x256x64xbf16, #tpu.memory_space<vmem>>, vector<1x256x64xbf16>
    %89 = vector.shape_cast %88 : vector<1x256x64xbf16> to vector<256x64xbf16>
    %cst_70 = arith.constant dense<0.000000e+00> : vector<16x64xf32>
    %90 = tpu.matmul %22, %89, %cst_70 {dimension_numbers = #tpu.dot_dimension_numbers<[1], [0], [0], [1], [0, 0, 1, 1], [], []>} : vector<16x256xbf16>, vector<256x64xbf16>, vector<16x64xf32> -> vector<16x64xf32>
    %91 = arith.truncf %90 : vector<16x64xf32> to vector<16x64xbf16>
    %c8_71 = arith.constant 8 : index
    %c0_72 = arith.constant 0 : index
    %c0_73 = arith.constant 0 : index
    %92 = vector.load %arg4[%c8_71, %c0_72, %c0_73] : memref<16x32x16xbf16, #tpu.memory_space<vmem>>, vector<1x32x16xbf16>
    %93 = vector.shape_cast %92 : vector<1x32x16xbf16> to vector<32x16xbf16>
    %cst_74 = arith.constant dense<0.000000e+00> : vector<32x64xf32>
    %94 = tpu.matmul %93, %91, %cst_74 {dimension_numbers = #tpu.dot_dimension_numbers<[1], [0], [0], [1], [0, 0, 1, 1], [], []>} : vector<32x16xbf16>, vector<16x64xbf16>, vector<32x64xf32> -> vector<32x64xf32>
    %95 = arith.addf %87, %94 : vector<32x64xf32>
    %c9 = arith.constant 9 : index
    %c0_75 = arith.constant 0 : index
    %c0_76 = arith.constant 0 : index
    %96 = vector.load %arg3[%c9, %c0_75, %c0_76] : memref<16x256x64xbf16, #tpu.memory_space<vmem>>, vector<1x256x64xbf16>
    %97 = vector.shape_cast %96 : vector<1x256x64xbf16> to vector<256x64xbf16>
    %cst_77 = arith.constant dense<0.000000e+00> : vector<16x64xf32>
    %98 = tpu.matmul %22, %97, %cst_77 {dimension_numbers = #tpu.dot_dimension_numbers<[1], [0], [0], [1], [0, 0, 1, 1], [], []>} : vector<16x256xbf16>, vector<256x64xbf16>, vector<16x64xf32> -> vector<16x64xf32>
    %99 = arith.truncf %98 : vector<16x64xf32> to vector<16x64xbf16>
    %c9_78 = arith.constant 9 : index
    %c0_79 = arith.constant 0 : index
    %c0_80 = arith.constant 0 : index
    %100 = vector.load %arg4[%c9_78, %c0_79, %c0_80] : memref<16x32x16xbf16, #tpu.memory_space<vmem>>, vector<1x32x16xbf16>
    %101 = vector.shape_cast %100 : vector<1x32x16xbf16> to vector<32x16xbf16>
    %cst_81 = arith.constant dense<0.000000e+00> : vector<32x64xf32>
    %102 = tpu.matmul %101, %99, %cst_81 {dimension_numbers = #tpu.dot_dimension_numbers<[1], [0], [0], [1], [0, 0, 1, 1], [], []>} : vector<32x16xbf16>, vector<16x64xbf16>, vector<32x64xf32> -> vector<32x64xf32>
    %103 = arith.addf %95, %102 : vector<32x64xf32>
    %c10 = arith.constant 10 : index
    %c0_82 = arith.constant 0 : index
    %c0_83 = arith.constant 0 : index
    %104 = vector.load %arg3[%c10, %c0_82, %c0_83] : memref<16x256x64xbf16, #tpu.memory_space<vmem>>, vector<1x256x64xbf16>
    %105 = vector.shape_cast %104 : vector<1x256x64xbf16> to vector<256x64xbf16>
    %cst_84 = arith.constant dense<0.000000e+00> : vector<16x64xf32>
    %106 = tpu.matmul %22, %105, %cst_84 {dimension_numbers = #tpu.dot_dimension_numbers<[1], [0], [0], [1], [0, 0, 1, 1], [], []>} : vector<16x256xbf16>, vector<256x64xbf16>, vector<16x64xf32> -> vector<16x64xf32>
    %107 = arith.truncf %106 : vector<16x64xf32> to vector<16x64xbf16>
    %c10_85 = arith.constant 10 : index
    %c0_86 = arith.constant 0 : index
    %c0_87 = arith.constant 0 : index
    %108 = vector.load %arg4[%c10_85, %c0_86, %c0_87] : memref<16x32x16xbf16, #tpu.memory_space<vmem>>, vector<1x32x16xbf16>
    %109 = vector.shape_cast %108 : vector<1x32x16xbf16> to vector<32x16xbf16>
    %cst_88 = arith.constant dense<0.000000e+00> : vector<32x64xf32>
    %110 = tpu.matmul %109, %107, %cst_88 {dimension_numbers = #tpu.dot_dimension_numbers<[1], [0], [0], [1], [0, 0, 1, 1], [], []>} : vector<32x16xbf16>, vector<16x64xbf16>, vector<32x64xf32> -> vector<32x64xf32>
    %111 = arith.addf %103, %110 : vector<32x64xf32>
    %c11 = arith.constant 11 : index
    %c0_89 = arith.constant 0 : index
    %c0_90 = arith.constant 0 : index
    %112 = vector.load %arg3[%c11, %c0_89, %c0_90] : memref<16x256x64xbf16, #tpu.memory_space<vmem>>, vector<1x256x64xbf16>
    %113 = vector.shape_cast %112 : vector<1x256x64xbf16> to vector<256x64xbf16>
    %cst_91 = arith.constant dense<0.000000e+00> : vector<16x64xf32>
    %114 = tpu.matmul %22, %113, %cst_91 {dimension_numbers = #tpu.dot_dimension_numbers<[1], [0], [0], [1], [0, 0, 1, 1], [], []>} : vector<16x256xbf16>, vector<256x64xbf16>, vector<16x64xf32> -> vector<16x64xf32>
    %115 = arith.truncf %114 : vector<16x64xf32> to vector<16x64xbf16>
    %c11_92 = arith.constant 11 : index
    %c0_93 = arith.constant 0 : index
    %c0_94 = arith.constant 0 : index
    %116 = vector.load %arg4[%c11_92, %c0_93, %c0_94] : memref<16x32x16xbf16, #tpu.memory_space<vmem>>, vector<1x32x16xbf16>
    %117 = vector.shape_cast %116 : vector<1x32x16xbf16> to vector<32x16xbf16>
    %cst_95 = arith.constant dense<0.000000e+00> : vector<32x64xf32>
    %118 = tpu.matmul %117, %115, %cst_95 {dimension_numbers = #tpu.dot_dimension_numbers<[1], [0], [0], [1], [0, 0, 1, 1], [], []>} : vector<32x16xbf16>, vector<16x64xbf16>, vector<32x64xf32> -> vector<32x64xf32>
    %119 = arith.addf %111, %118 : vector<32x64xf32>
    %c12 = arith.constant 12 : index
    %c0_96 = arith.constant 0 : index
    %c0_97 = arith.constant 0 : index
    %120 = vector.load %arg3[%c12, %c0_96, %c0_97] : memref<16x256x64xbf16, #tpu.memory_space<vmem>>, vector<1x256x64xbf16>
    %121 = vector.shape_cast %120 : vector<1x256x64xbf16> to vector<256x64xbf16>
    %cst_98 = arith.constant dense<0.000000e+00> : vector<16x64xf32>
    %122 = tpu.matmul %22, %121, %cst_98 {dimension_numbers = #tpu.dot_dimension_numbers<[1], [0], [0], [1], [0, 0, 1, 1], [], []>} : vector<16x256xbf16>, vector<256x64xbf16>, vector<16x64xf32> -> vector<16x64xf32>
    %123 = arith.truncf %122 : vector<16x64xf32> to vector<16x64xbf16>
    %c12_99 = arith.constant 12 : index
    %c0_100 = arith.constant 0 : index
    %c0_101 = arith.constant 0 : index
    %124 = vector.load %arg4[%c12_99, %c0_100, %c0_101] : memref<16x32x16xbf16, #tpu.memory_space<vmem>>, vector<1x32x16xbf16>
    %125 = vector.shape_cast %124 : vector<1x32x16xbf16> to vector<32x16xbf16>
    %cst_102 = arith.constant dense<0.000000e+00> : vector<32x64xf32>
    %126 = tpu.matmul %125, %123, %cst_102 {dimension_numbers = #tpu.dot_dimension_numbers<[1], [0], [0], [1], [0, 0, 1, 1], [], []>} : vector<32x16xbf16>, vector<16x64xbf16>, vector<32x64xf32> -> vector<32x64xf32>
    %127 = arith.addf %119, %126 : vector<32x64xf32>
    %c13 = arith.constant 13 : index
    %c0_103 = arith.constant 0 : index
    %c0_104 = arith.constant 0 : index
    %128 = vector.load %arg3[%c13, %c0_103, %c0_104] : memref<16x256x64xbf16, #tpu.memory_space<vmem>>, vector<1x256x64xbf16>
    %129 = vector.shape_cast %128 : vector<1x256x64xbf16> to vector<256x64xbf16>
    %cst_105 = arith.constant dense<0.000000e+00> : vector<16x64xf32>
    %130 = tpu.matmul %22, %129, %cst_105 {dimension_numbers = #tpu.dot_dimension_numbers<[1], [0], [0], [1], [0, 0, 1, 1], [], []>} : vector<16x256xbf16>, vector<256x64xbf16>, vector<16x64xf32> -> vector<16x64xf32>
    %131 = arith.truncf %130 : vector<16x64xf32> to vector<16x64xbf16>
    %c13_106 = arith.constant 13 : index
    %c0_107 = arith.constant 0 : index
    %c0_108 = arith.constant 0 : index
    %132 = vector.load %arg4[%c13_106, %c0_107, %c0_108] : memref<16x32x16xbf16, #tpu.memory_space<vmem>>, vector<1x32x16xbf16>
    %133 = vector.shape_cast %132 : vector<1x32x16xbf16> to vector<32x16xbf16>
    %cst_109 = arith.constant dense<0.000000e+00> : vector<32x64xf32>
    %134 = tpu.matmul %133, %131, %cst_109 {dimension_numbers = #tpu.dot_dimension_numbers<[1], [0], [0], [1], [0, 0, 1, 1], [], []>} : vector<32x16xbf16>, vector<16x64xbf16>, vector<32x64xf32> -> vector<32x64xf32>
    %135 = arith.addf %127, %134 : vector<32x64xf32>
    %c14 = arith.constant 14 : index
    %c0_110 = arith.constant 0 : index
    %c0_111 = arith.constant 0 : index
    %136 = vector.load %arg3[%c14, %c0_110, %c0_111] : memref<16x256x64xbf16, #tpu.memory_space<vmem>>, vector<1x256x64xbf16>
    %137 = vector.shape_cast %136 : vector<1x256x64xbf16> to vector<256x64xbf16>
    %cst_112 = arith.constant dense<0.000000e+00> : vector<16x64xf32>
    %138 = tpu.matmul %22, %137, %cst_112 {dimension_numbers = #tpu.dot_dimension_numbers<[1], [0], [0], [1], [0, 0, 1, 1], [], []>} : vector<16x256xbf16>, vector<256x64xbf16>, vector<16x64xf32> -> vector<16x64xf32>
    %139 = arith.truncf %138 : vector<16x64xf32> to vector<16x64xbf16>
    %c14_113 = arith.constant 14 : index
    %c0_114 = arith.constant 0 : index
    %c0_115 = arith.constant 0 : index
    %140 = vector.load %arg4[%c14_113, %c0_114, %c0_115] : memref<16x32x16xbf16, #tpu.memory_space<vmem>>, vector<1x32x16xbf16>
    %141 = vector.shape_cast %140 : vector<1x32x16xbf16> to vector<32x16xbf16>
    %cst_116 = arith.constant dense<0.000000e+00> : vector<32x64xf32>
    %142 = tpu.matmul %141, %139, %cst_116 {dimension_numbers = #tpu.dot_dimension_numbers<[1], [0], [0], [1], [0, 0, 1, 1], [], []>} : vector<32x16xbf16>, vector<16x64xbf16>, vector<32x64xf32> -> vector<32x64xf32>
    %143 = arith.addf %135, %142 : vector<32x64xf32>
    %c15 = arith.constant 15 : index
    %c0_117 = arith.constant 0 : index
    %c0_118 = arith.constant 0 : index
    %144 = vector.load %arg3[%c15, %c0_117, %c0_118] : memref<16x256x64xbf16, #tpu.memory_space<vmem>>, vector<1x256x64xbf16>
    %145 = vector.shape_cast %144 : vector<1x256x64xbf16> to vector<256x64xbf16>
    %cst_119 = arith.constant dense<0.000000e+00> : vector<16x64xf32>
    %146 = tpu.matmul %22, %145, %cst_119 {dimension_numbers = #tpu.dot_dimension_numbers<[1], [0], [0], [1], [0, 0, 1, 1], [], []>} : vector<16x256xbf16>, vector<256x64xbf16>, vector<16x64xf32> -> vector<16x64xf32>
    %147 = arith.truncf %146 : vector<16x64xf32> to vector<16x64xbf16>
    %c15_120 = arith.constant 15 : index
    %c0_121 = arith.constant 0 : index
    %c0_122 = arith.constant 0 : index
    %148 = vector.load %arg4[%c15_120, %c0_121, %c0_122] : memref<16x32x16xbf16, #tpu.memory_space<vmem>>, vector<1x32x16xbf16>
    %149 = vector.shape_cast %148 : vector<1x32x16xbf16> to vector<32x16xbf16>
    %cst_123 = arith.constant dense<0.000000e+00> : vector<32x64xf32>
    %150 = tpu.matmul %149, %147, %cst_123 {dimension_numbers = #tpu.dot_dimension_numbers<[1], [0], [0], [1], [0, 0, 1, 1], [], []>} : vector<32x16xbf16>, vector<16x64xbf16>, vector<32x64xf32> -> vector<32x64xf32>
    %151 = arith.addf %143, %150 : vector<32x64xf32>
    %cst_124 = arith.constant dense<0.000000e+00> : vector<32xf32>
    %152 = vector.multi_reduction <add>, %151, %cst_124 [1] : vector<32x64xf32> to vector<32xf32>
    %153 = vector.shape_cast %152 : vector<32xf32> to vector<32x1xf32>
    %cst_125 = arith.constant 6.400000e+01 : f32
    %154 = vector.broadcast %cst_125 : f32 to vector<32x1xf32>
    %155 = arith.divf %153, %154 : vector<32x1xf32>
    %156 = vector.broadcast %155 : vector<32x1xf32> to vector<32x64xf32>
    %157 = arith.subf %151, %156 : vector<32x64xf32>
    %158 = arith.mulf %157, %157 : vector<32x64xf32>
    %cst_126 = arith.constant dense<0.000000e+00> : vector<32xf32>
    %159 = vector.multi_reduction <add>, %158, %cst_126 [1] : vector<32x64xf32> to vector<32xf32>
    %160 = vector.shape_cast %159 : vector<32xf32> to vector<32x1xf32>
    %cst_127 = arith.constant 6.400000e+01 : f32
    %161 = vector.broadcast %cst_127 : f32 to vector<32x1xf32>
    %162 = arith.divf %160, %161 : vector<32x1xf32>
    %cst_128 = arith.constant 9.99999974E-6 : f32
    %163 = vector.broadcast %cst_128 : f32 to vector<32x1xf32>
    %164 = arith.addf %162, %163 : vector<32x1xf32>
    %165 = math.rsqrt %164 : vector<32x1xf32>
    %166 = vector.broadcast %165 : vector<32x1xf32> to vector<32x64xf32>
    %167 = arith.mulf %157, %166 : vector<32x64xf32>
    %cst_129 = arith.constant 0.000000e+00 : f32
    %168 = vector.broadcast %cst_129 : f32 to vector<32x64xf32>
    %169 = arith.maximumf %167, %168 : vector<32x64xf32>
    %170 = arith.truncf %169 : vector<32x64xf32> to vector<32x64xbf16>
    %cst_130 = arith.constant 0.000000e+00 : f32
    %171 = vector.broadcast %cst_130 : f32 to vector<64x16xf32>
    %c0_131 = arith.constant 0 : index
    %c0_132 = arith.constant 0 : index
    %c0_133 = arith.constant 0 : index
    %172 = vector.load %arg5[%c0_131, %c0_132, %c0_133] : memref<16x64x16xbf16, #tpu.memory_space<vmem>>, vector<1x64x16xbf16>
    %173 = vector.shape_cast %172 : vector<1x64x16xbf16> to vector<64x16xbf16>
    %cst_134 = arith.constant dense<0.000000e+00> : vector<32x16xf32>
    %174 = tpu.matmul %170, %173, %cst_134 {dimension_numbers = #tpu.dot_dimension_numbers<[1], [0], [0], [1], [0, 0, 1, 1], [], []>} : vector<32x64xbf16>, vector<64x16xbf16>, vector<32x16xf32> -> vector<32x16xf32>
    %175 = arith.truncf %174 : vector<32x16xf32> to vector<32x16xbf16>
    %c0_135 = arith.constant 0 : index
    %c0_136 = arith.constant 0 : index
    %c0_137 = arith.constant 0 : index
    %176 = vector.load %arg6[%c0_135, %c0_136, %c0_137] : memref<16x64x32xbf16, #tpu.memory_space<vmem>>, vector<1x64x32xbf16>
    %177 = vector.shape_cast %176 : vector<1x64x32xbf16> to vector<64x32xbf16>
    %cst_138 = arith.constant dense<0.000000e+00> : vector<64x16xf32>
    %178 = tpu.matmul %177, %175, %cst_138 {dimension_numbers = #tpu.dot_dimension_numbers<[1], [0], [0], [1], [0, 0, 1, 1], [], []>} : vector<64x32xbf16>, vector<32x16xbf16>, vector<64x16xf32> -> vector<64x16xf32>
    %179 = arith.addf %171, %178 : vector<64x16xf32>
    %c1_139 = arith.constant 1 : index
    %c0_140 = arith.constant 0 : index
    %c0_141 = arith.constant 0 : index
    %180 = vector.load %arg5[%c1_139, %c0_140, %c0_141] : memref<16x64x16xbf16, #tpu.memory_space<vmem>>, vector<1x64x16xbf16>
    %181 = vector.shape_cast %180 : vector<1x64x16xbf16> to vector<64x16xbf16>
    %cst_142 = arith.constant dense<0.000000e+00> : vector<32x16xf32>
    %182 = tpu.matmul %170, %181, %cst_142 {dimension_numbers = #tpu.dot_dimension_numbers<[1], [0], [0], [1], [0, 0, 1, 1], [], []>} : vector<32x64xbf16>, vector<64x16xbf16>, vector<32x16xf32> -> vector<32x16xf32>
    %183 = arith.truncf %182 : vector<32x16xf32> to vector<32x16xbf16>
    %c1_143 = arith.constant 1 : index
    %c0_144 = arith.constant 0 : index
    %c0_145 = arith.constant 0 : index
    %184 = vector.load %arg6[%c1_143, %c0_144, %c0_145] : memref<16x64x32xbf16, #tpu.memory_space<vmem>>, vector<1x64x32xbf16>
    %185 = vector.shape_cast %184 : vector<1x64x32xbf16> to vector<64x32xbf16>
    %cst_146 = arith.constant dense<0.000000e+00> : vector<64x16xf32>
    %186 = tpu.matmul %185, %183, %cst_146 {dimension_numbers = #tpu.dot_dimension_numbers<[1], [0], [0], [1], [0, 0, 1, 1], [], []>} : vector<64x32xbf16>, vector<32x16xbf16>, vector<64x16xf32> -> vector<64x16xf32>
    %187 = arith.addf %179, %186 : vector<64x16xf32>
    %c2_147 = arith.constant 2 : index
    %c0_148 = arith.constant 0 : index
    %c0_149 = arith.constant 0 : index
    %188 = vector.load %arg5[%c2_147, %c0_148, %c0_149] : memref<16x64x16xbf16, #tpu.memory_space<vmem>>, vector<1x64x16xbf16>
    %189 = vector.shape_cast %188 : vector<1x64x16xbf16> to vector<64x16xbf16>
    %cst_150 = arith.constant dense<0.000000e+00> : vector<32x16xf32>
    %190 = tpu.matmul %170, %189, %cst_150 {dimension_numbers = #tpu.dot_dimension_numbers<[1], [0], [0], [1], [0, 0, 1, 1], [], []>} : vector<32x64xbf16>, vector<64x16xbf16>, vector<32x16xf32> -> vector<32x16xf32>
    %191 = arith.truncf %190 : vector<32x16xf32> to vector<32x16xbf16>
    %c2_151 = arith.constant 2 : index
    %c0_152 = arith.constant 0 : index
    %c0_153 = arith.constant 0 : index
    %192 = vector.load %arg6[%c2_151, %c0_152, %c0_153] : memref<16x64x32xbf16, #tpu.memory_space<vmem>>, vector<1x64x32xbf16>
    %193 = vector.shape_cast %192 : vector<1x64x32xbf16> to vector<64x32xbf16>
    %cst_154 = arith.constant dense<0.000000e+00> : vector<64x16xf32>
    %194 = tpu.matmul %193, %191, %cst_154 {dimension_numbers = #tpu.dot_dimension_numbers<[1], [0], [0], [1], [0, 0, 1, 1], [], []>} : vector<64x32xbf16>, vector<32x16xbf16>, vector<64x16xf32> -> vector<64x16xf32>
    %195 = arith.addf %187, %194 : vector<64x16xf32>
    %c3_155 = arith.constant 3 : index
    %c0_156 = arith.constant 0 : index
    %c0_157 = arith.constant 0 : index
    %196 = vector.load %arg5[%c3_155, %c0_156, %c0_157] : memref<16x64x16xbf16, #tpu.memory_space<vmem>>, vector<1x64x16xbf16>
    %197 = vector.shape_cast %196 : vector<1x64x16xbf16> to vector<64x16xbf16>
    %cst_158 = arith.constant dense<0.000000e+00> : vector<32x16xf32>
    %198 = tpu.matmul %170, %197, %cst_158 {dimension_numbers = #tpu.dot_dimension_numbers<[1], [0], [0], [1], [0, 0, 1, 1], [], []>} : vector<32x64xbf16>, vector<64x16xbf16>, vector<32x16xf32> -> vector<32x16xf32>
    %199 = arith.truncf %198 : vector<32x16xf32> to vector<32x16xbf16>
    %c3_159 = arith.constant 3 : index
    %c0_160 = arith.constant 0 : index
    %c0_161 = arith.constant 0 : index
    %200 = vector.load %arg6[%c3_159, %c0_160, %c0_161] : memref<16x64x32xbf16, #tpu.memory_space<vmem>>, vector<1x64x32xbf16>
    %201 = vector.shape_cast %200 : vector<1x64x32xbf16> to vector<64x32xbf16>
    %cst_162 = arith.constant dense<0.000000e+00> : vector<64x16xf32>
    %202 = tpu.matmul %201, %199, %cst_162 {dimension_numbers = #tpu.dot_dimension_numbers<[1], [0], [0], [1], [0, 0, 1, 1], [], []>} : vector<64x32xbf16>, vector<32x16xbf16>, vector<64x16xf32> -> vector<64x16xf32>
    %203 = arith.addf %195, %202 : vector<64x16xf32>
    %c4_163 = arith.constant 4 : index
    %c0_164 = arith.constant 0 : index
    %c0_165 = arith.constant 0 : index
    %204 = vector.load %arg5[%c4_163, %c0_164, %c0_165] : memref<16x64x16xbf16, #tpu.memory_space<vmem>>, vector<1x64x16xbf16>
    %205 = vector.shape_cast %204 : vector<1x64x16xbf16> to vector<64x16xbf16>
    %cst_166 = arith.constant dense<0.000000e+00> : vector<32x16xf32>
    %206 = tpu.matmul %170, %205, %cst_166 {dimension_numbers = #tpu.dot_dimension_numbers<[1], [0], [0], [1], [0, 0, 1, 1], [], []>} : vector<32x64xbf16>, vector<64x16xbf16>, vector<32x16xf32> -> vector<32x16xf32>
    %207 = arith.truncf %206 : vector<32x16xf32> to vector<32x16xbf16>
    %c4_167 = arith.constant 4 : index
    %c0_168 = arith.constant 0 : index
    %c0_169 = arith.constant 0 : index
    %208 = vector.load %arg6[%c4_167, %c0_168, %c0_169] : memref<16x64x32xbf16, #tpu.memory_space<vmem>>, vector<1x64x32xbf16>
    %209 = vector.shape_cast %208 : vector<1x64x32xbf16> to vector<64x32xbf16>
    %cst_170 = arith.constant dense<0.000000e+00> : vector<64x16xf32>
    %210 = tpu.matmul %209, %207, %cst_170 {dimension_numbers = #tpu.dot_dimension_numbers<[1], [0], [0], [1], [0, 0, 1, 1], [], []>} : vector<64x32xbf16>, vector<32x16xbf16>, vector<64x16xf32> -> vector<64x16xf32>
    %211 = arith.addf %203, %210 : vector<64x16xf32>
    %c5_171 = arith.constant 5 : index
    %c0_172 = arith.constant 0 : index
    %c0_173 = arith.constant 0 : index
    %212 = vector.load %arg5[%c5_171, %c0_172, %c0_173] : memref<16x64x16xbf16, #tpu.memory_space<vmem>>, vector<1x64x16xbf16>
    %213 = vector.shape_cast %212 : vector<1x64x16xbf16> to vector<64x16xbf16>
    %cst_174 = arith.constant dense<0.000000e+00> : vector<32x16xf32>
    %214 = tpu.matmul %170, %213, %cst_174 {dimension_numbers = #tpu.dot_dimension_numbers<[1], [0], [0], [1], [0, 0, 1, 1], [], []>} : vector<32x64xbf16>, vector<64x16xbf16>, vector<32x16xf32> -> vector<32x16xf32>
    %215 = arith.truncf %214 : vector<32x16xf32> to vector<32x16xbf16>
    %c5_175 = arith.constant 5 : index
    %c0_176 = arith.constant 0 : index
    %c0_177 = arith.constant 0 : index
    %216 = vector.load %arg6[%c5_175, %c0_176, %c0_177] : memref<16x64x32xbf16, #tpu.memory_space<vmem>>, vector<1x64x32xbf16>
    %217 = vector.shape_cast %216 : vector<1x64x32xbf16> to vector<64x32xbf16>
    %cst_178 = arith.constant dense<0.000000e+00> : vector<64x16xf32>
    %218 = tpu.matmul %217, %215, %cst_178 {dimension_numbers = #tpu.dot_dimension_numbers<[1], [0], [0], [1], [0, 0, 1, 1], [], []>} : vector<64x32xbf16>, vector<32x16xbf16>, vector<64x16xf32> -> vector<64x16xf32>
    %219 = arith.addf %211, %218 : vector<64x16xf32>
    %c6_179 = arith.constant 6 : index
    %c0_180 = arith.constant 0 : index
    %c0_181 = arith.constant 0 : index
    %220 = vector.load %arg5[%c6_179, %c0_180, %c0_181] : memref<16x64x16xbf16, #tpu.memory_space<vmem>>, vector<1x64x16xbf16>
    %221 = vector.shape_cast %220 : vector<1x64x16xbf16> to vector<64x16xbf16>
    %cst_182 = arith.constant dense<0.000000e+00> : vector<32x16xf32>
    %222 = tpu.matmul %170, %221, %cst_182 {dimension_numbers = #tpu.dot_dimension_numbers<[1], [0], [0], [1], [0, 0, 1, 1], [], []>} : vector<32x64xbf16>, vector<64x16xbf16>, vector<32x16xf32> -> vector<32x16xf32>
    %223 = arith.truncf %222 : vector<32x16xf32> to vector<32x16xbf16>
    %c6_183 = arith.constant 6 : index
    %c0_184 = arith.constant 0 : index
    %c0_185 = arith.constant 0 : index
    %224 = vector.load %arg6[%c6_183, %c0_184, %c0_185] : memref<16x64x32xbf16, #tpu.memory_space<vmem>>, vector<1x64x32xbf16>
    %225 = vector.shape_cast %224 : vector<1x64x32xbf16> to vector<64x32xbf16>
    %cst_186 = arith.constant dense<0.000000e+00> : vector<64x16xf32>
    %226 = tpu.matmul %225, %223, %cst_186 {dimension_numbers = #tpu.dot_dimension_numbers<[1], [0], [0], [1], [0, 0, 1, 1], [], []>} : vector<64x32xbf16>, vector<32x16xbf16>, vector<64x16xf32> -> vector<64x16xf32>
    %227 = arith.addf %219, %226 : vector<64x16xf32>
    %c7_187 = arith.constant 7 : index
    %c0_188 = arith.constant 0 : index
    %c0_189 = arith.constant 0 : index
    %228 = vector.load %arg5[%c7_187, %c0_188, %c0_189] : memref<16x64x16xbf16, #tpu.memory_space<vmem>>, vector<1x64x16xbf16>
    %229 = vector.shape_cast %228 : vector<1x64x16xbf16> to vector<64x16xbf16>
    %cst_190 = arith.constant dense<0.000000e+00> : vector<32x16xf32>
    %230 = tpu.matmul %170, %229, %cst_190 {dimension_numbers = #tpu.dot_dimension_numbers<[1], [0], [0], [1], [0, 0, 1, 1], [], []>} : vector<32x64xbf16>, vector<64x16xbf16>, vector<32x16xf32> -> vector<32x16xf32>
    %231 = arith.truncf %230 : vector<32x16xf32> to vector<32x16xbf16>
    %c7_191 = arith.constant 7 : index
    %c0_192 = arith.constant 0 : index
    %c0_193 = arith.constant 0 : index
    %232 = vector.load %arg6[%c7_191, %c0_192, %c0_193] : memref<16x64x32xbf16, #tpu.memory_space<vmem>>, vector<1x64x32xbf16>
    %233 = vector.shape_cast %232 : vector<1x64x32xbf16> to vector<64x32xbf16>
    %cst_194 = arith.constant dense<0.000000e+00> : vector<64x16xf32>
    %234 = tpu.matmul %233, %231, %cst_194 {dimension_numbers = #tpu.dot_dimension_numbers<[1], [0], [0], [1], [0, 0, 1, 1], [], []>} : vector<64x32xbf16>, vector<32x16xbf16>, vector<64x16xf32> -> vector<64x16xf32>
    %235 = arith.addf %227, %234 : vector<64x16xf32>
    %c8_195 = arith.constant 8 : index
    %c0_196 = arith.constant 0 : index
    %c0_197 = arith.constant 0 : index
    %236 = vector.load %arg5[%c8_195, %c0_196, %c0_197] : memref<16x64x16xbf16, #tpu.memory_space<vmem>>, vector<1x64x16xbf16>
    %237 = vector.shape_cast %236 : vector<1x64x16xbf16> to vector<64x16xbf16>
    %cst_198 = arith.constant dense<0.000000e+00> : vector<32x16xf32>
    %238 = tpu.matmul %170, %237, %cst_198 {dimension_numbers = #tpu.dot_dimension_numbers<[1], [0], [0], [1], [0, 0, 1, 1], [], []>} : vector<32x64xbf16>, vector<64x16xbf16>, vector<32x16xf32> -> vector<32x16xf32>
    %239 = arith.truncf %238 : vector<32x16xf32> to vector<32x16xbf16>
    %c8_199 = arith.constant 8 : index
    %c0_200 = arith.constant 0 : index
    %c0_201 = arith.constant 0 : index
    %240 = vector.load %arg6[%c8_199, %c0_200, %c0_201] : memref<16x64x32xbf16, #tpu.memory_space<vmem>>, vector<1x64x32xbf16>
    %241 = vector.shape_cast %240 : vector<1x64x32xbf16> to vector<64x32xbf16>
    %cst_202 = arith.constant dense<0.000000e+00> : vector<64x16xf32>
    %242 = tpu.matmul %241, %239, %cst_202 {dimension_numbers = #tpu.dot_dimension_numbers<[1], [0], [0], [1], [0, 0, 1, 1], [], []>} : vector<64x32xbf16>, vector<32x16xbf16>, vector<64x16xf32> -> vector<64x16xf32>
    %243 = arith.addf %235, %242 : vector<64x16xf32>
    %c9_203 = arith.constant 9 : index
    %c0_204 = arith.constant 0 : index
    %c0_205 = arith.constant 0 : index
    %244 = vector.load %arg5[%c9_203, %c0_204, %c0_205] : memref<16x64x16xbf16, #tpu.memory_space<vmem>>, vector<1x64x16xbf16>
    %245 = vector.shape_cast %244 : vector<1x64x16xbf16> to vector<64x16xbf16>
    %cst_206 = arith.constant dense<0.000000e+00> : vector<32x16xf32>
    %246 = tpu.matmul %170, %245, %cst_206 {dimension_numbers = #tpu.dot_dimension_numbers<[1], [0], [0], [1], [0, 0, 1, 1], [], []>} : vector<32x64xbf16>, vector<64x16xbf16>, vector<32x16xf32> -> vector<32x16xf32>
    %247 = arith.truncf %246 : vector<32x16xf32> to vector<32x16xbf16>
    %c9_207 = arith.constant 9 : index
    %c0_208 = arith.constant 0 : index
    %c0_209 = arith.constant 0 : index
    %248 = vector.load %arg6[%c9_207, %c0_208, %c0_209] : memref<16x64x32xbf16, #tpu.memory_space<vmem>>, vector<1x64x32xbf16>
    %249 = vector.shape_cast %248 : vector<1x64x32xbf16> to vector<64x32xbf16>
    %cst_210 = arith.constant dense<0.000000e+00> : vector<64x16xf32>
    %250 = tpu.matmul %249, %247, %cst_210 {dimension_numbers = #tpu.dot_dimension_numbers<[1], [0], [0], [1], [0, 0, 1, 1], [], []>} : vector<64x32xbf16>, vector<32x16xbf16>, vector<64x16xf32> -> vector<64x16xf32>
    %251 = arith.addf %243, %250 : vector<64x16xf32>
    %c10_211 = arith.constant 10 : index
    %c0_212 = arith.constant 0 : index
    %c0_213 = arith.constant 0 : index
    %252 = vector.load %arg5[%c10_211, %c0_212, %c0_213] : memref<16x64x16xbf16, #tpu.memory_space<vmem>>, vector<1x64x16xbf16>
    %253 = vector.shape_cast %252 : vector<1x64x16xbf16> to vector<64x16xbf16>
    %cst_214 = arith.constant dense<0.000000e+00> : vector<32x16xf32>
    %254 = tpu.matmul %170, %253, %cst_214 {dimension_numbers = #tpu.dot_dimension_numbers<[1], [0], [0], [1], [0, 0, 1, 1], [], []>} : vector<32x64xbf16>, vector<64x16xbf16>, vector<32x16xf32> -> vector<32x16xf32>
    %255 = arith.truncf %254 : vector<32x16xf32> to vector<32x16xbf16>
    %c10_215 = arith.constant 10 : index
    %c0_216 = arith.constant 0 : index
    %c0_217 = arith.constant 0 : index
    %256 = vector.load %arg6[%c10_215, %c0_216, %c0_217] : memref<16x64x32xbf16, #tpu.memory_space<vmem>>, vector<1x64x32xbf16>
    %257 = vector.shape_cast %256 : vector<1x64x32xbf16> to vector<64x32xbf16>
    %cst_218 = arith.constant dense<0.000000e+00> : vector<64x16xf32>
    %258 = tpu.matmul %257, %255, %cst_218 {dimension_numbers = #tpu.dot_dimension_numbers<[1], [0], [0], [1], [0, 0, 1, 1], [], []>} : vector<64x32xbf16>, vector<32x16xbf16>, vector<64x16xf32> -> vector<64x16xf32>
    %259 = arith.addf %251, %258 : vector<64x16xf32>
    %c11_219 = arith.constant 11 : index
    %c0_220 = arith.constant 0 : index
    %c0_221 = arith.constant 0 : index
    %260 = vector.load %arg5[%c11_219, %c0_220, %c0_221] : memref<16x64x16xbf16, #tpu.memory_space<vmem>>, vector<1x64x16xbf16>
    %261 = vector.shape_cast %260 : vector<1x64x16xbf16> to vector<64x16xbf16>
    %cst_222 = arith.constant dense<0.000000e+00> : vector<32x16xf32>
    %262 = tpu.matmul %170, %261, %cst_222 {dimension_numbers = #tpu.dot_dimension_numbers<[1], [0], [0], [1], [0, 0, 1, 1], [], []>} : vector<32x64xbf16>, vector<64x16xbf16>, vector<32x16xf32> -> vector<32x16xf32>
    %263 = arith.truncf %262 : vector<32x16xf32> to vector<32x16xbf16>
    %c11_223 = arith.constant 11 : index
    %c0_224 = arith.constant 0 : index
    %c0_225 = arith.constant 0 : index
    %264 = vector.load %arg6[%c11_223, %c0_224, %c0_225] : memref<16x64x32xbf16, #tpu.memory_space<vmem>>, vector<1x64x32xbf16>
    %265 = vector.shape_cast %264 : vector<1x64x32xbf16> to vector<64x32xbf16>
    %cst_226 = arith.constant dense<0.000000e+00> : vector<64x16xf32>
    %266 = tpu.matmul %265, %263, %cst_226 {dimension_numbers = #tpu.dot_dimension_numbers<[1], [0], [0], [1], [0, 0, 1, 1], [], []>} : vector<64x32xbf16>, vector<32x16xbf16>, vector<64x16xf32> -> vector<64x16xf32>
    %267 = arith.addf %259, %266 : vector<64x16xf32>
    %c12_227 = arith.constant 12 : index
    %c0_228 = arith.constant 0 : index
    %c0_229 = arith.constant 0 : index
    %268 = vector.load %arg5[%c12_227, %c0_228, %c0_229] : memref<16x64x16xbf16, #tpu.memory_space<vmem>>, vector<1x64x16xbf16>
    %269 = vector.shape_cast %268 : vector<1x64x16xbf16> to vector<64x16xbf16>
    %cst_230 = arith.constant dense<0.000000e+00> : vector<32x16xf32>
    %270 = tpu.matmul %170, %269, %cst_230 {dimension_numbers = #tpu.dot_dimension_numbers<[1], [0], [0], [1], [0, 0, 1, 1], [], []>} : vector<32x64xbf16>, vector<64x16xbf16>, vector<32x16xf32> -> vector<32x16xf32>
    %271 = arith.truncf %270 : vector<32x16xf32> to vector<32x16xbf16>
    %c12_231 = arith.constant 12 : index
    %c0_232 = arith.constant 0 : index
    %c0_233 = arith.constant 0 : index
    %272 = vector.load %arg6[%c12_231, %c0_232, %c0_233] : memref<16x64x32xbf16, #tpu.memory_space<vmem>>, vector<1x64x32xbf16>
    %273 = vector.shape_cast %272 : vector<1x64x32xbf16> to vector<64x32xbf16>
    %cst_234 = arith.constant dense<0.000000e+00> : vector<64x16xf32>
    %274 = tpu.matmul %273, %271, %cst_234 {dimension_numbers = #tpu.dot_dimension_numbers<[1], [0], [0], [1], [0, 0, 1, 1], [], []>} : vector<64x32xbf16>, vector<32x16xbf16>, vector<64x16xf32> -> vector<64x16xf32>
    %275 = arith.addf %267, %274 : vector<64x16xf32>
    %c13_235 = arith.constant 13 : index
    %c0_236 = arith.constant 0 : index
    %c0_237 = arith.constant 0 : index
    %276 = vector.load %arg5[%c13_235, %c0_236, %c0_237] : memref<16x64x16xbf16, #tpu.memory_space<vmem>>, vector<1x64x16xbf16>
    %277 = vector.shape_cast %276 : vector<1x64x16xbf16> to vector<64x16xbf16>
    %cst_238 = arith.constant dense<0.000000e+00> : vector<32x16xf32>
    %278 = tpu.matmul %170, %277, %cst_238 {dimension_numbers = #tpu.dot_dimension_numbers<[1], [0], [0], [1], [0, 0, 1, 1], [], []>} : vector<32x64xbf16>, vector<64x16xbf16>, vector<32x16xf32> -> vector<32x16xf32>
    %279 = arith.truncf %278 : vector<32x16xf32> to vector<32x16xbf16>
    %c13_239 = arith.constant 13 : index
    %c0_240 = arith.constant 0 : index
    %c0_241 = arith.constant 0 : index
    %280 = vector.load %arg6[%c13_239, %c0_240, %c0_241] : memref<16x64x32xbf16, #tpu.memory_space<vmem>>, vector<1x64x32xbf16>
    %281 = vector.shape_cast %280 : vector<1x64x32xbf16> to vector<64x32xbf16>
    %cst_242 = arith.constant dense<0.000000e+00> : vector<64x16xf32>
    %282 = tpu.matmul %281, %279, %cst_242 {dimension_numbers = #tpu.dot_dimension_numbers<[1], [0], [0], [1], [0, 0, 1, 1], [], []>} : vector<64x32xbf16>, vector<32x16xbf16>, vector<64x16xf32> -> vector<64x16xf32>
    %283 = arith.addf %275, %282 : vector<64x16xf32>
    %c14_243 = arith.constant 14 : index
    %c0_244 = arith.constant 0 : index
    %c0_245 = arith.constant 0 : index
    %284 = vector.load %arg5[%c14_243, %c0_244, %c0_245] : memref<16x64x16xbf16, #tpu.memory_space<vmem>>, vector<1x64x16xbf16>
    %285 = vector.shape_cast %284 : vector<1x64x16xbf16> to vector<64x16xbf16>
    %cst_246 = arith.constant dense<0.000000e+00> : vector<32x16xf32>
    %286 = tpu.matmul %170, %285, %cst_246 {dimension_numbers = #tpu.dot_dimension_numbers<[1], [0], [0], [1], [0, 0, 1, 1], [], []>} : vector<32x64xbf16>, vector<64x16xbf16>, vector<32x16xf32> -> vector<32x16xf32>
    %287 = arith.truncf %286 : vector<32x16xf32> to vector<32x16xbf16>
    %c14_247 = arith.constant 14 : index
    %c0_248 = arith.constant 0 : index
    %c0_249 = arith.constant 0 : index
    %288 = vector.load %arg6[%c14_247, %c0_248, %c0_249] : memref<16x64x32xbf16, #tpu.memory_space<vmem>>, vector<1x64x32xbf16>
    %289 = vector.shape_cast %288 : vector<1x64x32xbf16> to vector<64x32xbf16>
    %cst_250 = arith.constant dense<0.000000e+00> : vector<64x16xf32>
    %290 = tpu.matmul %289, %287, %cst_250 {dimension_numbers = #tpu.dot_dimension_numbers<[1], [0], [0], [1], [0, 0, 1, 1], [], []>} : vector<64x32xbf16>, vector<32x16xbf16>, vector<64x16xf32> -> vector<64x16xf32>
    %291 = arith.addf %283, %290 : vector<64x16xf32>
    %c15_251 = arith.constant 15 : index
    %c0_252 = arith.constant 0 : index
    %c0_253 = arith.constant 0 : index
    %292 = vector.load %arg5[%c15_251, %c0_252, %c0_253] : memref<16x64x16xbf16, #tpu.memory_space<vmem>>, vector<1x64x16xbf16>
    %293 = vector.shape_cast %292 : vector<1x64x16xbf16> to vector<64x16xbf16>
    %cst_254 = arith.constant dense<0.000000e+00> : vector<32x16xf32>
    %294 = tpu.matmul %170, %293, %cst_254 {dimension_numbers = #tpu.dot_dimension_numbers<[1], [0], [0], [1], [0, 0, 1, 1], [], []>} : vector<32x64xbf16>, vector<64x16xbf16>, vector<32x16xf32> -> vector<32x16xf32>
    %295 = arith.truncf %294 : vector<32x16xf32> to vector<32x16xbf16>
    %c15_255 = arith.constant 15 : index
    %c0_256 = arith.constant 0 : index
    %c0_257 = arith.constant 0 : index
    %296 = vector.load %arg6[%c15_255, %c0_256, %c0_257] : memref<16x64x32xbf16, #tpu.memory_space<vmem>>, vector<1x64x32xbf16>
    %297 = vector.shape_cast %296 : vector<1x64x32xbf16> to vector<64x32xbf16>
    %cst_258 = arith.constant dense<0.000000e+00> : vector<64x16xf32>
    %298 = tpu.matmul %297, %295, %cst_258 {dimension_numbers = #tpu.dot_dimension_numbers<[1], [0], [0], [1], [0, 0, 1, 1], [], []>} : vector<64x32xbf16>, vector<32x16xbf16>, vector<64x16xf32> -> vector<64x16xf32>
    %299 = arith.addf %291, %298 : vector<64x16xf32>
    %cst_259 = arith.constant dense<0.000000e+00> : vector<64xf32>
    %300 = vector.multi_reduction <add>, %299, %cst_259 [1] : vector<64x16xf32> to vector<64xf32>
    %301 = vector.shape_cast %300 : vector<64xf32> to vector<64x1xf32>
    %cst_260 = arith.constant 1.600000e+01 : f32
    %302 = vector.broadcast %cst_260 : f32 to vector<64x1xf32>
    %303 = arith.divf %301, %302 : vector<64x1xf32>
    %304 = vector.broadcast %303 : vector<64x1xf32> to vector<64x16xf32>
    %305 = arith.subf %299, %304 : vector<64x16xf32>
    %306 = arith.mulf %305, %305 : vector<64x16xf32>
    %cst_261 = arith.constant dense<0.000000e+00> : vector<64xf32>
    %307 = vector.multi_reduction <add>, %306, %cst_261 [1] : vector<64x16xf32> to vector<64xf32>
    %308 = vector.shape_cast %307 : vector<64xf32> to vector<64x1xf32>
    %cst_262 = arith.constant 1.600000e+01 : f32
    %309 = vector.broadcast %cst_262 : f32 to vector<64x1xf32>
    %310 = arith.divf %308, %309 : vector<64x1xf32>
    %cst_263 = arith.constant 9.99999974E-6 : f32
    %311 = vector.broadcast %cst_263 : f32 to vector<64x1xf32>
    %312 = arith.addf %310, %311 : vector<64x1xf32>
    %313 = math.rsqrt %312 : vector<64x1xf32>
    %314 = vector.broadcast %313 : vector<64x1xf32> to vector<64x16xf32>
    %315 = arith.mulf %305, %314 : vector<64x16xf32>
    %cst_264 = arith.constant 0.000000e+00 : f32
    %316 = vector.broadcast %cst_264 : f32 to vector<64x16xf32>
    %317 = arith.maximumf %315, %316 : vector<64x16xf32>
    %c0_265 = arith.constant 0 : index
    %c0_266 = arith.constant 0 : index
    %318 = vector.load %arg7[%c0_265, %c0_266] : memref<64x16xf32, #tpu.memory_space<vmem>>, vector<64x16xf32>
    %319 = arith.mulf %317, %318 : vector<64x16xf32>
    %cst_267 = arith.constant dense<0.000000e+00> : vector<64xf32>
    %320 = vector.multi_reduction <add>, %319, %cst_267 [1] : vector<64x16xf32> to vector<64xf32>
    %321 = vector.shape_cast %320 : vector<64xf32> to vector<64x1xf32>
    %cst_268 = arith.constant dense<0.000000e+00> : vector<1xf32>
    %322 = vector.multi_reduction <add>, %321, %cst_268 [0] : vector<64x1xf32> to vector<1xf32>
    %323 = vector.shape_cast %322 : vector<1xf32> to vector<1x1xf32>
    %c0_269 = arith.constant 0 : index
    %c0_270 = arith.constant 0 : index
    %324 = vector.load %arg8[%c0_269, %c0_270] : memref<1x1xf32, #tpu.memory_space<vmem>>, vector<1x1xf32>
    %325 = arith.addf %323, %324 : vector<1x1xf32>
    %cst_271 = arith.constant 0.000000e+00 : f32
    %326 = vector.broadcast %cst_271 : f32 to vector<1x1x128xf32>
    %327 = vector.shape_cast %325 : vector<1x1xf32> to vector<1x1x1xf32>
    %328 = vector.broadcast %327 : vector<1x1x1xf32> to vector<1x1x128xf32>
    %329 = arith.addf %326, %328 : vector<1x1x128xf32>
    %c0_272 = arith.constant 0 : index
    %c0_273 = arith.constant 0 : index
    %c0_274 = arith.constant 0 : index
    %330 = vector.load %arg9[%c0_272, %c0_273, %c0_274] : memref<1x1x128xf32, #tpu.memory_space<vmem>>, vector<1x1x128xf32>
    tpu.vector_store %arg9[%c0_272, %c0_273, %c0_274], %329 {strides = array<i32>} : memref<1x1x128xf32, #tpu.memory_space<vmem>>, vector<1x1x128xf32>,
    return
  }
  func.func @transform_0(%arg0: i32) -> (i32, i32, i32) {
    %c0_i32 = arith.constant 0 : i32
    %c0_i32_0 = arith.constant 0 : i32
    %c0_i32_1 = arith.constant 0 : i32
    return %arg0, %c0_i32, %c0_i32_0 : i32, i32, i32
  }
  func.func @transform_1(%arg0: i32) -> (i32, i32) {
    %c0_i32 = arith.constant 0 : i32
    %c0_i32_0 = arith.constant 0 : i32
    %c0_i32_1 = arith.constant 0 : i32
    return %c0_i32, %c0_i32_0 : i32, i32
  }
  func.func @transform_2(%arg0: i32) -> (i32, i32, i32) {
    %c0_i32 = arith.constant 0 : i32
    %c0_i32_0 = arith.constant 0 : i32
    %c0_i32_1 = arith.constant 0 : i32
    %c0_i32_2 = arith.constant 0 : i32
    return %c0_i32, %c0_i32_0, %c0_i32_1 : i32, i32, i32
  }
  func.func @transform_3(%arg0: i32) -> (i32, i32, i32) {
    %c0_i32 = arith.constant 0 : i32
    %c0_i32_0 = arith.constant 0 : i32
    %c0_i32_1 = arith.constant 0 : i32
    %c0_i32_2 = arith.constant 0 : i32
    return %c0_i32, %c0_i32_0, %c0_i32_1 : i32, i32, i32
  }
  func.func @transform_4(%arg0: i32) -> (i32, i32, i32) {
    %c0_i32 = arith.constant 0 : i32
    %c0_i32_0 = arith.constant 0 : i32
    %c0_i32_1 = arith.constant 0 : i32
    %c0_i32_2 = arith.constant 0 : i32
    return %c0_i32, %c0_i32_0, %c0_i32_1 : i32, i32, i32
  }
  func.func @transform_5(%arg0: i32) -> (i32, i32, i32) {
    %c0_i32 = arith.constant 0 : i32
    %c0_i32_0 = arith.constant 0 : i32
    %c0_i32_1 = arith.constant 0 : i32
    %c0_i32_2 = arith.constant 0 : i32
    return %c0_i32, %c0_i32_0, %c0_i32_1 : i32, i32, i32
  }
  func.func @transform_6(%arg0: i32) -> (i32, i32) {
    %c0_i32 = arith.constant 0 : i32
    %c0_i32_0 = arith.constant 0 : i32
    %c0_i32_1 = arith.constant 0 : i32
    return %c0_i32, %c0_i32_0 : i32, i32
  }
  func.func @transform_7(%arg0: i32) -> (i32, i32) {
    %c0_i32 = arith.constant 0 : i32
    %c0_i32_0 = arith.constant 0 : i32
    %c0_i32_1 = arith.constant 0 : i32
    return %c0_i32, %c0_i32_0 : i32, i32
  }
  func.func @transform_8(%arg0: i32) -> (i32, i32, i32) {
    %c0_i32 = arith.constant 0 : i32
    %c0_i32_0 = arith.constant 0 : i32
    %c0_i32_1 = arith.constant 0 : i32
    return %arg0, %c0_i32, %c0_i32_0 : i32, i32, i32
  }
}

</mosaic_0001>

<bundles_post_ra>
// kernel: discriminator_forward.2
= control target key start
LH: loop header
LB: loop body
LE: loop exit
PB: predicated region body
PF: predicated region fallthrough
CT: control target
= control target key end

     0   :  { %s677_s12 = smov 0   ;;  %s739_s0 = inlined_call_operand.vmem [shape: bf16[2,48,1024], index: 0, kind: input, shape index: {}]   ;;  %s740_s1 = inlined_call_operand.vmem [shape: bf16[8,48], index: 1, kind: input, shape index: {}]   ;;  %s741_s2 = inlined_call_operand.vmem [shape: f32[8,1], index: 2, kind: input, shape index: {}]   ;;  %s742_s3 = inlined_call_operand.vmem [shape: bf16[2,8,1024], index: 3, kind: output, shape index: {}]  }
   0x1 LB: > { %s590_s13 = sadd.s32 4294967295, %s654_s12   ;;  %p594_p0 = scmp.ge.s32.totalorder %s654_s12, 1  ;;  %s654_s12 = sphi %s677_s12, %s13_s12  }
   0x2   : > { %p137_p1 = scmp.lt.s32.totalorder %s654_s12, 3 }
   0x4   : > { %p138_p2 = pnand %p594_p0, %p137_p1 }
   0x5   : > { %p161_p3 = scmp.lt.s32.totalorder (!%p138_p2), %s590_s13, 1  ;;  %v197_v0 = vld [vmem:[%s741_s2] sm:$0xff] (!%p138_p2)  ;;  %v656_v1 = vmov (!%p138_p2), 0   ;;  %vm323_vm0 = vcmask (!%p138_p2), 392192  }
   0x6   : > { %141 = sbr.rel (%p138_p2) target bundleno = 265 (0x109), region = 32  ;;  %359 = vmatprep.mubr.bf16.mxu0 (!%p138_p2), %v656_v1  ;;  %400 = vmatprep.mubr.bf16.mxu1 (!%p138_p2), %v656_v1  ;;  %v172_v36 = vld [vmem:[%s740_s1] sm:$0xf] (!%p138_p2) }
   0x7   : > { %647 = vset.pattern.permute.xlu0 (!%p138_p2), %v656_v1 }
   0x8   : > { %200 = vperm.xlu0 (!%p138_p2), %647, %v197_v0  }
   0xd   : > { %s744_s13 = smov (!%p161_p3, %s590_s13), 1 }
   0xe   : > { %s637_s16 = smul.u32 192, %s744_s13  ;;  %s632_s22 = sshll.u32 %s744_s13, 5 }
   0xf   : > { %s170_s25 = scalar_lea.vmem %s742_s3, %s632_s22 }
  0x10   : > { %s697_s19 = scalar_lea.vmem %s739_s0, %s637_s16 }
  0x11   : > { %v173_v2 = vld [vmem:[%s697_s19] sm:$0xff]  ;;  %v174_v4 = vld [vmem:[%s697_s19 + $0x8] sm:$0xff]  ;;  %v175_v24 = vld [vmem:[%s697_s19 + $0x10] sm:$0xff] }
  0x12   : > { %v177_v3 = vld [vmem:[%s697_s19 + $0x20] sm:$0xff]  ;;  %v178_v6 = vld [vmem:[%s697_s19 + $0x28] sm:$0xff]  ;;  %v179_v25 = vld [vmem:[%s697_s19 + $0x30] sm:$0xff] }
  0x13   : > { %v599_v5 = vcombine.high %v173_v2, %v177_v3  ;;  %v598_v7 = vcombine.low %v173_v2, %v177_v3  ;;  %v181_v8 = vld [vmem:[%s697_s19 + $0x40] sm:$0xff]  ;;  %v601_v10 = vcombine.high %v174_v4, %v178_v6  ;;  %v600_v11 = vcombine.low %v174_v4, %v178_v6  ;;  %v182_v13 = vld [vmem:[%s697_s19 + $0x48] sm:$0xff]  ;;  %v176_v26 = vld [vmem:[%s697_s19 + $0x18] sm:$0xff] }
  0x14   : > { %v185_v9 = vld [vmem:[%s697_s19 + $0x60] sm:$0xff]  ;;  %v186_v14 = vld [vmem:[%s697_s19 + $0x68] sm:$0xff]  ;;  %v180_v27 = vld [vmem:[%s697_s19 + $0x38] sm:$0xff]  ;;  %v603_v30 = vcombine.high %v175_v24, %v179_v25  ;;  %v602_v37 = vcombine.low %v175_v24, %v179_v25 }
  0x15   : > { %v607_v12 = vcombine.high %v181_v8, %v185_v9  ;;  %v189_v15 = vld [vmem:[%s697_s19 + $0x80] sm:$0xff]  ;;  %327 = vmatprep.subr.bf16.mxu0 %v599_v5  ;;  %v609_v16 = vcombine.high %v182_v13, %v186_v14  ;;  %v190_v18 = vld [vmem:[%s697_s19 + $0x88] sm:$0xff]  ;;  %368 = vmatprep.subr.bf16.mxu1 %v601_v10  ;;  %v606_v20 = vcombine.low %v181_v8, %v185_v9  ;;  %v183_v32 = vld [vmem:[%s697_s19 + $0x50] sm:$0xff] }
  0x16   : > { %v193_v17 = vld [vmem:[%s697_s19 + $0xa0] sm:$0xff]  ;;  %v194_v19 = vld [vmem:[%s697_s19 + $0xa8] sm:$0xff]  ;;  %328 = vmatpush1.bf16.msra.mxu0 %v598_v7  ;;  %369 = vmatpush1.bf16.msra.mxu1 %v600_v11  ;;  %v608_v21 = vcombine.low %v182_v13, %v186_v14  ;;  %v605_v31 = vcombine.high %v176_v26, %v180_v27  ;;  %v187_v33 = vld [vmem:[%s697_s19 + $0x70] sm:$0xff]  ;;  %v604_v38 = vcombine.low %v176_v26, %v180_v27 }
  0x17   : > { %329 = vmatprep.subr.bf16.mxu0 %v607_v12  ;;  %v615_v22 = vcombine.high %v189_v15, %v193_v17  ;;  %370 = vmatprep.subr.bf16.mxu1 %v609_v16  ;;  %v617_v23 = vcombine.high %v190_v18, %v194_v19  ;;  %v614_v28 = vcombine.low %v189_v15, %v193_v17  ;;  %v184_v34 = vld [vmem:[%s697_s19 + $0x58] sm:$0xff]  ;;  %v191_v41 = vld [vmem:[%s697_s19 + $0x90] sm:$0xff] }
  0x18   : > { %v616_v29 = vcombine.low %v190_v18, %v194_v19  ;;  %v188_v35 = vld [vmem:[%s697_s19 + $0x78] sm:$0xff]  ;;  %v611_v39 = vcombine.high %v183_v32, %v187_v33  ;;  %v195_v42 = vld [vmem:[%s697_s19 + $0xb0] sm:$0xff]  ;;  %v610_v45 = vcombine.low %v183_v32, %v187_v33 }
  0x19   : > { %v613_v40 = vcombine.high %v184_v34, %v188_v35  ;;  %v192_v43 = vld [vmem:[%s697_s19 + $0x98] sm:$0xff]  ;;  %v612_v46 = vcombine.low %v184_v34, %v188_v35  ;;  %v619_v47 = vcombine.high %v191_v41, %v195_v42  ;;  %v618_v49 = vcombine.low %v191_v41, %v195_v42 }
  0x1a   : > { %330 = vmatpush1.bf16.msra.mxu0 %v606_v20  ;;  %371 = vmatpush1.bf16.msra.mxu1 %v608_v21  ;;  %v196_v44 = vld [vmem:[%s697_s19 + $0xb8] sm:$0xff] }
  0x1b   : > { %331 = vmatprep.subr.bf16.mxu0 %v615_v22  ;;  %372 = vmatprep.subr.bf16.mxu1 %v617_v23  ;;  %v621_v48 = vcombine.high %v192_v43, %v196_v44  ;;  %v620_v50 = vcombine.low %v192_v43, %v196_v44 }
  0x1e   : > { %332 = vmatpush1.bf16.msra.mxu0 %v614_v28  ;;  %373 = vmatpush1.bf16.msra.mxu1 %v616_v29 }
  0x1f   : > { %409 = vmatprep.subr.bf16.mxu0 %v603_v30  ;;  %450 = vmatprep.subr.bf16.mxu1 %v605_v31 }
  0x21   : > { %622 = vmatmul.mubr.msk.bf16.vlgmr.msra.gmra.mrb[0].mxu0 %vm323_vm0, %v172_v36  ;;  %623 = vmatmul.mubr.msk.bf16.vlgmr.msra.gmra.mrb[0].mxu1 %vm323_vm0, %v172_v36 }
  0x22   : > { %410 = vmatpush1.bf16.msra.mxu0 %v602_v37  ;;  %451 = vmatpush1.bf16.msra.mxu1 %v604_v38 }
  0x23   : > { %411 = vmatprep.subr.bf16.mxu0 %v611_v39  ;;  %452 = vmatprep.subr.bf16.mxu1 %v613_v40 }
  0x24   : > { %441 = vmatprep.mubr.bf16.mxu0 %v656_v1  ;;  %482 = vmatprep.mubr.bf16.mxu1 %v656_v1 }
  0x26   : > { %412 = vmatpush1.bf16.msra.mxu0 %v610_v45  ;;  %453 = vmatpush1.bf16.msra.mxu1 %v612_v46 }
  0x27   : > { %413 = vmatprep.subr.bf16.mxu0 %v619_v47  ;;  %454 = vmatprep.subr.bf16.mxu1 %v621_v48 }
  0x2a   : > { %414 = vmatpush1.bf16.msra.mxu0 %v618_v49  ;;  %455 = vmatpush1.bf16.msra.mxu1 %v620_v50 }
  0x2d   : > { %624 = vmatmul.mubr.msk.bf16.vlgmr.msra.gmra.mrb[4].mxu0 %vm323_vm0, %v172_v36  ;;  %625 = vmatmul.mubr.msk.bf16.vlgmr.msra.gmra.mrb[4].mxu1 %vm323_vm0, %v172_v36 }
  0x87   : > { %v201_v51 = vpop.permute.xlu0 %200 }
  0xf4   : > { %v361_v52 = vpop.f32.mrb[0].mxu0  ;;  %v402_v53 = vpop.f32.mrb[0].mxu1 }
  0xf5   : > { %v362_v54 = vadd.f32 %v361_v52, %v201_v51  ;;  %v363_v55 = vpop.f32.mrb[1].mxu0  ;;  %v403_v57 = vadd.f32 %v402_v53, %v201_v51  ;;  %v404_v58 = vpop.f32.mrb[1].mxu1 }
  0xf6   : > { %v364_v56 = vadd.f32 %v363_v55, %v201_v51  ;;  %v365_v59 = vpop.f32.mrb[2].mxu0  ;;  %v405_v61 = vadd.f32 %v404_v58, %v201_v51  ;;  %v406_v62 = vpop.f32.mrb[2].mxu1 }
  0xf7   : > { %v491_v60 = vmax.f32 %v362_v54, 0.0  ;;  %v366_v63 = vpop.f32.mrb[3].mxu0  ;;  %v493_v1 = vmax.f32 %v403_v57, 0.0  ;;  %v407_v2 = vpop.f32.mrb[3].mxu1 }
  0xf8   : > { %v492_v0 = vmax.f32 %v364_v56, 0.0  ;;  %v494_v3 = vmax.f32 %v405_v61, 0.0 }
  0xfa   : > { %v633_v4 = vpack.c.bf16 %v492_v0, %v491_v60  ;;  %v634_v5 = vpack.c.bf16 %v494_v3, %v493_v1 }
  0xfc   : > { %531 = vst [vmem:[%s170_s25] sm:$0xff] %v633_v4  ;;  %532 = vst [vmem:[%s170_s25 + $0x8] sm:$0xff] %v634_v5 }
 0x100   : > { %v443_v6 = vpop.f32.mrb[4].mxu0  ;;  %v484_v8 = vpop.f32.mrb[4].mxu1 }
 0x101   : > { %v444_v7 = vadd.f32 %v443_v6, %v201_v51  ;;  %v445_v9 = vpop.f32.mrb[5].mxu0  ;;  %v485_v10 = vadd.f32 %v484_v8, %v201_v51  ;;  %v486_v12 = vpop.f32.mrb[5].mxu1 }
 0x102   : > { %v446_v11 = vadd.f32 %v445_v9, %v201_v51  ;;  %v447_v13 = vpop.f32.mrb[6].mxu0  ;;  %v487_v15 = vadd.f32 %v486_v12, %v201_v51  ;;  %v488_v16 = vpop.f32.mrb[6].mxu1 }
 0x103   : > { %v495_v14 = vmax.f32 %v444_v7, 0.0  ;;  %v448_v17 = vpop.f32.mrb[7].mxu0  ;;  %v497_v18 = vmax.f32 %v485_v10, 0.0  ;;  %v489_v20 = vpop.f32.mrb[7].mxu1 }
 0x104   : > { %v496_v19 = vmax.f32 %v446_v11, 0.0  ;;  %v498_v21 = vmax.f32 %v487_v15, 0.0 }
 0x106   : > { %v635_v22 = vpack.c.bf16 %v496_v19, %v495_v14  ;;  %v636_v23 = vpack.c.bf16 %v498_v21, %v497_v18 }
 0x108   : > { %533 = vst [vmem:[%s170_s25 + $0x10] sm:$0xff] %v635_v22  ;;  %534 = vst [vmem:[%s170_s25 + $0x18] sm:$0xff] %v636_v23 }
 0x109 PF: > { %s13_s12 = sadd.s32 1, %s654_s12  }
 0x10a   : > { %p10_p4 = scmp.ge.s32.totalorder %s13_s12, 4  }
 0x10c   :  { %12 = sbr.rel (!%p10_p4) target bundleno = 1 (0x1), region = 62 }

// kernel: discriminator_forward.3
= control target key start
LH: loop header
LB: loop body
LE: loop exit
PB: predicated region body
PF: predicated region fallthrough
CT: control target
= control target key end

     0   :  { %s10984_s29 = smov 0   ;;  %s12619_s0 = inlined_call_operand.vmem [shape: bf16[2,128,256], index: 0, kind: input, shape index: {}]   ;;  %s12620_s1 = inlined_call_operand.vmem [shape: bf16[16,128], index: 1, kind: input, shape index: {}]   ;;  %s12621_s2 = inlined_call_operand.vmem [shape: bf16[16,256,64], index: 2, kind: input, shape index: {}]   ;;  %s12622_s3 = inlined_call_operand.vmem [shape: bf16[16,32,16], index: 3, kind: input, shape index: {}]   ;;  %s12623_s4 = inlined_call_operand.vmem [shape: bf16[16,64,16], index: 4, kind: input, shape index: {}]   ;;  %s12624_s5 = inlined_call_operand.vmem [shape: bf16[16,64,32], index: 5, kind: input, shape index: {}]   ;;  %s12625_s6 = inlined_call_operand.vmem [shape: f32[64,16], index: 6, kind: input, shape index: {}]   ;;  %s12626_s7 = inlined_call_operand.<no memory space> [shape: f32[1,1], index: 7, kind: input, shape index: {}]   ;;  %s12627_s8 = inlined_call_operand.vmem [shape: f32[2,1,128], index: 8, kind: output, shape index: {}]  }
   0x1   :  { %v13_v0 = vstv %s12626_s7 }
   0x2   :  { %14 = vst [vmem:[#allocation2] sm:$0x1] %v13_v0 }
   0x3 LB: > { %s7845_s30 = sadd.s32 4294967295, %s10933_s29   ;;  %p7849_p0 = scmp.ge.s32.totalorder %s10933_s29, 1  ;;  %s10933_s29 = sphi %s10984_s29, %s20_s29  }
   0x4   : > { %p264_p1 = scmp.lt.s32.totalorder %s10933_s29, 3 }
   0x6   : > { %p265_p2 = pnand %p7849_p0, %p264_p1 }
   0x7   : > { %p296_p3 = scmp.lt.s32.totalorder (!%p265_p2), %s7845_s30, 1  ;;  %v10935_v1 = vmov (!%p265_p2), 0   ;;  %v10482_v18 = vld [vmem:[%s12620_s1] sm:$0xff] (!%p265_p2)   ;;  %v10487_v29 = vld [vmem:[%s12621_s2 + $0xc8] sm:$0xff] (!%p265_p2)   ;;  %v10491_v47 = vld [vmem:[%s12621_s2 + $0xd0] sm:$0xff] (!%p265_p2)   ;;  %vm851_vm0 = vcmask (!%p265_p2), 130048  }
   0x8   : > { %268 = sbr.rel (%p265_p2) target bundleno = 4272 (0x10b0), region = 52  ;;  %441 = vmatprep.mubr.bf16.mxu0 (!%p265_p2), %v10935_v1  ;;  %10457 = vset.pattern.permute.xlu0 (!%p265_p2), %v10935_v1  ;;  %v10483_v25 = vld [vmem:[%s12621_s2 + $0xc0] sm:$0xff] (!%p265_p2)   ;;  %v10488_v30 = vld [vmem:[%s12621_s2 + $0x48] sm:$0xff] (!%p265_p2)   ;;  %v10492_v48 = vld [vmem:[%s12621_s2 + $0x50] sm:$0xff] (!%p265_p2)   ;;  %vm4402_vm1 = vcmask (!%p265_p2), 523264   ;;  %vm4672_vm2 = vcmask (!%p265_p2), 261120  }
   0x9   : > { %v10484_v26 = vld [vmem:[%s12621_s2 + $0x40] sm:$0xff] (!%p265_p2)   ;;  %v10489_v31 = vld [vmem:[%s12621_s2 + $0x88] sm:$0xff] (!%p265_p2)   ;;  %v10493_v49 = vld [vmem:[%s12621_s2 + $0x90] sm:$0xff] (!%p265_p2)  }
   0xa   : > { %v10485_v27 = vld [vmem:[%s12621_s2 + $0x80] sm:$0xff] (!%p265_p2)   ;;  %9196 = vmatprep.subr.bf16.mxu1 (!%p265_p2), %v10484_v26  ;;  %v10490_v32 = vld [vmem:[%s12621_s2 + $0x8] sm:$0xff] (!%p265_p2)   ;;  %v10494_v50 = vld [vmem:[%s12621_s2 + $0x10] sm:$0xff] (!%p265_p2)  }
   0xb   : > { %v10486_v28 = vld [vmem:[%s12621_s2] sm:$0xff] (!%p265_p2)   ;;  %v10495_v51 = vld [vmem:[%s12621_s2 + $0xd8] sm:$0xff] (!%p265_p2)   ;;  %v10503_v59 = vld [vmem:[%s12621_s2 + $0xe8] sm:$0xff] (!%p265_p2)  }
   0xc   : > { %9197 = vmatpush3.bf16.msra.mxu1 (!%p265_p2), %v10486_v28  ;;  %v10496_v52 = vld [vmem:[%s12621_s2 + $0x58] sm:$0xff] (!%p265_p2)   ;;  %v10499_v55 = vld [vmem:[%s12621_s2 + $0xe0] sm:$0xff] (!%p265_p2)   ;;  %v10504_v60 = vld [vmem:[%s12621_s2 + $0x68] sm:$0xff] (!%p265_p2)  }
   0xd   : > { %9198 = vmatprep.subr.bf16.mxu1 (!%p265_p2), %v10488_v30  ;;  %v10497_v53 = vld [vmem:[%s12621_s2 + $0x98] sm:$0xff] (!%p265_p2)   ;;  %v10500_v56 = vld [vmem:[%s12621_s2 + $0x60] sm:$0xff] (!%p265_p2)   ;;  %v10505_v61 = vld [vmem:[%s12621_s2 + $0xa8] sm:$0xff] (!%p265_p2)  }
   0xe   : > { %v10498_v54 = vld [vmem:[%s12621_s2 + $0x18] sm:$0xff] (!%p265_p2)   ;;  %v10501_v57 = vld [vmem:[%s12621_s2 + $0xa0] sm:$0xff] (!%p265_p2)   ;;  %v10506_v62 = vld [vmem:[%s12621_s2 + $0x28] sm:$0xff] (!%p265_p2)  }
   0xf   : > { %s12629_s30 = smov (!%p296_p3, %s7845_s30), 1  ;;  %v10502_v58 = vld [vmem:[%s12621_s2 + $0x20] sm:$0xff]   ;;  %v10507_v63 = vld [vmem:[%s12621_s2 + $0xf0] sm:$0xff]   ;;  %v10518_v28 = vld [vmem:[%s12621_s2 + $0x188] sm:$0xff]  }
  0x10   : > { %s9195_s7 = sshll.u32 %s12629_s30, 7  ;;  %9199 = vmatpush3.bf16.msra.mxu1 %v10490_v32  ;;  %v10508_v0 = vld [vmem:[%s12621_s2 + $0x70] sm:$0xff]   ;;  %v10516_v26 = vld [vmem:[%s12621_s2 + $0x180] sm:$0xff]   ;;  %v10522_v32 = vld [vmem:[%s12621_s2 + $0x198] sm:$0xff]   ;;  %s303_s24 = scalar_lea.vmem %s12627_s8, %s12629_s30 }
  0x11   : > { %s300_s11 = scalar_lea.vmem %s12619_s0, %s9195_s7  ;;  %9200 = vmatprep.subr.bf16.mxu1 %v10492_v48  ;;  %v10509_v1 = vld [vmem:[%s12621_s2 + $0xb0] sm:$0xff]   ;;  %v10538_v48 = vld [vmem:[%s12621_s2 + $0x218] sm:$0xff]  }
  0x12   : > { %v10458_v2 = vld [vmem:[%s300_s11 + $0x4] ss:$8 sps:$4 sm:$0xff]   ;;  %v10460_v3 = vld [vmem:[%s300_s11] ss:$8 sps:$4 sm:$0xff]   ;;  %v10461_v4 = vld [vmem:[%s300_s11 + $0x14] ss:$8 sps:$4 sm:$0xff]  }
  0x13   : > { %409 = vmatprep.subr.bf16.mxu0 %v10458_v2  ;;  %v10463_v5 = vld [vmem:[%s300_s11 + $0x10] ss:$8 sps:$4 sm:$0xff]   ;;  %v10464_v6 = vld [vmem:[%s300_s11 + $0x24] ss:$8 sps:$4 sm:$0xff]   ;;  %v10466_v7 = vld [vmem:[%s300_s11 + $0x20] ss:$8 sps:$4 sm:$0xff]  }
  0x14   : > { %410 = vmatpush1.bf16.msra.mxu0 %v10460_v3  ;;  %v10467_v8 = vld [vmem:[%s300_s11 + $0x34] ss:$8 sps:$4 sm:$0xff]   ;;  %v10469_v9 = vld [vmem:[%s300_s11 + $0x30] ss:$8 sps:$4 sm:$0xff]   ;;  %v10470_v10 = vld [vmem:[%s300_s11 + $0x44] ss:$8 sps:$4 sm:$0xff]   ;;  %9201 = vmatpush3.bf16.msra.mxu1 %v10494_v50 }
  0x15   : > { %411 = vmatprep.subr.bf16.mxu0 %v10461_v4  ;;  %v10472_v11 = vld [vmem:[%s300_s11 + $0x40] ss:$8 sps:$4 sm:$0xff]   ;;  %v10473_v12 = vld [vmem:[%s300_s11 + $0x54] ss:$8 sps:$4 sm:$0xff]   ;;  %v10475_v13 = vld [vmem:[%s300_s11 + $0x50] ss:$8 sps:$4 sm:$0xff]   ;;  %9202 = vmatprep.subr.bf16.mxu1 %v10496_v52 }
  0x16   : > { %v10476_v14 = vld [vmem:[%s300_s11 + $0x64] ss:$8 sps:$4 sm:$0xff]   ;;  %v10478_v15 = vld [vmem:[%s300_s11 + $0x60] ss:$8 sps:$4 sm:$0xff]   ;;  %v10479_v16 = vld [vmem:[%s300_s11 + $0x74] ss:$8 sps:$4 sm:$0xff]  }
  0x17   : > { %v10481_v17 = vld [vmem:[%s300_s11 + $0x70] ss:$8 sps:$4 sm:$0xff]   ;;  %v10540_v50 = vld [vmem:[%s12621_s2 + $0x220] sm:$0xff]   ;;  %v10542_v52 = vld [vmem:[%s12621_s2 + $0x228] sm:$0xff]  }
  0x18   : > { %412 = vmatpush1.bf16.msra.mxu0 %v10463_v5  ;;  %9203 = vmatpush3.bf16.msra.mxu1 %v10498_v54  ;;  %v10510_v2 = vld [vmem:[%s12621_s2 + $0x30] sm:$0xff]   ;;  %v10511_v3 = vld [vmem:[%s12621_s2 + $0xf8] sm:$0xff]  }
  0x19   : > { %413 = vmatprep.subr.bf16.mxu0 %v10464_v6  ;;  %9204 = vmatprep.subr.bf16.mxu1 %v10500_v56  ;;  %v10512_v4 = vld [vmem:[%s12621_s2 + $0x78] sm:$0xff]   ;;  %v10520_v30 = vld [vmem:[%s12621_s2 + $0x190] sm:$0xff]  }
  0x1a   : > { %v10513_v5 = vld [vmem:[%s12621_s2 + $0xb8] sm:$0xff]   ;;  %v10544_v54 = vld [vmem:[%s12621_s2 + $0x230] sm:$0xff]  }
  0x1b   : > { %v10514_v6 = vld [vmem:[%s12621_s2 + $0x38] sm:$0xff]  }
  0x1c   : > { %414 = vmatpush1.bf16.msra.mxu0 %v10466_v7  ;;  %9205 = vmatpush3.bf16.msra.mxu1 %v10502_v58  ;;  %v10515_v7 = vld [vmem:[%s12621_s2 + $0x1c0] sm:$0xff]   ;;  %v10546_v56 = vld [vmem:[%s12621_s2 + $0x238] sm:$0xff]  }
  0x1d   : > { %415 = vmatprep.subr.bf16.mxu0 %v10467_v8  ;;  %9206 = vmatprep.subr.bf16.mxu1 %v10504_v60  ;;  %v10548_v58 = vld [vmem:[%s12621_s2 + $0x300] sm:$0xff]   ;;  %v10550_v60 = vld [vmem:[%s12621_s2 + $0x308] sm:$0xff]  }
  0x20   : > { %416 = vmatpush1.bf16.msra.mxu0 %v10469_v9  ;;  %9207 = vmatpush3.bf16.msra.mxu1 %v10506_v62  ;;  %v10552_v62 = vld [vmem:[%s12621_s2 + $0x310] sm:$0xff]  }
  0x21   : > { %417 = vmatprep.subr.bf16.mxu0 %v10470_v10  ;;  %9208 = vmatprep.subr.bf16.mxu1 %v10508_v0  ;;  %v10554_v0 = vld [vmem:[%s12621_s2 + $0x318] sm:$0xff]  }
  0x24   : > { %418 = vmatpush1.bf16.msra.mxu0 %v10472_v11  ;;  %9209 = vmatpush3.bf16.msra.mxu1 %v10510_v2  ;;  %v10556_v2 = vld [vmem:[%s12621_s2 + $0x320] sm:$0xff]  }
  0x25   : > { %419 = vmatprep.subr.bf16.mxu0 %v10473_v12  ;;  %9210 = vmatprep.subr.bf16.mxu1 %v10512_v4  ;;  %v10558_v4 = vld [vmem:[%s12621_s2 + $0x328] sm:$0xff]  }
  0x28   : > { %420 = vmatpush1.bf16.msra.mxu0 %v10475_v13  ;;  %9211 = vmatpush3.bf16.msra.mxu1 %v10514_v6  ;;  %v10560_v6 = vld [vmem:[%s12621_s2 + $0x330] sm:$0xff]  }
  0x29   : > { %421 = vmatprep.subr.bf16.mxu0 %v10476_v14 }
  0x2c   : > { %422 = vmatpush1.bf16.msra.mxu0 %v10478_v15 }
  0x2d   : > { %423 = vmatprep.subr.bf16.mxu0 %v10479_v16 }
  0x30   : > { %424 = vmatpush1.bf16.msra.mxu0 %v10481_v17 }
  0x31   : > { %9218 = vmatprep.subr.bf16.mxu0 %v10483_v25 }
  0x33   : > { %442 = vmatmul.mubr.bf16.vlgmr.msra.gmra.mrb[0].mxu0 %v10482_v18 }
  0x34   : > { %9219 = vmatpush3.bf16.msra.mxu0 %v10485_v27  ;;  %v10517_v27 = vld [vmem:[%s12621_s2 + $0x1c8] sm:$0xff]  }
  0x35   : > { %9220 = vmatprep.subr.bf16.mxu0 %v10487_v29  ;;  %v10519_v29 = vld [vmem:[%s12621_s2 + $0x1d0] sm:$0xff]  }
  0x38   : > { %9221 = vmatpush3.bf16.msra.mxu0 %v10489_v31  ;;  %v10521_v31 = vld [vmem:[%s12621_s2 + $0x1d8] sm:$0xff]  }
  0x39   : > { %9222 = vmatprep.subr.bf16.mxu0 %v10491_v47  ;;  %v10537_v47 = vld [vmem:[%s12621_s2 + $0x258] sm:$0xff]  }
  0x3c   : > { %9223 = vmatpush3.bf16.msra.mxu0 %v10493_v49  ;;  %v10539_v49 = vld [vmem:[%s12621_s2 + $0x260] sm:$0xff]  }
  0x3d   : > { %9224 = vmatprep.subr.bf16.mxu0 %v10495_v51  ;;  %v10541_v51 = vld [vmem:[%s12621_s2 + $0x268] sm:$0xff]  }
  0x40   : > { %9225 = vmatpush3.bf16.msra.mxu0 %v10497_v53  ;;  %v10543_v53 = vld [vmem:[%s12621_s2 + $0x270] sm:$0xff]  }
  0x41   : > { %9226 = vmatprep.subr.bf16.mxu0 %v10499_v55  ;;  %v10545_v55 = vld [vmem:[%s12621_s2 + $0x278] sm:$0xff]  }
  0x44   : > { %9227 = vmatpush3.bf16.msra.mxu0 %v10501_v57  ;;  %v10547_v57 = vld [vmem:[%s12621_s2 + $0x340] sm:$0xff]  }
  0x45   : > { %9228 = vmatprep.subr.bf16.mxu0 %v10503_v59  ;;  %v10549_v59 = vld [vmem:[%s12621_s2 + $0x348] sm:$0xff]  }
  0x48   : > { %9229 = vmatpush3.bf16.msra.mxu0 %v10505_v61  ;;  %v10551_v61 = vld [vmem:[%s12621_s2 + $0x350] sm:$0xff]  }
  0x49   : > { %9230 = vmatprep.subr.bf16.mxu0 %v10507_v63  ;;  %v10553_v63 = vld [vmem:[%s12621_s2 + $0x358] sm:$0xff]  }
  0x4c   : > { %9231 = vmatpush3.bf16.msra.mxu0 %v10509_v1  ;;  %v10555_v1 = vld [vmem:[%s12621_s2 + $0x360] sm:$0xff]  }
  0x4d   : > { %9232 = vmatprep.subr.bf16.mxu0 %v10511_v3  ;;  %v10557_v3 = vld [vmem:[%s12621_s2 + $0x368] sm:$0xff]  }
  0x50   : > { %9233 = vmatpush3.bf16.msra.mxu0 %v10513_v5  ;;  %v10559_v5 = vld [vmem:[%s12621_s2 + $0x370] sm:$0xff]  }
  0x51   : > { %9271 = vmatprep.subr.bf16.mxu0 %v10515_v7  ;;  %v10561_v7 = vld [vmem:[%s12621_s2 + $0x378] sm:$0xff]  }
 0x106   : > { %v443_v19 = vpop.f32.mrb[0].mxu0 }
 0x107   : > { %v445_v20 = vpop.f32.mrb[1].mxu0 }
 0x108   : > { %v447_v21 = vpop.f32.mrb[2].mxu0  ;;  %v452_v22 = vadd.f32 %v445_v20, %v443_v19 }
 0x109   : > { %v449_v23 = vpop.f32.mrb[3].mxu0 }
 0x10a   : > { %453 = vadd.xlane.f32.xlu0 %v452_v22  ;;  %v455_v24 = vadd.f32 %v449_v23, %v447_v21 }
 0x10e   : > { %456 = vadd.xlane.f32.xlu0 %v455_v24 }
 0x197   : > { %v454_v33 = vpop.xlane.xlu0 %453 }
 0x198   : > { %v459_v34 = vmul.f32 0.00390625, %v454_v33  ;;  %v10523_v33 = vld [vmem:[%s12621_s2 + $0x1e0] sm:$0xff]  }
 0x19a   : > { %v11025_v35 = vsub.f32 %v443_v19, %v459_v34  ;;  %v11027_v36 = vsub.f32 %v445_v20, %v459_v34  ;;  %v10524_v34 = vld [vmem:[%s12621_s2 + $0x1a0] sm:$0xff]  }
 0x19b   : > { %v457_v37 = vpop.xlane.xlu0 %456 }
 0x19c   : > { %v460_v38 = vmul.f32 0.00390625, %v457_v37  ;;  %v465_v39 = vmul.f32 %v11025_v35, %v11025_v35  ;;  %v466_v40 = vmul.f32 %v11027_v36, %v11027_v36  ;;  %v10527_v37 = vld [vmem:[%s12621_s2 + $0x1f0] sm:$0xff]  }
 0x19e   : > { %v11033_v41 = vsub.f32 %v447_v21, %v460_v38  ;;  %v11035_v42 = vsub.f32 %v449_v23, %v460_v38  ;;  %v469_v43 = vadd.f32 %v466_v40, %v465_v39  ;;  %v10528_v38 = vld [vmem:[%s12621_s2 + $0x1b0] sm:$0xff]   ;;  %v10529_v39 = vld [vmem:[%s12621_s2 + $0x1f8] sm:$0xff]  }
 0x19f   : > { %v10530_v40 = vld [vmem:[%s12621_s2 + $0x1b8] sm:$0xff]  }
 0x1a0   : > { %470 = vadd.xlane.f32.xlu1 %v469_v43  ;;  %v467_v44 = vmul.f32 %v11033_v41, %v11033_v41  ;;  %v468_v45 = vmul.f32 %v11035_v42, %v11035_v42  ;;  %v10533_v43 = vld [vmem:[%s12621_s2 + $0x248] sm:$0xff]  }
 0x1a2   : > { %v472_v46 = vadd.f32 %v468_v45, %v467_v44  ;;  %v10534_v44 = vld [vmem:[%s12621_s2 + $0x208] sm:$0xff]   ;;  %v10535_v45 = vld [vmem:[%s12621_s2 + $0x250] sm:$0xff]  }
 0x1a4   : > { %473 = vadd.xlane.f32.xlu1 %v472_v46  ;;  %v10536_v46 = vld [vmem:[%s12621_s2 + $0x210] sm:$0xff]  }
 0x22d   : > { %v471_v8 = vpop.xlane.xlu1 %470 }
 0x22e   : > { %v475_v9 = vmul.f32 0.00390625, %v471_v8  ;;  %v10562_v8 = vld [vmem:[%s12621_s2 + $0x338] sm:$0xff]  }
 0x230   : > { %v477_v10 = vadd.f32 1e-05, %v475_v9  ;;  %v10563_v9 = vld [vmem:[%s12621_s2 + $0x440] sm:$0xff]  }
 0x231   : > { %v474_v11 = vpop.xlane.xlu1 %473 }
 0x232   : > { %10899 = vrsqrt.f32 %v477_v10  ;;  %v476_v12 = vmul.f32 0.00390625, %v474_v11  ;;  %v10564_v10 = vld [vmem:[%s12621_s2 + $0x400] sm:$0xff]   ;;  %v10627_v11 = vld [vmem:[%s12622_s3 + $0x10] sm:$0xff]  }
 0x234   : > { %v478_v13 = vadd.f32 1e-05, %v476_v12  ;;  %v10565_v12 = vld [vmem:[%s12621_s2 + $0x448] sm:$0xff]  }
 0x236   : > { %10901 = vrsqrt.f32 %v478_v13  ;;  %v10566_v13 = vld [vmem:[%s12621_s2 + $0x408] sm:$0xff]  }
 0x23c   : > { %v10900_v14 = vpop.eup %10899 }
 0x23d   : > { %v481_v15 = vmul.f32 %v10900_v14, %v11025_v35  ;;  %v482_v16 = vmul.f32 %v10900_v14, %v11027_v36  ;;  %v10525_v35 = vld [vmem:[%s12621_s2 + $0x1e8] sm:$0xff]   ;;  %v10567_v14 = vld [vmem:[%s12621_s2 + $0x450] sm:$0xff]  }
 0x23e   : > { %v10526_v36 = vld [vmem:[%s12621_s2 + $0x1a8] sm:$0xff]  }
 0x23f   : > { %v485_v20 = vmax.f32 %v481_v15, 0.0  ;;  %v486_v21 = vmax.f32 %v482_v16, 0.0  ;;  %v10568_v15 = vld [vmem:[%s12621_s2 + $0x410] sm:$0xff]   ;;  %v10569_v16 = vld [vmem:[%s12621_s2 + $0x458] sm:$0xff]  }
 0x240   : > { %v10902_v17 = vpop.eup %10901 }
 0x241   : > { %v483_v18 = vmul.f32 %v10902_v17, %v11033_v41  ;;  %v484_v19 = vmul.f32 %v10902_v17, %v11035_v42  ;;  %v10531_v41 = vld [vmem:[%s12621_s2 + $0x240] sm:$0xff]   ;;  %v10570_v17 = vld [vmem:[%s12621_s2 + $0x418] sm:$0xff]  }
 0x242   : > { %v10532_v42 = vld [vmem:[%s12621_s2 + $0x200] sm:$0xff]  }
 0x243   : > { %v487_v22 = vmax.f32 %v483_v18, 0.0  ;;  %v488_v23 = vmax.f32 %v484_v19, 0.0  ;;  %v10571_v18 = vld [vmem:[%s12621_s2 + $0x460] sm:$0xff]  }
 0x244   : > { %v10572_v19 = vld [vmem:[%s12621_s2 + $0x420] sm:$0xff]  }
 0x245   : > { %v11120_v24 = vpack.c.bf16 %v487_v22, %v485_v20  ;;  %v11122_v25 = vpack.c.bf16 %v488_v23, %v486_v21  ;;  %v10573_v20 = vld [vmem:[%s12621_s2 + $0x468] sm:$0xff]   ;;  %v10575_v22 = vld [vmem:[%s12621_s2 + $0x470] sm:$0xff]  }
 0x246   : > { %v10574_v21 = vld [vmem:[%s12621_s2 + $0x428] sm:$0xff]   ;;  %v10576_v23 = vld [vmem:[%s12621_s2 + $0x430] sm:$0xff]  }
 0x247   : > { %651 = vmatprep.mubr.bf16.mxu1 %v11122_v25  ;;  %826 = vmatprep.mubr.bf16.mxu0 %v11122_v25 }
 0x248   : > { %652 = vmatmul.mubr.bf16.vlgmr.msra.gmra.mrb[0].mxu1 %v11120_v24  ;;  %827 = vmatmul.mubr.bf16.vlgmr.msra.gmra.mrb[4].mxu0 %v11120_v24 }
 0x249   : > { %9272 = vmatpush3.bf16.msra.mxu0 %v10516_v26  ;;  %1378 = vmatprep.mubr.bf16.mxu0 %v11122_v25  ;;  %v10577_v26 = vld [vmem:[%s12621_s2 + $0x478] sm:$0xff]  }
 0x24a   : > { %9273 = vmatprep.subr.bf16.mxu0 %v10517_v27  ;;  %9790 = vmatprep.mubr.msk.bf16.mxu1 %vm851_vm0, %v10627_v11  ;;  %v10578_v27 = vld [vmem:[%s12621_s2 + $0x438] sm:$0xff]  }
 0x24d   : > { %9274 = vmatpush3.bf16.msra.mxu0 %v10518_v28  ;;  %v10579_v28 = vld [vmem:[%s12621_s2 + $0x4c0] sm:$0xff]  }
 0x24e   : > { %9275 = vmatprep.subr.bf16.mxu0 %v10519_v29  ;;  %v10580_v29 = vld [vmem:[%s12621_s2 + $0x480] sm:$0xff]  }
 0x251   : > { %9276 = vmatpush3.bf16.msra.mxu0 %v10520_v30  ;;  %v10581_v30 = vld [vmem:[%s12621_s2 + $0x4c8] sm:$0xff]  }
 0x252   : > { %9277 = vmatprep.subr.bf16.mxu0 %v10521_v31  ;;  %v10582_v31 = vld [vmem:[%s12621_s2 + $0x488] sm:$0xff]  }
 0x255   : > { %9278 = vmatpush3.bf16.msra.mxu0 %v10522_v32  ;;  %v10583_v32 = vld [vmem:[%s12621_s2 + $0x4d0] sm:$0xff]  }
 0x256   : > { %9279 = vmatprep.subr.bf16.mxu0 %v10523_v33  ;;  %v10584_v33 = vld [vmem:[%s12621_s2 + $0x490] sm:$0xff]  }
 0x259   : > { %9280 = vmatpush3.bf16.msra.mxu0 %v10524_v34  ;;  %v10585_v34 = vld [vmem:[%s12621_s2 + $0x4d8] sm:$0xff]  }
 0x25a   : > { %9281 = vmatprep.subr.bf16.mxu0 %v10525_v35  ;;  %v10586_v35 = vld [vmem:[%s12621_s2 + $0x498] sm:$0xff]  }
 0x25d   : > { %9282 = vmatpush3.bf16.msra.mxu0 %v10526_v36  ;;  %v10587_v36 = vld [vmem:[%s12621_s2 + $0x4e0] sm:$0xff]  }
 0x25e   : > { %9283 = vmatprep.subr.bf16.mxu0 %v10527_v37  ;;  %v10588_v37 = vld [vmem:[%s12621_s2 + $0x4a0] sm:$0xff]  }
 0x261   : > { %9284 = vmatpush3.bf16.msra.mxu0 %v10528_v38  ;;  %v10589_v38 = vld [vmem:[%s12621_s2 + $0x4e8] sm:$0xff]  }
 0x262   : > { %9285 = vmatprep.subr.bf16.mxu0 %v10529_v39  ;;  %v10590_v39 = vld [vmem:[%s12621_s2 + $0x4a8] sm:$0xff]  }
 0x265   : > { %9286 = vmatpush3.bf16.msra.mxu0 %v10530_v40  ;;  %v10591_v40 = vld [vmem:[%s12621_s2 + $0x4f0] sm:$0xff]  }
 0x266   : > { %9296 = vmatprep.subr.bf16.mxu0 %v10531_v41  ;;  %v10592_v41 = vld [vmem:[%s12621_s2 + $0x4b0] sm:$0xff]  }
 0x268   : > { %1379 = vmatmul.mubr.bf16.vlgmr.msra.gmra.mrb[8].mxu0 %v11120_v24 }
 0x269   : > { %9297 = vmatpush3.bf16.msra.mxu0 %v10532_v42  ;;  %1623 = vmatprep.mubr.bf16.mxu0 %v11122_v25  ;;  %v10593_v42 = vld [vmem:[%s12621_s2 + $0x4f8] sm:$0xff]  }
 0x26a   : > { %9298 = vmatprep.subr.bf16.mxu0 %v10533_v43  ;;  %v10594_v43 = vld [vmem:[%s12621_s2 + $0x4b8] sm:$0xff]  }
 0x26d   : > { %9299 = vmatpush3.bf16.msra.mxu0 %v10534_v44  ;;  %v10595_v44 = vld [vmem:[%s12621_s2 + $0x5c0] sm:$0xff]  }
 0x26e   : > { %9300 = vmatprep.subr.bf16.mxu0 %v10535_v45  ;;  %v10596_v45 = vld [vmem:[%s12621_s2 + $0x580] sm:$0xff]  }
 0x271   : > { %9301 = vmatpush3.bf16.msra.mxu0 %v10536_v46  ;;  %v10597_v46 = vld [vmem:[%s12621_s2 + $0x5c8] sm:$0xff]  }
 0x272   : > { %9302 = vmatprep.subr.bf16.mxu0 %v10537_v47  ;;  %v10598_v47 = vld [vmem:[%s12621_s2 + $0x588] sm:$0xff]  }
 0x275   : > { %9303 = vmatpush3.bf16.msra.mxu0 %v10538_v48  ;;  %v10599_v48 = vld [vmem:[%s12621_s2 + $0x5d0] sm:$0xff]  }
 0x276   : > { %9304 = vmatprep.subr.bf16.mxu0 %v10539_v49  ;;  %v10600_v49 = vld [vmem:[%s12621_s2 + $0x590] sm:$0xff]  }
 0x279   : > { %9305 = vmatpush3.bf16.msra.mxu0 %v10540_v50  ;;  %v10601_v50 = vld [vmem:[%s12621_s2 + $0x5d8] sm:$0xff]  }
 0x27a   : > { %9306 = vmatprep.subr.bf16.mxu0 %v10541_v51  ;;  %v10602_v51 = vld [vmem:[%s12621_s2 + $0x598] sm:$0xff]  }
 0x27d   : > { %9307 = vmatpush3.bf16.msra.mxu0 %v10542_v52  ;;  %v10603_v52 = vld [vmem:[%s12621_s2 + $0x5e0] sm:$0xff]  }
 0x27e   : > { %9308 = vmatprep.subr.bf16.mxu0 %v10543_v53  ;;  %v10604_v53 = vld [vmem:[%s12621_s2 + $0x5a0] sm:$0xff]  }
 0x281   : > { %9309 = vmatpush3.bf16.msra.mxu0 %v10544_v54  ;;  %v10605_v54 = vld [vmem:[%s12621_s2 + $0x5e8] sm:$0xff]  }
 0x282   : > { %9310 = vmatprep.subr.bf16.mxu0 %v10545_v55  ;;  %v10606_v55 = vld [vmem:[%s12621_s2 + $0x5a8] sm:$0xff]  }
 0x285   : > { %9311 = vmatpush3.bf16.msra.mxu0 %v10546_v56  ;;  %v10607_v56 = vld [vmem:[%s12621_s2 + $0x5f0] sm:$0xff]  }
 0x286   : > { %9346 = vmatprep.subr.bf16.mxu0 %v10547_v57  ;;  %v10608_v57 = vld [vmem:[%s12621_s2 + $0x5b0] sm:$0xff]  }
 0x288   : > { %1624 = vmatmul.mubr.bf16.vlgmr.msra.gmra.mrb[12].mxu0 %v11120_v24 }
 0x289   : > { %9347 = vmatpush3.bf16.msra.mxu0 %v10548_v58  ;;  %2113 = vmatprep.mubr.bf16.mxu0 %v11122_v25  ;;  %v10609_v58 = vld [vmem:[%s12621_s2 + $0x5f8] sm:$0xff]  }
 0x28a   : > { %9348 = vmatprep.subr.bf16.mxu0 %v10549_v59  ;;  %v10610_v59 = vld [vmem:[%s12621_s2 + $0x5b8] sm:$0xff]  }
 0x28d   : > { %9349 = vmatpush3.bf16.msra.mxu0 %v10550_v60  ;;  %v10611_v60 = vld [vmem:[%s12621_s2 + $0x640] sm:$0xff]  }
 0x28e   : > { %9350 = vmatprep.subr.bf16.mxu0 %v10551_v61  ;;  %v10612_v61 = vld [vmem:[%s12621_s2 + $0x600] sm:$0xff]  }
 0x291   : > { %9351 = vmatpush3.bf16.msra.mxu0 %v10552_v62  ;;  %v10613_v62 = vld [vmem:[%s12621_s2 + $0x648] sm:$0xff]  }
 0x292   : > { %9352 = vmatprep.subr.bf16.mxu0 %v10553_v63  ;;  %v10614_v63 = vld [vmem:[%s12621_s2 + $0x608] sm:$0xff]  }
 0x295   : > { %9353 = vmatpush3.bf16.msra.mxu0 %v10554_v0  ;;  %v10615_v0 = vld [vmem:[%s12621_s2 + $0x650] sm:$0xff]  }
 0x296   : > { %9354 = vmatprep.subr.bf16.mxu0 %v10555_v1  ;;  %v10616_v1 = vld [vmem:[%s12621_s2 + $0x610] sm:$0xff]  }
 0x299   : > { %9355 = vmatpush3.bf16.msra.mxu0 %v10556_v2  ;;  %v10617_v2 = vld [vmem:[%s12621_s2 + $0x658] sm:$0xff]  }
 0x29a   : > { %9356 = vmatprep.subr.bf16.mxu0 %v10557_v3  ;;  %v10618_v3 = vld [vmem:[%s12621_s2 + $0x618] sm:$0xff]  }
 0x29d   : > { %9357 = vmatpush3.bf16.msra.mxu0 %v10558_v4  ;;  %v10619_v4 = vld [vmem:[%s12621_s2 + $0x660] sm:$0xff]  }
 0x29e   : > { %9358 = vmatprep.subr.bf16.mxu0 %v10559_v5  ;;  %v10620_v5 = vld [vmem:[%s12621_s2 + $0x620] sm:$0xff]  }
 0x2a1   : > { %9359 = vmatpush3.bf16.msra.mxu0 %v10560_v6  ;;  %v10621_v6 = vld [vmem:[%s12621_s2 + $0x668] sm:$0xff]  }
 0x2a2   : > { %9360 = vmatprep.subr.bf16.mxu0 %v10561_v7  ;;  %v10622_v7 = vld [vmem:[%s12621_s2 + $0x628] sm:$0xff]  }
 0x2a5   : > { %9361 = vmatpush3.bf16.msra.mxu0 %v10562_v8  ;;  %v10623_v8 = vld [vmem:[%s12621_s2 + $0x670] sm:$0xff]  }
 0x2a6   : > { %9396 = vmatprep.subr.bf16.mxu0 %v10563_v9 }
 0x2a8   : > { %2114 = vmatmul.mubr.bf16.vlgmr.msra.gmra.mrb[16].mxu0 %v11120_v24 }
 0x2a9   : > { %9397 = vmatpush3.bf16.msra.mxu0 %v10564_v10  ;;  %2603 = vmatprep.mubr.bf16.mxu0 %v11122_v25 }
 0x2aa   : > { %9398 = vmatprep.subr.bf16.mxu0 %v10565_v12 }
 0x2ad   : > { %9399 = vmatpush3.bf16.msra.mxu0 %v10566_v13 }
 0x2ae   : > { %9400 = vmatprep.subr.bf16.mxu0 %v10567_v14 }
 0x2b1   : > { %9401 = vmatpush3.bf16.msra.mxu0 %v10568_v15 }
 0x2b2   : > { %9402 = vmatprep.subr.bf16.mxu0 %v10569_v16 }
 0x2b5   : > { %9403 = vmatpush3.bf16.msra.mxu0 %v10570_v17  ;;  %v10624_v17 = vld [vmem:[%s12621_s2 + $0x630] sm:$0xff]  }
 0x2b6   : > { %9404 = vmatprep.subr.bf16.mxu0 %v10571_v18 }
 0x2b9   : > { %9405 = vmatpush3.bf16.msra.mxu0 %v10572_v19 }
 0x2ba   : > { %9406 = vmatprep.subr.bf16.mxu0 %v10573_v20  ;;  %v10625_v20 = vld [vmem:[%s12621_s2 + $0x678] sm:$0xff]  }
 0x2bd   : > { %9407 = vmatpush3.bf16.msra.mxu0 %v10574_v21 }
 0x2be   : > { %9408 = vmatprep.subr.bf16.mxu0 %v10575_v22 }
 0x2c1   : > { %9409 = vmatpush3.bf16.msra.mxu0 %v10576_v23 }
 0x2c2   : > { %9410 = vmatprep.subr.bf16.mxu0 %v10577_v26 }
 0x2c5   : > { %9411 = vmatpush3.bf16.msra.mxu0 %v10578_v27  ;;  %v10626_v27 = vld [vmem:[%s12621_s2 + $0x638] sm:$0xff]  }
 0x2c6   : > { %9421 = vmatprep.subr.bf16.mxu0 %v10579_v28  ;;  %v10629_v28 = vld [vmem:[%s12621_s2 + $0x740] sm:$0xff]  }
 0x2c8   : > { %2604 = vmatmul.mubr.bf16.vlgmr.msra.gmra.mrb[20].mxu0 %v11120_v24 }
 0x2c9   : > { %9422 = vmatpush3.bf16.msra.mxu0 %v10580_v29  ;;  %2848 = vmatprep.mubr.bf16.mxu0 %v11122_v25  ;;  %v10628_v29 = vld [vmem:[%s12622_s3 + $0x18] sm:$0xff]  }
 0x2ca   : > { %9423 = vmatprep.subr.bf16.mxu0 %v10581_v30  ;;  %v10630_v30 = vld [vmem:[%s12621_s2 + $0x700] sm:$0xff]  }
 0x2cd   : > { %9424 = vmatpush3.bf16.msra.mxu0 %v10582_v31  ;;  %v10631_v31 = vld [vmem:[%s12621_s2 + $0x748] sm:$0xff]  }
 0x2ce   : > { %9425 = vmatprep.subr.bf16.mxu0 %v10583_v32  ;;  %v10635_v32 = vld [vmem:[%s12622_s3] sm:$0xff]  }
 0x2d1   : > { %9426 = vmatpush3.bf16.msra.mxu0 %v10584_v33  ;;  %v10636_v33 = vld [vmem:[%s12621_s2 + $0x140] sm:$0xff]  }
 0x2d2   : > { %9427 = vmatprep.subr.bf16.mxu0 %v10585_v34  ;;  %v10632_v34 = vld [vmem:[%s12621_s2 + $0x708] sm:$0xff]  }
 0x2d5   : > { %9428 = vmatpush3.bf16.msra.mxu0 %v10586_v35  ;;  %v10633_v35 = vld [vmem:[%s12621_s2 + $0x750] sm:$0xff]  }
 0x2d6   : > { %9429 = vmatprep.subr.bf16.mxu0 %v10587_v36  ;;  %v10634_v36 = vld [vmem:[%s12621_s2 + $0x710] sm:$0xff]  }
 0x2d9   : > { %9430 = vmatpush3.bf16.msra.mxu0 %v10588_v37  ;;  %v10639_v37 = vld [vmem:[%s12621_s2 + $0x758] sm:$0xff]  }
 0x2da   : > { %9431 = vmatprep.subr.bf16.mxu0 %v10589_v38  ;;  %v10637_v38 = vld [vmem:[%s12622_s3 + $0x8] sm:$0xff]  }
 0x2dd   : > { %9432 = vmatpush3.bf16.msra.mxu0 %v10590_v39  ;;  %v10638_v39 = vld [vmem:[%s12621_s2 + $0x100] sm:$0xff]  }
 0x2de   : > { %9433 = vmatprep.subr.bf16.mxu0 %v10591_v40  ;;  %v10640_v40 = vld [vmem:[%s12621_s2 + $0x718] sm:$0xff]  }
 0x2e1   : > { %9434 = vmatpush3.bf16.msra.mxu0 %v10592_v41  ;;  %v10641_v41 = vld [vmem:[%s12621_s2 + $0x148] sm:$0xff]  }
 0x2e2   : > { %9435 = vmatprep.subr.bf16.mxu0 %v10593_v42  ;;  %v10643_v42 = vld [vmem:[%s12621_s2 + $0x760] sm:$0xff]  }
 0x2e5   : > { %9436 = vmatpush3.bf16.msra.mxu0 %v10594_v43  ;;  %v10642_v43 = vld [vmem:[%s12621_s2 + $0x108] sm:$0xff]  }
 0x2e6   : > { %9471 = vmatprep.subr.bf16.mxu0 %v10595_v44  ;;  %v10644_v44 = vld [vmem:[%s12621_s2 + $0x720] sm:$0xff]  }
 0x2e8   : > { %2849 = vmatmul.mubr.bf16.vlgmr.msra.gmra.mrb[24].mxu0 %v11120_v24 }
 0x2e9   : > { %9472 = vmatpush3.bf16.msra.mxu0 %v10596_v45  ;;  %3338 = vmatprep.mubr.bf16.mxu0 %v11122_v25  ;;  %v10645_v45 = vld [vmem:[%s12621_s2 + $0x150] sm:$0xff]  }
 0x2ea   : > { %9473 = vmatprep.subr.bf16.mxu0 %v10597_v46  ;;  %v10647_v46 = vld [vmem:[%s12621_s2 + $0x768] sm:$0xff]  }
 0x2ed   : > { %9474 = vmatpush3.bf16.msra.mxu0 %v10598_v47  ;;  %v10646_v47 = vld [vmem:[%s12621_s2 + $0x110] sm:$0xff]  }
 0x2ee   : > { %9475 = vmatprep.subr.bf16.mxu0 %v10599_v48  ;;  %v10648_v48 = vld [vmem:[%s12621_s2 + $0x728] sm:$0xff]  }
 0x2f1   : > { %9476 = vmatpush3.bf16.msra.mxu0 %v10600_v49  ;;  %v10649_v49 = vld [vmem:[%s12621_s2 + $0x158] sm:$0xff]  }
 0x2f2   : > { %9477 = vmatprep.subr.bf16.mxu0 %v10601_v50  ;;  %v10651_v50 = vld [vmem:[%s12621_s2 + $0x770] sm:$0xff]  }
 0x2f5   : > { %9478 = vmatpush3.bf16.msra.mxu0 %v10602_v51 }
 0x2f6   : > { %9479 = vmatprep.subr.bf16.mxu0 %v10603_v52 }
 0x2f9   : > { %9480 = vmatpush3.bf16.msra.mxu0 %v10604_v53  ;;  %v10650_v53 = vld [vmem:[%s12621_s2 + $0x118] sm:$0xff]  }
 0x2fa   : > { %9481 = vmatprep.subr.bf16.mxu0 %v10605_v54 }
 0x2fd   : > { %9482 = vmatpush3.bf16.msra.mxu0 %v10606_v55 }
 0x2fe   : > { %9483 = vmatprep.subr.bf16.mxu0 %v10607_v56  ;;  %v10652_v56 = vld [vmem:[%s12621_s2 + $0x730] sm:$0xff]  }
 0x301   : > { %9484 = vmatpush3.bf16.msra.mxu0 %v10608_v57  ;;  %v10653_v57 = vld [vmem:[%s12621_s2 + $0x160] sm:$0xff]  }
 0x302   : > { %9485 = vmatprep.subr.bf16.mxu0 %v10609_v58 }
 0x305   : > { %9486 = vmatpush3.bf16.msra.mxu0 %v10610_v59  ;;  %v10655_v59 = vld [vmem:[%s12621_s2 + $0x778] sm:$0xff]  }
 0x306   : > { %9496 = vmatprep.subr.bf16.mxu0 %v10611_v60 }
 0x308   : > { %3339 = vmatmul.mubr.bf16.vlgmr.msra.gmra.mrb[28].mxu0 %v11120_v24 }
 0x309   : > { %9497 = vmatpush3.bf16.msra.mxu0 %v10612_v61  ;;  %3583 = vmatprep.mubr.bf16.mxu0 %v11122_v25  ;;  %v10654_v61 = vld [vmem:[%s12621_s2 + $0x120] sm:$0xff]  }
 0x30a   : > { %9498 = vmatprep.subr.bf16.mxu0 %v10613_v62 }
 0x30d   : > { %9499 = vmatpush3.bf16.msra.mxu0 %v10614_v63  ;;  %v10656_v63 = vld [vmem:[%s12621_s2 + $0x738] sm:$0xff]  }
 0x30e   : > { %9500 = vmatprep.subr.bf16.mxu0 %v10615_v0  ;;  %v10657_v0 = vld [vmem:[%s12621_s2 + $0x168] sm:$0xff]  }
 0x311   : > { %9501 = vmatpush3.bf16.msra.mxu0 %v10616_v1  ;;  %v10658_v1 = vld [vmem:[%s12621_s2 + $0x128] sm:$0xff]  }
 0x312   : > { %9502 = vmatprep.subr.bf16.mxu0 %v10617_v2  ;;  %v10659_v2 = vld [vmem:[%s12621_s2 + $0x170] sm:$0xff]  }
 0x315   : > { %9503 = vmatpush3.bf16.msra.mxu0 %v10618_v3  ;;  %v10660_v3 = vld [vmem:[%s12621_s2 + $0x130] sm:$0xff]  }
 0x316   : > { %9504 = vmatprep.subr.bf16.mxu0 %v10619_v4  ;;  %v10661_v4 = vld [vmem:[%s12621_s2 + $0x178] sm:$0xff]  }
 0x319   : > { %9505 = vmatpush3.bf16.msra.mxu0 %v10620_v5  ;;  %v10662_v5 = vld [vmem:[%s12621_s2 + $0x138] sm:$0xff]  }
 0x31a   : > { %9506 = vmatprep.subr.bf16.mxu0 %v10621_v6 }
 0x31b   : > { %v9212_v9 = vpop.f32.mrb[0].mxu1  ;;  %v9234_v10 = vpop.f32.mrb[4].mxu0 }
 0x31c   : > { %v9213_v11 = vpop.f32.mrb[1].mxu1  ;;  %v9235_v12 = vpop.f32.mrb[5].mxu0 }
 0x31d   : > { %v9214_v13 = vadd.f32 %v9213_v11, %v9212_v9  ;;  %v9236_v14 = vadd.f32 %v9235_v12, %v9234_v10  ;;  %9507 = vmatpush3.bf16.msra.mxu0 %v10622_v7  ;;  %v9215_v15 = vpop.f32.mrb[2].mxu1  ;;  %v9237_v16 = vpop.f32.mrb[6].mxu0 }
 0x31e   : > { %v9216_v18 = vpop.f32.mrb[3].mxu1  ;;  %v9238_v19 = vpop.f32.mrb[7].mxu0  ;;  %9508 = vmatprep.subr.bf16.mxu0 %v10623_v8 }
 0x31f   : > { %v9217_v21 = vadd.f32 %v9216_v18, %v9215_v15  ;;  %v9239_v22 = vadd.f32 %v9238_v19, %v9237_v16 }
 0x321   : > { %v660_v23 = vpack.c.bf16 %v9217_v21, %v9214_v13  ;;  %v835_v26 = vpack.c.bf16 %v9239_v22, %v9236_v14  ;;  %9509 = vmatpush3.bf16.msra.mxu0 %v10624_v17 }
 0x322   : > { %9510 = vmatprep.subr.bf16.mxu0 %v10625_v20 }
 0x323   : > { %9788 = vmatprep.subr.bf16.mxu1 %v835_v26 }
 0x324   : > { %9789 = vmatpush3.bf16.msra.mxu1 %v835_v26 }
 0x325   : > { %9511 = vmatpush3.bf16.msra.mxu0 %v10626_v27  ;;  %9794 = vmatprep.subr.bf16.mxu1 %v660_v23 }
 0x326   : > { %9546 = vmatprep.subr.bf16.mxu0 %v10629_v28 }
 0x327   : > { %9791 = vmatmul.mubr.msk.bf16.vlgmr.msra.gmra.mrb[4].mxu1 %vm851_vm0, %v10628_v29  ;;  %v10663_v29 = vld [vmem:[%s12622_s3 + $0x20] sm:$0xff]  }
 0x328   : > { %3584 = vmatmul.mubr.bf16.vlgmr.msra.gmra.mrb[32].mxu0 %v11120_v24  ;;  %9795 = vmatpush3.bf16.msra.mxu1 %v660_v23 }
 0x329   : > { %9547 = vmatpush3.bf16.msra.mxu0 %v10630_v30  ;;  %4073 = vmatprep.mubr.bf16.mxu0 %v11122_v25 }
 0x32a   : > { %9548 = vmatprep.subr.bf16.mxu0 %v10631_v31  ;;  %9796 = vmatprep.mubr.msk.bf16.mxu1 %vm851_vm0, %v10635_v32 }
 0x32b   : > { %9246 = vmatprep.subr.bf16.mxu1 %v10636_v33 }
 0x32d   : > { %9549 = vmatpush3.bf16.msra.mxu0 %v10632_v34 }
 0x32e   : > { %9550 = vmatprep.subr.bf16.mxu0 %v10633_v35 }
 0x331   : > { %9551 = vmatpush3.bf16.msra.mxu0 %v10634_v36 }
 0x332   : > { %9552 = vmatprep.subr.bf16.mxu0 %v10639_v37 }
 0x333   : > { %9797 = vmatmul.mubr.msk.bf16.vlgmr.msra.gmra.mrb[4].mxu1 %vm851_vm0, %v10637_v38 }
 0x334   : > { %9247 = vmatpush3.bf16.msra.mxu1 %v10638_v39  ;;  %1133 = vmatprep.mubr.bf16.mxu1 %v11122_v25 }
 0x335   : > { %9553 = vmatpush3.bf16.msra.mxu0 %v10640_v40  ;;  %9248 = vmatprep.subr.bf16.mxu1 %v10641_v41 }
 0x336   : > { %9554 = vmatprep.subr.bf16.mxu0 %v10643_v42 }
 0x338   : > { %9249 = vmatpush3.bf16.msra.mxu1 %v10642_v43 }
 0x339   : > { %9555 = vmatpush3.bf16.msra.mxu0 %v10644_v44  ;;  %9250 = vmatprep.subr.bf16.mxu1 %v10645_v45 }
 0x33a   : > { %9556 = vmatprep.subr.bf16.mxu0 %v10647_v46 }
 0x33b   : > { %v9287_v51 = vpop.f32.mrb[8].mxu0 }
 0x33c   : > { %9251 = vmatpush3.bf16.msra.mxu1 %v10646_v47  ;;  %v9288_v52 = vpop.f32.mrb[9].mxu0 }
 0x33d   : > { %v9289_v54 = vadd.f32 %v9288_v52, %v9287_v51  ;;  %v9290_v55 = vpop.f32.mrb[10].mxu0  ;;  %9557 = vmatpush3.bf16.msra.mxu0 %v10648_v48  ;;  %9252 = vmatprep.subr.bf16.mxu1 %v10649_v49 }
 0x33e   : > { %v9291_v58 = vpop.f32.mrb[11].mxu0  ;;  %9558 = vmatprep.subr.bf16.mxu0 %v10651_v50 }
 0x33f   : > { %v9292_v60 = vadd.f32 %v9291_v58, %v9290_v55 }
 0x340   : > { %9253 = vmatpush3.bf16.msra.mxu1 %v10650_v53 }
 0x341   : > { %v11568_v62 = vpack.c.bf16 %v9292_v60, %v9289_v54  ;;  %9559 = vmatpush3.bf16.msra.mxu0 %v10652_v56  ;;  %9254 = vmatprep.subr.bf16.mxu1 %v10653_v57 }
 0x342   : > { %9560 = vmatprep.subr.bf16.mxu0 %v10655_v59 }
 0x344   : > { %9255 = vmatpush3.bf16.msra.mxu1 %v10654_v61 }
 0x345   : > { %9561 = vmatpush3.bf16.msra.mxu0 %v10656_v63  ;;  %9256 = vmatprep.subr.bf16.mxu1 %v10657_v0 }
 0x348   : > { %9257 = vmatpush3.bf16.msra.mxu1 %v10658_v1  ;;  %4074 = vmatmul.mubr.bf16.vlgmr.msra.gmra.mrb[36].mxu0 %v11120_v24 }
 0x349   : > { %9258 = vmatprep.subr.bf16.mxu1 %v10659_v2  ;;  %v10664_v2 = vld [vmem:[%s12622_s3 + $0x28] sm:$0xff]  }
 0x34c   : > { %9259 = vmatpush3.bf16.msra.mxu1 %v10660_v3  ;;  %v10665_v3 = vld [vmem:[%s12622_s3 + $0x30] sm:$0xff]  }
 0x34d   : > { %9260 = vmatprep.subr.bf16.mxu1 %v10661_v4  ;;  %v10666_v4 = vld [vmem:[%s12622_s3 + $0x38] sm:$0xff]  }
 0x350   : > { %9261 = vmatpush3.bf16.msra.mxu1 %v10662_v5  ;;  %v10667_v5 = vld [vmem:[%s12622_s3 + $0x40] sm:$0xff]  }
 0x353   : > { %1134 = vmatmul.mubr.bf16.vlgmr.msra.gmra.mrb[8].mxu1 %v11120_v24 }
 0x354   : > { %9802 = vmatprep.mubr.msk.bf16.mxu1 %vm851_vm0, %v10663_v29 }
 0x35b   : > { %v9312_v6 = vpop.f32.mrb[12].mxu0 }
 0x35c   : > { %v9313_v7 = vpop.f32.mrb[13].mxu0 }
 0x35d   : > { %v9314_v8 = vadd.f32 %v9313_v7, %v9312_v6  ;;  %v9315_v9 = vpop.f32.mrb[14].mxu0  ;;  %v10668_v6 = vld [vmem:[%s12621_s2 + $0x2c0] sm:$0xff]  }
 0x35e   : > { %v9316_v10 = vpop.f32.mrb[15].mxu0  ;;  %v10670_v7 = vld [vmem:[%s12621_s2 + $0x280] sm:$0xff]  }
 0x35f   : > { %v9317_v11 = vadd.f32 %v9316_v10, %v9315_v9  ;;  %v10672_v9 = vld [vmem:[%s12621_s2 + $0x288] sm:$0xff]   ;;  %v10673_v10 = vld [vmem:[%s12621_s2 + $0x2d0] sm:$0xff]  }
 0x361   : > { %v11593_v12 = vpack.c.bf16 %v9317_v11, %v9314_v8  ;;  %v10671_v8 = vld [vmem:[%s12621_s2 + $0x2c8] sm:$0xff]   ;;  %v10674_v11 = vld [vmem:[%s12621_s2 + $0x290] sm:$0xff]  }
 0x37b   : > { %v9362_v13 = vpop.f32.mrb[16].mxu0 }
 0x37c   : > { %v9363_v14 = vpop.f32.mrb[17].mxu0 }
 0x37d   : > { %v9364_v15 = vadd.f32 %v9363_v14, %v9362_v13  ;;  %v9365_v16 = vpop.f32.mrb[18].mxu0  ;;  %v10676_v13 = vld [vmem:[%s12621_s2 + $0x298] sm:$0xff]   ;;  %v10677_v14 = vld [vmem:[%s12621_s2 + $0x2e0] sm:$0xff]  }
 0x37e   : > { %v9366_v17 = vpop.f32.mrb[19].mxu0 }
 0x37f   : > { %v9367_v18 = vadd.f32 %v9366_v17, %v9365_v16  ;;  %v10679_v16 = vld [vmem:[%s12621_s2 + $0x2e8] sm:$0xff]  }
 0x380   : > { %v10680_v17 = vld [vmem:[%s12621_s2 + $0x2a8] sm:$0xff]  }
 0x381   : > { %v11595_v19 = vpack.c.bf16 %v9367_v18, %v9364_v15  ;;  %v10678_v15 = vld [vmem:[%s12621_s2 + $0x2a0] sm:$0xff]   ;;  %v10681_v18 = vld [vmem:[%s12621_s2 + $0x2f0] sm:$0xff]  }
 0x39b   : > { %v9412_v20 = vpop.f32.mrb[20].mxu0 }
 0x39c   : > { %v9413_v21 = vpop.f32.mrb[21].mxu0 }
 0x39d   : > { %v9414_v22 = vadd.f32 %v9413_v21, %v9412_v20  ;;  %v9415_v23 = vpop.f32.mrb[22].mxu0  ;;  %v10682_v20 = vld [vmem:[%s12621_s2 + $0x2b0] sm:$0xff]   ;;  %v10683_v21 = vld [vmem:[%s12621_s2 + $0x2f8] sm:$0xff]  }
 0x39e   : > { %v9416_v26 = vpop.f32.mrb[23].mxu0 }
 0x39f   : > { %v9417_v27 = vadd.f32 %v9416_v26, %v9415_v23  ;;  %v10685_v23 = vld [vmem:[%s12622_s3 + $0x50] sm:$0xff]  }
 0x3a1   : > { %v11597_v28 = vpack.c.bf16 %v9417_v27, %v9414_v22  ;;  %v10684_v22 = vld [vmem:[%s12621_s2 + $0x2b8] sm:$0xff]  }
 0x3bb   : > { %v9437_v30 = vpop.f32.mrb[24].mxu0 }
 0x3bc   : > { %v9438_v31 = vpop.f32.mrb[25].mxu0 }
 0x3bd   : > { %v9439_v32 = vadd.f32 %v9438_v31, %v9437_v30  ;;  %v9440_v33 = vpop.f32.mrb[26].mxu0 }
 0x3be   : > { %v9441_v34 = vpop.f32.mrb[27].mxu0 }
 0x3bf   : > { %v9442_v35 = vadd.f32 %v9441_v34, %v9440_v33  ;;  %v10686_v34 = vld [vmem:[%s12622_s3 + $0x58] sm:$0xff]  }
 0x3c1   : > { %v11603_v36 = vpack.c.bf16 %v9442_v35, %v9439_v32  ;;  %v10687_v35 = vld [vmem:[%s12622_s3 + $0x60] sm:$0xff]  }
 0x3db   : > { %v9487_v37 = vpop.f32.mrb[28].mxu0 }
 0x3dc   : > { %v9488_v38 = vpop.f32.mrb[29].mxu0 }
 0x3dd   : > { %v9489_v39 = vadd.f32 %v9488_v38, %v9487_v37  ;;  %v9490_v40 = vpop.f32.mrb[30].mxu0  ;;  %v10688_v37 = vld [vmem:[%s12621_s2 + $0x3c0] sm:$0xff]   ;;  %v10689_v38 = vld [vmem:[%s12622_s3 + $0x68] sm:$0xff]  }
 0x3de   : > { %v9491_v41 = vpop.f32.mrb[31].mxu0 }
 0x3df   : > { %v9492_v42 = vadd.f32 %v9491_v41, %v9490_v40  ;;  %v10691_v40 = vld [vmem:[%s12621_s2 + $0x3c8] sm:$0xff]   ;;  %v10693_v41 = vld [vmem:[%s12621_s2 + $0x3d0] sm:$0xff]  }
 0x3e1   : > { %v11605_v43 = vpack.c.bf16 %v9492_v42, %v9489_v39  ;;  %v10690_v39 = vld [vmem:[%s12621_s2 + $0x380] sm:$0xff]   ;;  %v10694_v42 = vld [vmem:[%s12621_s2 + $0x390] sm:$0xff]  }
 0x3fb   : > { %v9512_v44 = vpop.f32.mrb[32].mxu0 }
 0x3fc   : > { %v9513_v45 = vpop.f32.mrb[33].mxu0 }
 0x3fd   : > { %v9514_v46 = vadd.f32 %v9513_v45, %v9512_v44  ;;  %v9515_v47 = vpop.f32.mrb[34].mxu0  ;;  %v10695_v44 = vld [vmem:[%s12621_s2 + $0x3d8] sm:$0xff]  }
 0x3fe   : > { %v9516_v48 = vpop.f32.mrb[35].mxu0  ;;  %v10696_v45 = vld [vmem:[%s12621_s2 + $0x398] sm:$0xff]  }
 0x3ff   : > { %v9517_v49 = vadd.f32 %v9516_v48, %v9515_v47  ;;  %v10698_v47 = vld [vmem:[%s12621_s2 + $0x3a0] sm:$0xff]   ;;  %v10699_v48 = vld [vmem:[%s12621_s2 + $0x3e8] sm:$0xff]  }
 0x401   : > { %v11607_v50 = vpack.c.bf16 %v9517_v49, %v9514_v46  ;;  %v10697_v46 = vld [vmem:[%s12621_s2 + $0x3e0] sm:$0xff]   ;;  %v10700_v49 = vld [vmem:[%s12621_s2 + $0x3a8] sm:$0xff]  }
 0x41b   : > { %v9562_v51 = vpop.f32.mrb[36].mxu0 }
 0x41c   : > { %v9563_v52 = vpop.f32.mrb[37].mxu0 }
 0x41d   : > { %v9564_v53 = vadd.f32 %v9563_v52, %v9562_v51  ;;  %v9565_v54 = vpop.f32.mrb[38].mxu0  ;;  %v10701_v51 = vld [vmem:[%s12621_s2 + $0x3f0] sm:$0xff]  }
 0x41e   : > { %v9566_v55 = vpop.f32.mrb[39].mxu0  ;;  %v10702_v52 = vld [vmem:[%s12621_s2 + $0x3b0] sm:$0xff]  }
 0x41f   : > { %v9567_v56 = vadd.f32 %v9566_v55, %v9565_v54  ;;  %v10704_v54 = vld [vmem:[%s12621_s2 + $0x3b8] sm:$0xff]   ;;  %v10705_v55 = vld [vmem:[%s12622_s3 + $0x70] sm:$0xff]  }
 0x421   : > { %v11609_v57 = vpack.c.bf16 %v9567_v56, %v9564_v53  ;;  %v10703_v53 = vld [vmem:[%s12621_s2 + $0x3f8] sm:$0xff]  }
 0x426   : > { %v9262_v58 = vpop.f32.mrb[8].mxu1 }
 0x427   : > { %v9263_v59 = vpop.f32.mrb[9].mxu1 }
 0x428   : > { %v9264_v60 = vadd.f32 %v9263_v59, %v9262_v58  ;;  %v9265_v61 = vpop.f32.mrb[10].mxu1 }
 0x429   : > { %v9266_v63 = vpop.f32.mrb[11].mxu1 }
 0x42a   : > { %v9267_v0 = vadd.f32 %v9266_v63, %v9265_v61 }
 0x42c   : > { %v1142_v1 = vpack.c.bf16 %v9267_v0, %v9264_v60 }
 0x42e   : > { %9800 = vmatprep.subr.bf16.mxu1 %v1142_v1 }
 0x42f   : > { %9801 = vmatpush3.bf16.msra.mxu1 %v1142_v1  ;;  %v10706_v1 = vld [vmem:[%s12622_s3 + $0x78] sm:$0xff]  }
 0x430   : > { %9806 = vmatprep.subr.bf16.mxu1 %v11568_v62 }
 0x432   : > { %9803 = vmatmul.mubr.msk.bf16.vlgmr.msra.gmra.mrb[4].mxu1 %vm851_vm0, %v10664_v2  ;;  %v10707_v2 = vld [vmem:[%s12622_s3 + $0x80] sm:$0xff]  }
 0x433   : > { %9807 = vmatpush3.bf16.msra.mxu1 %v11568_v62  ;;  %9808 = vmatprep.mubr.msk.bf16.mxu1 %vm851_vm0, %v10665_v3  ;;  %v10669_v62 = vld [vmem:[%s12622_s3 + $0x48] sm:$0xff]  }
 0x434   : > { %9812 = vmatprep.subr.bf16.mxu1 %v11593_v12  ;;  %v10708_v3 = vld [vmem:[%s12622_s3 + $0x88] sm:$0xff]  }
 0x43e   : > { %9809 = vmatmul.mubr.msk.bf16.vlgmr.msra.gmra.mrb[4].mxu1 %vm851_vm0, %v10666_v4  ;;  %v10709_v4 = vld [vmem:[%s12622_s3 + $0x90] sm:$0xff]  }
 0x43f   : > { %9813 = vmatpush3.bf16.msra.mxu1 %v11593_v12  ;;  %9814 = vmatprep.mubr.msk.bf16.mxu1 %vm851_vm0, %v10667_v5  ;;  %v10675_v12 = vld [vmem:[%s12621_s2 + $0x2d8] sm:$0xff]   ;;  %v10710_v5 = vld [vmem:[%s12621_s2 + $0x540] sm:$0xff]  }
 0x440   : > { %9321 = vmatprep.subr.bf16.mxu1 %v10668_v6  ;;  %v10712_v6 = vld [vmem:[%s12621_s2 + $0x500] sm:$0xff]  }
 0x44a   : > { %9815 = vmatmul.mubr.msk.bf16.vlgmr.msra.gmra.mrb[4].mxu1 %vm851_vm0, %v10669_v62  ;;  %v10713_v62 = vld [vmem:[%s12621_s2 + $0x548] sm:$0xff]  }
 0x44b   : > { %9322 = vmatpush3.bf16.msra.mxu1 %v10670_v7  ;;  %1868 = vmatprep.mubr.bf16.mxu1 %v11122_v25  ;;  %v10715_v7 = vld [vmem:[%s12621_s2 + $0x550] sm:$0xff]  }
 0x44c   : > { %9323 = vmatprep.subr.bf16.mxu1 %v10671_v8  ;;  %v10716_v8 = vld [vmem:[%s12621_s2 + $0x510] sm:$0xff]  }
 0x44f   : > { %9324 = vmatpush3.bf16.msra.mxu1 %v10672_v9  ;;  %v10717_v9 = vld [vmem:[%s12621_s2 + $0x558] sm:$0xff]  }
 0x450   : > { %9325 = vmatprep.subr.bf16.mxu1 %v10673_v10  ;;  %v10718_v10 = vld [vmem:[%s12621_s2 + $0x518] sm:$0xff]  }
 0x453   : > { %9326 = vmatpush3.bf16.msra.mxu1 %v10674_v11  ;;  %v10719_v11 = vld [vmem:[%s12621_s2 + $0x560] sm:$0xff]  }
 0x454   : > { %9327 = vmatprep.subr.bf16.mxu1 %v10675_v12  ;;  %v10720_v12 = vld [vmem:[%s12621_s2 + $0x520] sm:$0xff]  }
 0x457   : > { %9328 = vmatpush3.bf16.msra.mxu1 %v10676_v13  ;;  %v10721_v13 = vld [vmem:[%s12621_s2 + $0x568] sm:$0xff]  }
 0x458   : > { %9329 = vmatprep.subr.bf16.mxu1 %v10677_v14  ;;  %v10722_v14 = vld [vmem:[%s12621_s2 + $0x528] sm:$0xff]  }
 0x45b   : > { %9330 = vmatpush3.bf16.msra.mxu1 %v10678_v15  ;;  %v10723_v15 = vld [vmem:[%s12621_s2 + $0x570] sm:$0xff]  }
 0x45c   : > { %9331 = vmatprep.subr.bf16.mxu1 %v10679_v16  ;;  %v10724_v16 = vld [vmem:[%s12621_s2 + $0x530] sm:$0xff]  }
 0x45f   : > { %9332 = vmatpush3.bf16.msra.mxu1 %v10680_v17  ;;  %v10725_v17 = vld [vmem:[%s12621_s2 + $0x578] sm:$0xff]  }
 0x460   : > { %9333 = vmatprep.subr.bf16.mxu1 %v10681_v18  ;;  %v10726_v18 = vld [vmem:[%s12621_s2 + $0x538] sm:$0xff]  }
 0x463   : > { %9334 = vmatpush3.bf16.msra.mxu1 %v10682_v20  ;;  %v10727_v20 = vld [vmem:[%s12622_s3 + $0xa0] sm:$0xff]  }
 0x464   : > { %9335 = vmatprep.subr.bf16.mxu1 %v10683_v21 }
 0x467   : > { %9336 = vmatpush3.bf16.msra.mxu1 %v10684_v22 }
 0x46a   : > { %1869 = vmatmul.mubr.bf16.vlgmr.msra.gmra.mrb[12].mxu1 %v11120_v24 }
 0x46b   : > { %9820 = vmatprep.mubr.msk.bf16.mxu1 %vm851_vm0, %v10685_v23 }
 0x53d   : > { %v9337_v26 = vpop.f32.mrb[12].mxu1 }
 0x53e   : > { %v9338_v27 = vpop.f32.mrb[13].mxu1 }
 0x53f   : > { %v9339_v29 = vadd.f32 %v9338_v27, %v9337_v26  ;;  %v9340_v30 = vpop.f32.mrb[14].mxu1 }
 0x540   : > { %v9341_v31 = vpop.f32.mrb[15].mxu1 }
 0x541   : > { %v9342_v32 = vadd.f32 %v9341_v31, %v9340_v30  ;;  %v10728_v31 = vld [vmem:[%s12622_s3 + $0xa8] sm:$0xff]  }
 0x543   : > { %v1877_v33 = vpack.c.bf16 %v9342_v32, %v9339_v29  ;;  %v10729_v32 = vld [vmem:[%s12622_s3 + $0xb0] sm:$0xff]  }
 0x545   : > { %9818 = vmatprep.subr.bf16.mxu1 %v1877_v33 }
 0x546   : > { %9819 = vmatpush3.bf16.msra.mxu1 %v1877_v33  ;;  %v10730_v33 = vld [vmem:[%s12622_s3 + $0xb8] sm:$0xff]  }
 0x547   : > { %9824 = vmatprep.subr.bf16.mxu1 %v11595_v19 }
 0x549   : > { %9821 = vmatmul.mubr.msk.bf16.vlgmr.msra.gmra.mrb[4].mxu1 %vm851_vm0, %v10686_v34  ;;  %v10731_v34 = vld [vmem:[%s12622_s3 + $0xc0] sm:$0xff]  }
 0x54a   : > { %9825 = vmatpush3.bf16.msra.mxu1 %v11595_v19  ;;  %9826 = vmatprep.mubr.msk.bf16.mxu1 %vm851_vm0, %v10687_v35  ;;  %v10692_v19 = vld [vmem:[%s12621_s2 + $0x388] sm:$0xff]   ;;  %v10732_v35 = vld [vmem:[%s12621_s2 + $0x6c0] sm:$0xff]  }
 0x54b   : > { %9371 = vmatprep.subr.bf16.mxu1 %v10688_v37  ;;  %v10734_v37 = vld [vmem:[%s12621_s2 + $0x680] sm:$0xff]  }
 0x555   : > { %9827 = vmatmul.mubr.msk.bf16.vlgmr.msra.gmra.mrb[4].mxu1 %vm851_vm0, %v10689_v38  ;;  %v10735_v38 = vld [vmem:[%s12621_s2 + $0x6c8] sm:$0xff]  }
 0x556   : > { %9372 = vmatpush3.bf16.msra.mxu1 %v10690_v39  ;;  %2358 = vmatprep.mubr.bf16.mxu1 %v11122_v25  ;;  %v10737_v39 = vld [vmem:[%s12621_s2 + $0x6d0] sm:$0xff]  }
 0x557   : > { %9373 = vmatprep.subr.bf16.mxu1 %v10691_v40  ;;  %v10738_v40 = vld [vmem:[%s12621_s2 + $0x690] sm:$0xff]  }
 0x55a   : > { %9374 = vmatpush3.bf16.msra.mxu1 %v10692_v19  ;;  %v10739_v19 = vld [vmem:[%s12621_s2 + $0x6d8] sm:$0xff]  }
 0x55b   : > { %9375 = vmatprep.subr.bf16.mxu1 %v10693_v41  ;;  %v10740_v41 = vld [vmem:[%s12621_s2 + $0x698] sm:$0xff]  }
 0x55e   : > { %9376 = vmatpush3.bf16.msra.mxu1 %v10694_v42  ;;  %v10741_v42 = vld [vmem:[%s12621_s2 + $0x6e0] sm:$0xff]  }
 0x55f   : > { %9377 = vmatprep.subr.bf16.mxu1 %v10695_v44  ;;  %v10742_v44 = vld [vmem:[%s12621_s2 + $0x6a0] sm:$0xff]  }
 0x562   : > { %9378 = vmatpush3.bf16.msra.mxu1 %v10696_v45  ;;  %v10743_v45 = vld [vmem:[%s12621_s2 + $0x6e8] sm:$0xff]  }
 0x563   : > { %9379 = vmatprep.subr.bf16.mxu1 %v10697_v46  ;;  %v10744_v46 = vld [vmem:[%s12621_s2 + $0x6a8] sm:$0xff]  }
 0x566   : > { %9380 = vmatpush3.bf16.msra.mxu1 %v10698_v47  ;;  %v10745_v47 = vld [vmem:[%s12621_s2 + $0x6f0] sm:$0xff]  }
 0x567   : > { %9381 = vmatprep.subr.bf16.mxu1 %v10699_v48  ;;  %v10746_v48 = vld [vmem:[%s12621_s2 + $0x6b0] sm:$0xff]  }
 0x56a   : > { %9382 = vmatpush3.bf16.msra.mxu1 %v10700_v49  ;;  %v10747_v49 = vld [vmem:[%s12621_s2 + $0x6f8] sm:$0xff]  }
 0x56b   : > { %9383 = vmatprep.subr.bf16.mxu1 %v10701_v51  ;;  %v10748_v51 = vld [vmem:[%s12621_s2 + $0x6b8] sm:$0xff]  }
 0x56e   : > { %9384 = vmatpush3.bf16.msra.mxu1 %v10702_v52  ;;  %v10749_v52 = vld [vmem:[%s12622_s3 + $0xd0] sm:$0xff]  }
 0x56f   : > { %9385 = vmatprep.subr.bf16.mxu1 %v10703_v53 }
 0x572   : > { %9386 = vmatpush3.bf16.msra.mxu1 %v10704_v54 }
 0x575   : > { %2359 = vmatmul.mubr.bf16.vlgmr.msra.gmra.mrb[16].mxu1 %v11120_v24 }
 0x576   : > { %9832 = vmatprep.mubr.msk.bf16.mxu1 %vm851_vm0, %v10705_v55 }
 0x648   : > { %v9387_v56 = vpop.f32.mrb[16].mxu1 }
 0x649   : > { %v9388_v58 = vpop.f32.mrb[17].mxu1 }
 0x64a   : > { %v9389_v59 = vadd.f32 %v9388_v58, %v9387_v56  ;;  %v9390_v60 = vpop.f32.mrb[18].mxu1 }
 0x64b   : > { %v9391_v61 = vpop.f32.mrb[19].mxu1 }
 0x64c   : > { %v9392_v63 = vadd.f32 %v9391_v61, %v9390_v60  ;;  %v10750_v61 = vld [vmem:[%s12622_s3 + $0xd8] sm:$0xff]  }
 0x64e   : > { %v2367_v0 = vpack.c.bf16 %v9392_v63, %v9389_v59  ;;  %v10751_v63 = vld [vmem:[%s12622_s3 + $0xe0] sm:$0xff]  }
 0x650   : > { %9830 = vmatprep.subr.bf16.mxu1 %v2367_v0 }
 0x651   : > { %9831 = vmatpush3.bf16.msra.mxu1 %v2367_v0  ;;  %v10752_v0 = vld [vmem:[%s12621_s2 + $0x7c0] sm:$0xff]  }
 0x652   : > { %9836 = vmatprep.subr.bf16.mxu1 %v11597_v28 }
 0x654   : > { %9833 = vmatmul.mubr.msk.bf16.vlgmr.msra.gmra.mrb[4].mxu1 %vm851_vm0, %v10706_v1  ;;  %v10753_v1 = vld [vmem:[%s12622_s3 + $0xe8] sm:$0xff]  }
 0x655   : > { %9837 = vmatpush3.bf16.msra.mxu1 %v11597_v28  ;;  %9838 = vmatprep.mubr.msk.bf16.mxu1 %vm851_vm0, %v10707_v2  ;;  %v10711_v28 = vld [vmem:[%s12622_s3 + $0x98] sm:$0xff]   ;;  %v10754_v2 = vld [vmem:[%s12621_s2 + $0x780] sm:$0xff]  }
 0x656   : > { %9842 = vmatprep.subr.bf16.mxu1 %v11603_v36 }
 0x660   : > { %9839 = vmatmul.mubr.msk.bf16.vlgmr.msra.gmra.mrb[4].mxu1 %vm851_vm0, %v10708_v3  ;;  %v10755_v3 = vld [vmem:[%s12621_s2 + $0x7c8] sm:$0xff]  }
 0x661   : > { %9843 = vmatpush3.bf16.msra.mxu1 %v11603_v36  ;;  %9844 = vmatprep.mubr.msk.bf16.mxu1 %vm851_vm0, %v10709_v4  ;;  %v10714_v36 = vld [vmem:[%s12621_s2 + $0x508] sm:$0xff]   ;;  %v10757_v4 = vld [vmem:[%s12621_s2 + $0x7d0] sm:$0xff]  }
 0x662   : > { %9446 = vmatprep.subr.bf16.mxu1 %v10710_v5  ;;  %v10758_v5 = vld [vmem:[%s12621_s2 + $0x790] sm:$0xff]  }
 0x66c   : > { %9845 = vmatmul.mubr.msk.bf16.vlgmr.msra.gmra.mrb[4].mxu1 %vm851_vm0, %v10711_v28  ;;  %v10759_v28 = vld [vmem:[%s12621_s2 + $0x7d8] sm:$0xff]  }
 0x66d   : > { %9447 = vmatpush3.bf16.msra.mxu1 %v10712_v6  ;;  %3093 = vmatprep.mubr.bf16.mxu1 %v11122_v25  ;;  %v10761_v6 = vld [vmem:[%s12621_s2 + $0x7e0] sm:$0xff]  }
 0x66e   : > { %9448 = vmatprep.subr.bf16.mxu1 %v10713_v62  ;;  %v10762_v62 = vld [vmem:[%s12621_s2 + $0x7a0] sm:$0xff]  }
 0x671   : > { %9449 = vmatpush3.bf16.msra.mxu1 %v10714_v36  ;;  %v10763_v36 = vld [vmem:[%s12621_s2 + $0x7e8] sm:$0xff]  }
 0x672   : > { %9450 = vmatprep.subr.bf16.mxu1 %v10715_v7  ;;  %v10764_v7 = vld [vmem:[%s12621_s2 + $0x7a8] sm:$0xff]  }
 0x675   : > { %9451 = vmatpush3.bf16.msra.mxu1 %v10716_v8  ;;  %v10765_v8 = vld [vmem:[%s12621_s2 + $0x7f0] sm:$0xff]  }
 0x676   : > { %9452 = vmatprep.subr.bf16.mxu1 %v10717_v9  ;;  %v10766_v9 = vld [vmem:[%s12621_s2 + $0x7b0] sm:$0xff]  }
 0x679   : > { %9453 = vmatpush3.bf16.msra.mxu1 %v10718_v10  ;;  %v10767_v10 = vld [vmem:[%s12621_s2 + $0x7f8] sm:$0xff]  }
 0x67a   : > { %9454 = vmatprep.subr.bf16.mxu1 %v10719_v11  ;;  %v10768_v11 = vld [vmem:[%s12621_s2 + $0x7b8] sm:$0xff]  }
 0x67d   : > { %9455 = vmatpush3.bf16.msra.mxu1 %v10720_v12  ;;  %v10769_v12 = vld [vmem:[%s12622_s3 + $0xf0] sm:$0xff]  }
 0x67e   : > { %9456 = vmatprep.subr.bf16.mxu1 %v10721_v13 }
 0x681   : > { %9457 = vmatpush3.bf16.msra.mxu1 %v10722_v14 }
 0x682   : > { %9458 = vmatprep.subr.bf16.mxu1 %v10723_v15 }
 0x685   : > { %9459 = vmatpush3.bf16.msra.mxu1 %v10724_v16 }
 0x686   : > { %9460 = vmatprep.subr.bf16.mxu1 %v10725_v17 }
 0x689   : > { %9461 = vmatpush3.bf16.msra.mxu1 %v10726_v18 }
 0x68c   : > { %3094 = vmatmul.mubr.bf16.vlgmr.msra.gmra.mrb[20].mxu1 %v11120_v24 }
 0x68d   : > { %9850 = vmatprep.mubr.msk.bf16.mxu1 %vm851_vm0, %v10727_v20 }
 0x75f   : > { %v9462_v21 = vpop.f32.mrb[20].mxu1 }
 0x760   : > { %v9463_v22 = vpop.f32.mrb[21].mxu1 }
 0x761   : > { %v9464_v23 = vadd.f32 %v9463_v22, %v9462_v21  ;;  %v9465_v26 = vpop.f32.mrb[22].mxu1  ;;  %v10770_v21 = vld [vmem:[%s12622_s3 + $0xf8] sm:$0xff]  }
 0x762   : > { %v9466_v27 = vpop.f32.mrb[23].mxu1 }
 0x763   : > { %v9467_v29 = vadd.f32 %v9466_v27, %v9465_v26 }
 0x765   : > { %v3102_v30 = vpack.c.bf16 %v9467_v29, %v9464_v23 }
 0x767   : > { %9848 = vmatprep.subr.bf16.mxu1 %v3102_v30 }
 0x768   : > { %9849 = vmatpush3.bf16.msra.mxu1 %v3102_v30 }
 0x769   : > { %9854 = vmatprep.subr.bf16.mxu1 %v11605_v43 }
 0x76b   : > { %9851 = vmatmul.mubr.msk.bf16.vlgmr.msra.gmra.mrb[4].mxu1 %vm851_vm0, %v10728_v31 }
 0x76c   : > { %9855 = vmatpush3.bf16.msra.mxu1 %v11605_v43  ;;  %9856 = vmatprep.mubr.msk.bf16.mxu1 %vm851_vm0, %v10729_v32  ;;  %v10733_v43 = vld [vmem:[%s12622_s3 + $0xc8] sm:$0xff]  }
 0x76d   : > { %9860 = vmatprep.subr.bf16.mxu1 %v11607_v50 }
 0x777   : > { %9857 = vmatmul.mubr.msk.bf16.vlgmr.msra.gmra.mrb[4].mxu1 %vm851_vm0, %v10730_v33 }
 0x778   : > { %9861 = vmatpush3.bf16.msra.mxu1 %v11607_v50  ;;  %9862 = vmatprep.mubr.msk.bf16.mxu1 %vm851_vm0, %v10731_v34  ;;  %v10736_v50 = vld [vmem:[%s12621_s2 + $0x688] sm:$0xff]  }
 0x779   : > { %9521 = vmatprep.subr.bf16.mxu1 %v10732_v35 }
 0x783   : > { %9863 = vmatmul.mubr.msk.bf16.vlgmr.msra.gmra.mrb[4].mxu1 %vm851_vm0, %v10733_v43 }
 0x784   : > { %9522 = vmatpush3.bf16.msra.mxu1 %v10734_v37  ;;  %3828 = vmatprep.mubr.bf16.mxu1 %v11122_v25 }
 0x785   : > { %9523 = vmatprep.subr.bf16.mxu1 %v10735_v38 }
 0x788   : > { %9524 = vmatpush3.bf16.msra.mxu1 %v10736_v50 }
 0x789   : > { %9525 = vmatprep.subr.bf16.mxu1 %v10737_v39 }
 0x78c   : > { %9526 = vmatpush3.bf16.msra.mxu1 %v10738_v40 }
 0x78d   : > { %9527 = vmatprep.subr.bf16.mxu1 %v10739_v19 }
 0x790   : > { %9528 = vmatpush3.bf16.msra.mxu1 %v10740_v41 }
 0x791   : > { %9529 = vmatprep.subr.bf16.mxu1 %v10741_v42 }
 0x794   : > { %9530 = vmatpush3.bf16.msra.mxu1 %v10742_v44 }
 0x795   : > { %9531 = vmatprep.subr.bf16.mxu1 %v10743_v45 }
 0x798   : > { %9532 = vmatpush3.bf16.msra.mxu1 %v10744_v46 }
 0x799   : > { %9533 = vmatprep.subr.bf16.mxu1 %v10745_v47 }
 0x79c   : > { %9534 = vmatpush3.bf16.msra.mxu1 %v10746_v48 }
 0x79d   : > { %9535 = vmatprep.subr.bf16.mxu1 %v10747_v49 }
 0x7a0   : > { %9536 = vmatpush3.bf16.msra.mxu1 %v10748_v51 }
 0x7a3   : > { %3829 = vmatmul.mubr.bf16.vlgmr.msra.gmra.mrb[24].mxu1 %v11120_v24 }
 0x7a4   : > { %9868 = vmatprep.mubr.msk.bf16.mxu1 %vm851_vm0, %v10749_v52  ;;  %v10771_v52 = vld [vmem:[%s12623_s4] sm:$0xff]  }
 0x876   : > { %v9537_v53 = vpop.f32.mrb[24].mxu1 }
 0x877   : > { %v9538_v54 = vpop.f32.mrb[25].mxu1 }
 0x878   : > { %v9539_v55 = vadd.f32 %v9538_v54, %v9537_v53  ;;  %v9540_v56 = vpop.f32.mrb[26].mxu1  ;;  %v10772_v53 = vld [vmem:[%s12623_s4 + $0x20] sm:$0xff]   ;;  %v10773_v54 = vld [vmem:[%s12623_s4 + $0x8] sm:$0xff]  }
 0x879   : > { %v9541_v58 = vpop.f32.mrb[27].mxu1  ;;  %9896 = vmatprep.subr.bf16.mxu0 %v10772_v53 }
 0x87a   : > { %v9542_v59 = vadd.f32 %v9541_v58, %v9540_v56  ;;  %9897 = vmatpush3.bf16.msra.mxu0 %v10772_v53  ;;  %v10775_v56 = vld [vmem:[%s12623_s4 + $0x10] sm:$0xff]  }
 0x87b   : > { %v10776_v58 = vld [vmem:[%s12623_s4 + $0x30] sm:$0xff]  }
 0x87c   : > { %v3837_v60 = vpack.c.bf16 %v9542_v59, %v9539_v55  ;;  %v10774_v55 = vld [vmem:[%s12623_s4 + $0x28] sm:$0xff]   ;;  %v10777_v59 = vld [vmem:[%s12623_s4 + $0x18] sm:$0xff]   ;;  %v10809_v53 = vld [vmem:[%s12623_s4 + $0x130] sm:$0xff]  }
 0x87d   : > { %9898 = vmatprep.subr.bf16.mxu0 %v10774_v55 }
 0x87e   : > { %9866 = vmatprep.subr.bf16.mxu1 %v3837_v60  ;;  %9899 = vmatpush3.bf16.msra.mxu0 %v10774_v55  ;;  %v10811_v55 = vld [vmem:[%s12623_s4 + $0x140] sm:$0xff]  }
 0x87f   : > { %9867 = vmatpush3.bf16.msra.mxu1 %v3837_v60  ;;  %9900 = vmatprep.subr.bf16.mxu0 %v10776_v58  ;;  %v10778_v60 = vld [vmem:[%s12623_s4 + $0x38] sm:$0xff]  }
 0x880   : > { %9872 = vmatprep.subr.bf16.mxu1 %v11609_v57 }
 0x882   : > { %9869 = vmatmul.mubr.msk.bf16.vlgmr.msra.gmra.mrb[4].mxu1 %vm851_vm0, %v10750_v61  ;;  %9901 = vmatpush3.bf16.msra.mxu0 %v10776_v58  ;;  %v10779_v61 = vld [vmem:[%s12623_s4 + $0x40] sm:$0xff]   ;;  %v10813_v58 = vld [vmem:[%s12623_s4 + $0x150] sm:$0xff]  }
 0x883   : > { %9873 = vmatpush3.bf16.msra.mxu1 %v11609_v57  ;;  %9874 = vmatprep.mubr.msk.bf16.mxu1 %vm851_vm0, %v10751_v63  ;;  %v10756_v57 = vld [vmem:[%s12621_s2 + $0x788] sm:$0xff]  }
 0x884   : > { %9571 = vmatprep.subr.bf16.mxu1 %v10752_v0  ;;  %9902 = vmatprep.subr.bf16.mxu0 %v10778_v60 }
 0x886   : > { %9903 = vmatpush3.bf16.msra.mxu0 %v10778_v60  ;;  %v10815_v60 = vld [vmem:[%s12623_s4 + $0x160] sm:$0xff]  }
 0x88e   : > { %9875 = vmatmul.mubr.msk.bf16.vlgmr.msra.gmra.mrb[4].mxu1 %vm851_vm0, %v10753_v1 }
 0x88f   : > { %9572 = vmatpush3.bf16.msra.mxu1 %v10754_v2  ;;  %4318 = vmatprep.mubr.bf16.mxu1 %v11122_v25  ;;  %v10760_v25 = vld [vmem:[%s12621_s2 + $0x798] sm:$0xff]  }
 0x890   : > { %9573 = vmatprep.subr.bf16.mxu1 %v10755_v3 }
 0x893   : > { %9574 = vmatpush3.bf16.msra.mxu1 %v10756_v57 }
 0x894   : > { %9575 = vmatprep.subr.bf16.mxu1 %v10757_v4 }
 0x897   : > { %9576 = vmatpush3.bf16.msra.mxu1 %v10758_v5 }
 0x898   : > { %9577 = vmatprep.subr.bf16.mxu1 %v10759_v28 }
 0x89b   : > { %9578 = vmatpush3.bf16.msra.mxu1 %v10760_v25 }
 0x89c   : > { %9579 = vmatprep.subr.bf16.mxu1 %v10761_v6 }
 0x89f   : > { %9580 = vmatpush3.bf16.msra.mxu1 %v10762_v62 }
 0x8a0   : > { %9581 = vmatprep.subr.bf16.mxu1 %v10763_v36 }
 0x8a3   : > { %9582 = vmatpush3.bf16.msra.mxu1 %v10764_v7 }
 0x8a4   : > { %9583 = vmatprep.subr.bf16.mxu1 %v10765_v8 }
 0x8a7   : > { %9584 = vmatpush3.bf16.msra.mxu1 %v10766_v9 }
 0x8a8   : > { %9585 = vmatprep.subr.bf16.mxu1 %v10767_v10 }
 0x8ab   : > { %9586 = vmatpush3.bf16.msra.mxu1 %v10768_v11 }
 0x8ae   : > { %4319 = vmatmul.mubr.bf16.vlgmr.msra.gmra.mrb[28].mxu1 %v11120_v24 }
 0x8af   : > { %9880 = vmatprep.mubr.msk.bf16.mxu1 %vm851_vm0, %v10769_v12 }
 0x981   : > { %v9587_v13 = vpop.f32.mrb[28].mxu1 }
 0x982   : > { %v9588_v14 = vpop.f32.mrb[29].mxu1 }
 0x983   : > { %v9589_v15 = vadd.f32 %v9588_v14, %v9587_v13  ;;  %v9590_v16 = vpop.f32.mrb[30].mxu1 }
 0x984   : > { %v9591_v17 = vpop.f32.mrb[31].mxu1 }
 0x985   : > { %v9592_v18 = vadd.f32 %v9591_v17, %v9590_v16 }
 0x987   : > { %v4327_v20 = vpack.c.bf16 %v9592_v18, %v9589_v15 }
 0x989   : > { %9878 = vmatprep.subr.bf16.mxu1 %v4327_v20 }
 0x98a   : > { %9879 = vmatpush3.bf16.msra.mxu1 %v4327_v20 }
 0x98b   : > { %9884 = vmatprep.subr.bf16.mxu1 %v10771_v52 }
 0x98d   : > { %9881 = vmatmul.mubr.msk.bf16.vlgmr.msra.gmra.mrb[4].mxu1 %vm851_vm0, %v10770_v21  ;;  %v10780_v21 = vld [vmem:[%s12623_s4 + $0x48] sm:$0xff]  }
 0x98e   : > { %9885 = vmatpush3.bf16.msra.mxu1 %v10771_v52  ;;  %v10808_v52 = vld [vmem:[%s12623_s4 + $0x128] sm:$0xff]  }
 0x98f   : > { %9886 = vmatprep.subr.bf16.mxu1 %v10773_v54 }
 0x992   : > { %9887 = vmatpush3.bf16.msra.mxu1 %v10773_v54  ;;  %v10810_v54 = vld [vmem:[%s12623_s4 + $0x138] sm:$0xff]  }
 0x993   : > { %9888 = vmatprep.subr.bf16.mxu1 %v10775_v56 }
 0x996   : > { %9889 = vmatpush3.bf16.msra.mxu1 %v10775_v56  ;;  %v10812_v56 = vld [vmem:[%s12623_s4 + $0x148] sm:$0xff]  }
 0x997   : > { %9890 = vmatprep.subr.bf16.mxu1 %v10777_v59 }
 0x99a   : > { %9891 = vmatpush3.bf16.msra.mxu1 %v10777_v59  ;;  %v10814_v59 = vld [vmem:[%s12623_s4 + $0x158] sm:$0xff]  }
 0x99b   : > { %9932 = vmatprep.subr.bf16.mxu1 %v10779_v61 }
 0xa60   : > { %v9882_v24 = vpop.f32.mrb[4].mxu1 }
 0xa61   : > { %v4383_v22 = vpop.f32.mrb[5].mxu1  ;;  %v4409_v30 = vsel %vm4402_vm1, %v9882_v24, 0.0 }
 0xa62   : > { %v9883_v23 = vpop.f32.mrb[6].mxu1  ;;  %v4403_v26 = vsel %vm4402_vm1, %v4383_v22, 0.0 }
 0xa63   : > { %4404 = vadd.xlane.f32.xlu0 %v4403_v26  ;;  %v4386_v27 = vpop.f32.mrb[7].mxu1  ;;  %v4412_v31 = vsel %vm4402_vm1, %v9883_v23, 0.0  ;;  %v10784_v26 = vld [vmem:[%s12623_s4 + $0x68] sm:$0xff]  }
 0xa64   : > { %v4406_v29 = vsel %vm4402_vm1, %v4386_v27, 0.0 }
 0xa65   : > { %4407 = vadd.xlane.f32.xlu1 %v4406_v29  ;;  %v10786_v29 = vld [vmem:[%s12623_s4 + $0x78] sm:$0xff]  }
 0xa67   : > { %4410 = vadd.xlane.f32.xlu0 %v4409_v30  ;;  %v10787_v30 = vld [vmem:[%s12623_s4 + $0x80] sm:$0xff]  }
 0xa69   : > { %4413 = vadd.xlane.f32.xlu1 %v4412_v31  ;;  %v10788_v31 = vld [vmem:[%s12623_s4 + $0x88] sm:$0xff]  }
 0xaf0   : > { %v4405_v32 = vpop.xlane.xlu0 %4404 }
 0xaf1   : > { %v4416_v33 = vmul.f32 0.015625, %v4405_v32  ;;  %v10789_v32 = vld [vmem:[%s12623_s4 + $0x90] sm:$0xff]  }
 0xaf2   : > { %v4408_v34 = vpop.xlane.xlu1 %4407 }
 0xaf3   : > { %v11989_v35 = vsub.f32 %v4383_v22, %v4416_v33  ;;  %v4417_v43 = vmul.f32 0.015625, %v4408_v34  ;;  %v10782_v22 = vld [vmem:[%s12623_s4 + $0x58] sm:$0xff]   ;;  %v10791_v34 = vld [vmem:[%s12623_s4 + $0xa0] sm:$0xff]  }
 0xaf4   : > { %v4411_v37 = vpop.xlane.xlu0 %4410  ;;  %v10790_v33 = vld [vmem:[%s12623_s4 + $0x98] sm:$0xff]  }
 0xaf5   : > { %v11991_v38 = vsub.f32 %v4386_v27, %v4417_v43  ;;  %v4418_v50 = vmul.f32 0.015625, %v4411_v37  ;;  %v4424_v39 = vmul.f32 %v11989_v35, %v11989_v35  ;;  %v10785_v27 = vld [vmem:[%s12623_s4 + $0x70] sm:$0xff]   ;;  %v10794_v37 = vld [vmem:[%s12623_s4 + $0xb8] sm:$0xff]  }
 0xaf6   : > { %v4414_v40 = vpop.xlane.xlu1 %4413  ;;  %v10793_v43 = vld [vmem:[%s12623_s4 + $0xb0] sm:$0xff]  }
 0xaf7   : > { %v11995_v19 = vsub.f32 %v9882_v24, %v4418_v50  ;;  %v4419_v41 = vmul.f32 0.015625, %v4414_v40  ;;  %v4428_v42 = vsel %vm4402_vm1, %v4424_v39, 0.0  ;;  %v4425_v44 = vmul.f32 %v11991_v38, %v11991_v38  ;;  %v10781_v24 = vld [vmem:[%s12623_s4 + $0x50] sm:$0xff]   ;;  %v10796_v50 = vld [vmem:[%s12623_s4 + $0xc8] sm:$0xff]   ;;  %v10798_v40 = vld [vmem:[%s12623_s4 + $0xd8] sm:$0xff]  }
 0xaf8   : > { %4429 = vadd.xlane.f32.xlu0 %v4428_v42  ;;  %v10797_v39 = vld [vmem:[%s12623_s4 + $0xd0] sm:$0xff]  }
 0xaf9   : > { %v4423_v45 = vsub.f32 %v9883_v23, %v4419_v41  ;;  %v4431_v46 = vsel %vm4402_vm1, %v4425_v44, 0.0  ;;  %v4426_v47 = vmul.f32 %v11995_v19, %v11995_v19  ;;  %v10783_v23 = vld [vmem:[%s12623_s4 + $0x60] sm:$0xff]   ;;  %v10800_v41 = vld [vmem:[%s12623_s4 + $0xe8] sm:$0xff]   ;;  %v10801_v42 = vld [vmem:[%s12623_s4 + $0xf0] sm:$0xff]  }
 0xafa   : > { %4432 = vadd.xlane.f32.xlu1 %v4431_v46  ;;  %v10802_v44 = vld [vmem:[%s12623_s4 + $0xf8] sm:$0xff]   ;;  %v10804_v46 = vld [vmem:[%s12623_s4 + $0x108] sm:$0xff]  }
 0xafb   : > { %v4434_v48 = vsel %vm4402_vm1, %v4426_v47, 0.0  ;;  %v4427_v49 = vmul.f32 %v4423_v45, %v4423_v45  ;;  %v10835_v47 = vld [vmem:[%s12624_s5 + $0x20] sm:$0xff]  }
 0xafc   : > { %4435 = vadd.xlane.f32.xlu0 %v4434_v48  ;;  %v10805_v48 = vld [vmem:[%s12623_s4 + $0x110] sm:$0xff]  }
 0xafd   : > { %v4437_v51 = vsel %vm4402_vm1, %v4427_v49, 0.0  ;;  %v10806_v49 = vld [vmem:[%s12623_s4 + $0x118] sm:$0xff]  }
 0xafe   : > { %4438 = vadd.xlane.f32.xlu1 %v4437_v51  ;;  %v10807_v51 = vld [vmem:[%s12623_s4 + $0x120] sm:$0xff]  }
 0xb85   : > { %v4430_v63 = vpop.xlane.xlu0 %4429 }
 0xb86   : > { %v4440_v0 = vmul.f32 0.015625, %v4430_v63  ;;  %v10817_v63 = vld [vmem:[%s12623_s4 + $0x170] sm:$0xff]  }
 0xb87   : > { %v4433_v1 = vpop.xlane.xlu1 %4432 }
 0xb88   : > { %v4444_v2 = vadd.f32 1e-05, %v4440_v0  ;;  %v4441_v3 = vmul.f32 0.015625, %v4433_v1  ;;  %v10818_v0 = vld [vmem:[%s12623_s4 + $0x178] sm:$0xff]   ;;  %v10819_v1 = vld [vmem:[%s12623_s4 + $0x180] sm:$0xff]  }
 0xb89   : > { %v4436_v57 = vpop.xlane.xlu0 %4435 }
 0xb8a   : > { %10903 = vrsqrt.f32 %v4444_v2  ;;  %v4445_v4 = vadd.f32 1e-05, %v4441_v3  ;;  %v4442_v5 = vmul.f32 0.015625, %v4436_v57  ;;  %v10820_v2 = vld [vmem:[%s12623_s4 + $0x188] sm:$0xff]   ;;  %v10821_v3 = vld [vmem:[%s12623_s4 + $0x190] sm:$0xff]   ;;  %v10822_v57 = vld [vmem:[%s12623_s4 + $0x198] sm:$0xff]  }
 0xb8b   : > { %v4439_v28 = vpop.xlane.xlu1 %4438 }
 0xb8c   : > { %10905 = vrsqrt.f32 %v4445_v4  ;;  %v4446_v25 = vadd.f32 1e-05, %v4442_v5  ;;  %v4443_v6 = vmul.f32 0.015625, %v4439_v28  ;;  %v10823_v4 = vld [vmem:[%s12623_s4 + $0x1a0] sm:$0xff]   ;;  %v10824_v5 = vld [vmem:[%s12623_s4 + $0x1a8] sm:$0xff]   ;;  %v10825_v28 = vld [vmem:[%s12623_s4 + $0x1b0] sm:$0xff]  }
 0xb8e   : > { %10907 = vrsqrt.f32 %v4446_v25  ;;  %v4447_v62 = vadd.f32 1e-05, %v4443_v6  ;;  %v10826_v25 = vld [vmem:[%s12623_s4 + $0x1b8] sm:$0xff]   ;;  %v10827_v6 = vld [vmem:[%s12623_s4 + $0x1c0] sm:$0xff]  }
 0xb90   : > { %10909 = vrsqrt.f32 %v4447_v62  ;;  %v10828_v62 = vld [vmem:[%s12623_s4 + $0x1c8] sm:$0xff]  }
 0xb94   : > { %v10904_v36 = vpop.eup %10903 }
 0xb95   : > { %v4452_v7 = vmul.f32 %v10904_v36, %v11989_v35  ;;  %v10792_v35 = vld [vmem:[%s12623_s4 + $0xa8] sm:$0xff]   ;;  %v10829_v36 = vld [vmem:[%s12623_s4 + $0x1d0] sm:$0xff]  }
 0xb96   : > { %v10906_v8 = vpop.eup %10905 }
 0xb97   : > { %v4453_v9 = vmul.f32 %v10906_v8, %v11991_v38  ;;  %v4456_v11 = vmax.f32 %v4452_v7, 0.0  ;;  %v10795_v38 = vld [vmem:[%s12623_s4 + $0xc0] sm:$0xff]   ;;  %v10830_v7 = vld [vmem:[%s12623_s4 + $0x1d8] sm:$0xff]  }
 0xb98   : > { %v10908_v10 = vpop.eup %10907  ;;  %v10831_v8 = vld [vmem:[%s12623_s4 + $0x1e0] sm:$0xff]  }
 0xb99   : > { %v4457_v12 = vmax.f32 %v4453_v9, 0.0  ;;  %v4454_v13 = vmul.f32 %v10908_v10, %v11995_v19  ;;  %v10799_v19 = vld [vmem:[%s12623_s4 + $0xe0] sm:$0xff]   ;;  %v10832_v9 = vld [vmem:[%s12623_s4 + $0x1e8] sm:$0xff]   ;;  %v10833_v10 = vld [vmem:[%s12623_s4 + $0x1f0] sm:$0xff]  }
 0xb9a   : > { %v10910_v14 = vpop.eup %10909 }
 0xb9b   : > { %v12035_v15 = vpack.c.bf16 %v4457_v12, %v4456_v11  ;;  %v4455_v16 = vmul.f32 %v10910_v14, %v4423_v45  ;;  %v4458_v17 = vmax.f32 %v4454_v13, 0.0  ;;  %v10803_v45 = vld [vmem:[%s12623_s4 + $0x100] sm:$0xff]  }
 0xb9d   : > { %v4459_v18 = vmax.f32 %v4455_v16, 0.0  ;;  %9892 = vmatprep.mubr.msk.bf16.mxu1 %vm4402_vm1, %v12035_v15  ;;  %9904 = vmatprep.mubr.msk.bf16.mxu0 %vm4402_vm1, %v12035_v15 }
 0xb9f   : > { %v12041_v20 = vpack.c.bf16 %v4459_v18, %v4458_v17 }
 0xba1   : > { %9893 = vmatmul.mubr.msk.bf16.vlgmr.msra.gmra.mrb[32].mxu1 %vm4402_vm1, %v12041_v20  ;;  %9905 = vmatmul.mubr.msk.bf16.vlgmr.msra.gmra.mrb[40].mxu0 %vm4402_vm1, %v12041_v20 }
 0xba2   : > { %9933 = vmatpush3.bf16.msra.mxu1 %v10779_v61  ;;  %9940 = vmatprep.mubr.msk.bf16.mxu1 %vm4402_vm1, %v12035_v15  ;;  %v10816_v61 = vld [vmem:[%s12623_s4 + $0x168] sm:$0xff]  }
 0xba3   : > { %9934 = vmatprep.subr.bf16.mxu1 %v10780_v21  ;;  %9912 = vmatprep.mubr.msk.bf16.mxu0 %vm4672_vm2, %v10835_v47  ;;  %v10845_v47 = vld [vmem:[%s12624_s5 + $0x50] sm:$0xff]  }
 0xba6   : > { %9935 = vmatpush3.bf16.msra.mxu1 %v10780_v21 }
 0xba7   : > { %9936 = vmatprep.subr.bf16.mxu1 %v10781_v24 }
 0xbaa   : > { %9937 = vmatpush3.bf16.msra.mxu1 %v10781_v24 }
 0xbab   : > { %9938 = vmatprep.subr.bf16.mxu1 %v10782_v22 }
 0xbae   : > { %9939 = vmatpush3.bf16.msra.mxu1 %v10782_v22 }
 0xbaf   : > { %9956 = vmatprep.subr.bf16.mxu1 %v10783_v23 }
 0xbb1   : > { %9941 = vmatmul.mubr.msk.bf16.vlgmr.msra.gmra.mrb[36].mxu1 %vm4402_vm1, %v12041_v20 }
 0xbb2   : > { %9957 = vmatpush3.bf16.msra.mxu1 %v10783_v23  ;;  %9964 = vmatprep.mubr.msk.bf16.mxu1 %vm4402_vm1, %v12035_v15 }
 0xbb3   : > { %9958 = vmatprep.subr.bf16.mxu1 %v10784_v26 }
 0xbb6   : > { %9959 = vmatpush3.bf16.msra.mxu1 %v10784_v26 }
 0xbb7   : > { %9960 = vmatprep.subr.bf16.mxu1 %v10785_v27 }
 0xbba   : > { %9961 = vmatpush3.bf16.msra.mxu1 %v10785_v27  ;;  %v10836_v27 = vld [vmem:[%s12624_s5 + $0x28] sm:$0xff]  }
 0xbbb   : > { %9962 = vmatprep.subr.bf16.mxu1 %v10786_v29 }
 0xbbe   : > { %9963 = vmatpush3.bf16.msra.mxu1 %v10786_v29  ;;  %v10837_v29 = vld [vmem:[%s12624_s5 + $0x30] sm:$0xff]  }
 0xbbf   : > { %9980 = vmatprep.subr.bf16.mxu1 %v10787_v30 }
 0xbc1   : > { %9965 = vmatmul.mubr.msk.bf16.vlgmr.msra.gmra.mrb[40].mxu1 %vm4402_vm1, %v12041_v20 }
 0xbc2   : > { %9981 = vmatpush3.bf16.msra.mxu1 %v10787_v30  ;;  %9988 = vmatprep.mubr.msk.bf16.mxu1 %vm4402_vm1, %v12035_v15 }
 0xbc3   : > { %9982 = vmatprep.subr.bf16.mxu1 %v10788_v31 }
 0xbc6   : > { %9983 = vmatpush3.bf16.msra.mxu1 %v10788_v31 }
 0xbc7   : > { %9984 = vmatprep.subr.bf16.mxu1 %v10789_v32 }
 0xbca   : > { %9985 = vmatpush3.bf16.msra.mxu1 %v10789_v32 }
 0xbcb   : > { %9986 = vmatprep.subr.bf16.mxu1 %v10790_v33 }
 0xbce   : > { %9987 = vmatpush3.bf16.msra.mxu1 %v10790_v33  ;;  %v10838_v33 = vld [vmem:[%s12624_s5 + $0x38] sm:$0xff]  }
 0xbcf   : > { %10004 = vmatprep.subr.bf16.mxu1 %v10791_v34 }
 0xbd1   : > { %9989 = vmatmul.mubr.msk.bf16.vlgmr.msra.gmra.mrb[44].mxu1 %vm4402_vm1, %v12041_v20 }
 0xbd2   : > { %10005 = vmatpush3.bf16.msra.mxu1 %v10791_v34  ;;  %10012 = vmatprep.mubr.msk.bf16.mxu1 %vm4402_vm1, %v12035_v15 }
 0xbd3   : > { %10006 = vmatprep.subr.bf16.mxu1 %v10792_v35 }
 0xbd6   : > { %10007 = vmatpush3.bf16.msra.mxu1 %v10792_v35 }
 0xbd7   : > { %10008 = vmatprep.subr.bf16.mxu1 %v10793_v43 }
 0xbda   : > { %10009 = vmatpush3.bf16.msra.mxu1 %v10793_v43 }
 0xbdb   : > { %10010 = vmatprep.subr.bf16.mxu1 %v10794_v37 }
 0xbde   : > { %10011 = vmatpush3.bf16.msra.mxu1 %v10794_v37  ;;  %v10840_v37 = vld [vmem:[%s12624_s5 + $0x8] sm:$0xff]  }
 0xbdf   : > { %10028 = vmatprep.subr.bf16.mxu1 %v10795_v38 }
 0xbe1   : > { %10013 = vmatmul.mubr.msk.bf16.vlgmr.msra.gmra.mrb[48].mxu1 %vm4402_vm1, %v12041_v20 }
 0xbe2   : > { %10029 = vmatpush3.bf16.msra.mxu1 %v10795_v38  ;;  %10036 = vmatprep.mubr.msk.bf16.mxu1 %vm4402_vm1, %v12035_v15  ;;  %v10841_v38 = vld [vmem:[%s12624_s5 + $0x10] sm:$0xff]  }
 0xbe3   : > { %10030 = vmatprep.subr.bf16.mxu1 %v10796_v50 }
 0xbe6   : > { %10031 = vmatpush3.bf16.msra.mxu1 %v10796_v50 }
 0xbe7   : > { %10032 = vmatprep.subr.bf16.mxu1 %v10797_v39 }
 0xbea   : > { %10033 = vmatpush3.bf16.msra.mxu1 %v10797_v39 }
 0xbeb   : > { %10034 = vmatprep.subr.bf16.mxu1 %v10798_v40 }
 0xbee   : > { %10035 = vmatpush3.bf16.msra.mxu1 %v10798_v40 }
 0xbef   : > { %10052 = vmatprep.subr.bf16.mxu1 %v10799_v19 }
 0xbf1   : > { %10037 = vmatmul.mubr.msk.bf16.vlgmr.msra.gmra.mrb[52].mxu1 %vm4402_vm1, %v12041_v20 }
 0xbf2   : > { %10053 = vmatpush3.bf16.msra.mxu1 %v10799_v19  ;;  %10060 = vmatprep.mubr.msk.bf16.mxu1 %vm4402_vm1, %v12035_v15  ;;  %v10842_v19 = vld [vmem:[%s12624_s5 + $0x18] sm:$0xff]  }
 0xbf3   : > { %10054 = vmatprep.subr.bf16.mxu1 %v10800_v41 }
 0xbf6   : > { %10055 = vmatpush3.bf16.msra.mxu1 %v10800_v41 }
 0xbf7   : > { %10056 = vmatprep.subr.bf16.mxu1 %v10801_v42 }
 0xbfa   : > { %10057 = vmatpush3.bf16.msra.mxu1 %v10801_v42 }
 0xbfb   : > { %10058 = vmatprep.subr.bf16.mxu1 %v10802_v44 }
 0xbfe   : > { %10059 = vmatpush3.bf16.msra.mxu1 %v10802_v44  ;;  %v10843_v44 = vld [vmem:[%s12624_s5 + $0x40] sm:$0xff]  }
 0xbff   : > { %10076 = vmatprep.subr.bf16.mxu1 %v10803_v45 }
 0xc01   : > { %10061 = vmatmul.mubr.msk.bf16.vlgmr.msra.gmra.mrb[56].mxu1 %vm4402_vm1, %v12041_v20 }
 0xc02   : > { %10077 = vmatpush3.bf16.msra.mxu1 %v10803_v45  ;;  %10084 = vmatprep.mubr.msk.bf16.mxu1 %vm4402_vm1, %v12035_v15 }
 0xc03   : > { %10078 = vmatprep.subr.bf16.mxu1 %v10804_v46 }
 0xc06   : > { %10079 = vmatpush3.bf16.msra.mxu1 %v10804_v46  ;;  %v10844_v46 = vld [vmem:[%s12624_s5 + $0x48] sm:$0xff]  }
 0xc07   : > { %10080 = vmatprep.subr.bf16.mxu1 %v10805_v48 }
 0xc0a   : > { %10081 = vmatpush3.bf16.msra.mxu1 %v10805_v48 }
 0xc0b   : > { %10082 = vmatprep.subr.bf16.mxu1 %v10806_v49 }
 0xc0e   : > { %10083 = vmatpush3.bf16.msra.mxu1 %v10806_v49 }
 0xc0f   : > { %10100 = vmatprep.subr.bf16.mxu1 %v10807_v51 }
 0xc11   : > { %10085 = vmatmul.mubr.msk.bf16.vlgmr.msra.gmra.mrb[60].mxu1 %vm4402_vm1, %v12041_v20 }
 0xc12   : > { %10101 = vmatpush3.bf16.msra.mxu1 %v10807_v51  ;;  %10108 = vmatprep.mubr.msk.bf16.mxu1 %vm4402_vm1, %v12035_v15 }
 0xc13   : > { %10102 = vmatprep.subr.bf16.mxu1 %v10808_v52 }
 0xc16   : > { %10103 = vmatpush3.bf16.msra.mxu1 %v10808_v52  ;;  %v10846_v52 = vld [vmem:[%s12624_s5 + $0x58] sm:$0xff]  }
 0xc17   : > { %10104 = vmatprep.subr.bf16.mxu1 %v10809_v53 }
 0xc1a   : > { %10105 = vmatpush3.bf16.msra.mxu1 %v10809_v53 }
 0xc1b   : > { %10106 = vmatprep.subr.bf16.mxu1 %v10810_v54 }
 0xc1e   : > { %10107 = vmatpush3.bf16.msra.mxu1 %v10810_v54 }
 0xc1f   : > { %10124 = vmatprep.subr.bf16.mxu1 %v10811_v55 }
 0xc21   : > { %10109 = vmatmul.mubr.msk.bf16.vlgmr.msra.gmra.mrb[64].mxu1 %vm4402_vm1, %v12041_v20 }
 0xc22   : > { %10125 = vmatpush3.bf16.msra.mxu1 %v10811_v55  ;;  %10132 = vmatprep.mubr.msk.bf16.mxu1 %vm4402_vm1, %v12035_v15  ;;  %v10847_v55 = vld [vmem:[%s12624_s5 + $0x60] sm:$0xff]  }
 0xc23   : > { %10126 = vmatprep.subr.bf16.mxu1 %v10812_v56 }
 0xc26   : > { %10127 = vmatpush3.bf16.msra.mxu1 %v10812_v56 }
 0xc27   : > { %10128 = vmatprep.subr.bf16.mxu1 %v10813_v58 }
 0xc2a   : > { %10129 = vmatpush3.bf16.msra.mxu1 %v10813_v58  ;;  %v10848_v58 = vld [vmem:[%s12624_s5 + $0x68] sm:$0xff]  }
 0xc2b   : > { %10130 = vmatprep.subr.bf16.mxu1 %v10814_v59 }
 0xc2e   : > { %10131 = vmatpush3.bf16.msra.mxu1 %v10814_v59  ;;  %v10849_v59 = vld [vmem:[%s12624_s5 + $0x70] sm:$0xff]  }
 0xc2f   : > { %10148 = vmatprep.subr.bf16.mxu1 %v10815_v60 }
 0xc31   : > { %10133 = vmatmul.mubr.msk.bf16.vlgmr.msra.gmra.mrb[68].mxu1 %vm4402_vm1, %v12041_v20 }
 0xc32   : > { %10149 = vmatpush3.bf16.msra.mxu1 %v10815_v60  ;;  %10156 = vmatprep.mubr.msk.bf16.mxu1 %vm4402_vm1, %v12035_v15 }
 0xc33   : > { %10150 = vmatprep.subr.bf16.mxu1 %v10816_v61 }
 0xc36   : > { %10151 = vmatpush3.bf16.msra.mxu1 %v10816_v61 }
 0xc37   : > { %10152 = vmatprep.subr.bf16.mxu1 %v10817_v63 }
 0xc3a   : > { %10153 = vmatpush3.bf16.msra.mxu1 %v10817_v63 }
 0xc3b   : > { %10154 = vmatprep.subr.bf16.mxu1 %v10818_v0 }
 0xc3e   : > { %10155 = vmatpush3.bf16.msra.mxu1 %v10818_v0  ;;  %v10850_v0 = vld [vmem:[%s12624_s5 + $0x78] sm:$0xff]  }
 0xc3f   : > { %10172 = vmatprep.subr.bf16.mxu1 %v10819_v1 }
 0xc41   : > { %10157 = vmatmul.mubr.msk.bf16.vlgmr.msra.gmra.mrb[72].mxu1 %vm4402_vm1, %v12041_v20 }
 0xc42   : > { %10173 = vmatpush3.bf16.msra.mxu1 %v10819_v1  ;;  %10180 = vmatprep.mubr.msk.bf16.mxu1 %vm4402_vm1, %v12035_v15 }
 0xc43   : > { %10174 = vmatprep.subr.bf16.mxu1 %v10820_v2 }
 0xc46   : > { %10175 = vmatpush3.bf16.msra.mxu1 %v10820_v2 }
 0xc47   : > { %10176 = vmatprep.subr.bf16.mxu1 %v10821_v3 }
 0xc4a   : > { %10177 = vmatpush3.bf16.msra.mxu1 %v10821_v3  ;;  %v10851_v3 = vld [vmem:[%s12624_s5 + $0x80] sm:$0xff]  }
 0xc4b   : > { %10178 = vmatprep.subr.bf16.mxu1 %v10822_v57 }
 0xc4e   : > { %10179 = vmatpush3.bf16.msra.mxu1 %v10822_v57 }
 0xc4f   : > { %10196 = vmatprep.subr.bf16.mxu1 %v10823_v4 }
 0xc51   : > { %10181 = vmatmul.mubr.msk.bf16.vlgmr.msra.gmra.mrb[76].mxu1 %vm4402_vm1, %v12041_v20 }
 0xc52   : > { %10197 = vmatpush3.bf16.msra.mxu1 %v10823_v4  ;;  %10204 = vmatprep.mubr.msk.bf16.mxu1 %vm4402_vm1, %v12035_v15  ;;  %v10852_v4 = vld [vmem:[%s12624_s5 + $0x88] sm:$0xff]  }
 0xc53   : > { %10198 = vmatprep.subr.bf16.mxu1 %v10824_v5 }
 0xc56   : > { %10199 = vmatpush3.bf16.msra.mxu1 %v10824_v5  ;;  %v10853_v5 = vld [vmem:[%s12624_s5 + $0x90] sm:$0xff]  }
 0xc57   : > { %10200 = vmatprep.subr.bf16.mxu1 %v10825_v28 }
 0xc5a   : > { %10201 = vmatpush3.bf16.msra.mxu1 %v10825_v28 }
 0xc5b   : > { %10202 = vmatprep.subr.bf16.mxu1 %v10826_v25 }
 0xc5e   : > { %10203 = vmatpush3.bf16.msra.mxu1 %v10826_v25 }
 0xc5f   : > { %10220 = vmatprep.subr.bf16.mxu1 %v10827_v6 }
 0xc61   : > { %10205 = vmatmul.mubr.msk.bf16.vlgmr.msra.gmra.mrb[80].mxu1 %vm4402_vm1, %v12041_v20 }
 0xc62   : > { %10221 = vmatpush3.bf16.msra.mxu1 %v10827_v6  ;;  %10228 = vmatprep.mubr.msk.bf16.mxu1 %vm4402_vm1, %v12035_v15 }
 0xc63   : > { %10222 = vmatprep.subr.bf16.mxu1 %v10828_v62 }
 0xc66   : > { %10223 = vmatpush3.bf16.msra.mxu1 %v10828_v62  ;;  %v10854_v62 = vld [vmem:[%s12624_s5 + $0x98] sm:$0xff]  }
 0xc67   : > { %10224 = vmatprep.subr.bf16.mxu1 %v10829_v36 }
 0xc6a   : > { %10225 = vmatpush3.bf16.msra.mxu1 %v10829_v36 }
 0xc6b   : > { %10226 = vmatprep.subr.bf16.mxu1 %v10830_v7 }
 0xc6e   : > { %10227 = vmatpush3.bf16.msra.mxu1 %v10830_v7 }
 0xc6f   : > { %10244 = vmatprep.subr.bf16.mxu1 %v10831_v8 }
 0xc71   : > { %10229 = vmatmul.mubr.msk.bf16.vlgmr.msra.gmra.mrb[84].mxu1 %vm4402_vm1, %v12041_v20 }
 0xc72   : > { %10245 = vmatpush3.bf16.msra.mxu1 %v10831_v8  ;;  %10252 = vmatprep.mubr.msk.bf16.mxu1 %vm4402_vm1, %v12035_v15  ;;  %v10834_v15 = vld [vmem:[%s12623_s4 + $0x1f8] sm:$0xff]   ;;  %v10855_v8 = vld [vmem:[%s12624_s5 + $0xa0] sm:$0xff]  }
 0xc73   : > { %10246 = vmatprep.subr.bf16.mxu1 %v10832_v9 }
 0xc74   : > { %v9894_v11 = vpop.f32.mrb[32].mxu1  ;;  %v9906_v12 = vpop.f32.mrb[40].mxu0 }
 0xc75   : > { %v4534_v13 = vpop.f32.mrb[33].mxu1  ;;  %v4626_v14 = vpop.f32.mrb[41].mxu0 }
 0xc76   : > { %10247 = vmatpush3.bf16.msra.mxu1 %v10832_v9  ;;  %v9895_v16 = vpop.f32.mrb[34].mxu1  ;;  %v9907_v17 = vpop.f32.mrb[42].mxu0 }
 0xc77   : > { %v4550_v18 = vpack.c.bf16 %v9895_v16, %v9894_v11  ;;  %v4642_v21 = vpack.c.bf16 %v9907_v17, %v9906_v12  ;;  %v4537_v24 = vpop.f32.mrb[35].mxu1  ;;  %v4629_v22 = vpop.f32.mrb[43].mxu0  ;;  %10248 = vmatprep.subr.bf16.mxu1 %v10833_v10  ;;  %v10857_v11 = vld [vmem:[%s12624_s5 + $0xb0] sm:$0xff]   ;;  %v10858_v16 = vld [vmem:[%s12624_s5 + $0xb8] sm:$0xff]  }
 0xc78   : > { %v4549_v23 = vpack.c.bf16 %v4537_v24, %v4534_v13  ;;  %v4641_v26 = vpack.c.bf16 %v4629_v22, %v4626_v14  ;;  %v10860_v22 = vld [vmem:[%s12624_s5 + $0xc8] sm:$0xff]  }
 0xc7a   : > { %10249 = vmatpush3.bf16.msra.mxu1 %v10833_v10  ;;  %9908 = vmatprep.subr.bf16.mxu0 %v4641_v26  ;;  %v10856_v10 = vld [vmem:[%s12624_s5 + $0xa8] sm:$0xff]  }
 0xc7b   : > { %9909 = vmatpush3.bf16.msra.mxu0 %v4641_v26  ;;  %10250 = vmatprep.subr.bf16.mxu1 %v10834_v15 }
 0xc7c   : > { %9910 = vmatprep.subr.bf16.mxu0 %v4642_v21 }
 0xc7e   : > { %10251 = vmatpush3.bf16.msra.mxu1 %v10834_v15  ;;  %v10861_v15 = vld [vmem:[%s12624_s5 + $0xd0] sm:$0xff]  }
 0xc7f   : > { %9911 = vmatpush3.bf16.msra.mxu0 %v4642_v21  ;;  %v10859_v21 = vld [vmem:[%s12624_s5 + $0xc0] sm:$0xff]  }
 0xc80   : > { %9920 = vmatprep.subr.bf16.mxu0 %v4549_v23 }
 0xc81   : > { %10253 = vmatmul.mubr.msk.bf16.vlgmr.msra.gmra.mrb[88].mxu1 %vm4402_vm1, %v12041_v20  ;;  %v10839_v20 = vld [vmem:[%s12624_s5] sm:$0xff]  }
 0xc82   : > { %9913 = vmatmul.mubr.msk.bf16.vlgmr.msra.gmra.mrb[44].mxu0 %vm4672_vm2, %v10836_v27 }
 0xc83   : > { %9921 = vmatpush3.bf16.msra.mxu0 %v4549_v23  ;;  %9916 = vmatprep.mubr.msk.bf16.mxu0 %vm4672_vm2, %v10837_v29  ;;  %v10862_v29 = vld [vmem:[%s12624_s5 + $0xd8] sm:$0xff]  }
 0xc84   : > { %v9942_v30 = vpop.f32.mrb[36].mxu1  ;;  %9922 = vmatprep.subr.bf16.mxu0 %v4550_v18 }
 0xc85   : > { %v4914_v31 = vpop.f32.mrb[37].mxu1 }
 0xc86   : > { %v9943_v32 = vpop.f32.mrb[38].mxu1 }
 0xc87   : > { %v4930_v34 = vpack.c.bf16 %v9943_v32, %v9942_v30  ;;  %v4917_v35 = vpop.f32.mrb[39].mxu1  ;;  %9923 = vmatpush3.bf16.msra.mxu0 %v4550_v18  ;;  %v10863_v32 = vld [vmem:[%s12624_s5 + $0xe0] sm:$0xff]  }
 0xc88   : > { %v4929_v43 = vpack.c.bf16 %v4917_v35, %v4914_v31  ;;  %v10865_v35 = vld [vmem:[%s12624_s5 + $0xf0] sm:$0xff]  }
 0xc8a   : > { %9944 = vmatprep.subr.bf16.mxu0 %v4929_v43  ;;  %9917 = vmatmul.mubr.msk.bf16.gmra.mrb[48].mxu0 %vm4672_vm2, %v10838_v33 }
 0xc8b   : > { %9924 = vmatprep.mubr.msk.bf16.mxu0 %vm4672_vm2, %v10839_v20 }
 0xc92   : > { %9925 = vmatmul.mubr.msk.bf16.vlgmr.msra.gmra.mrb[44].mxu0 %vm4672_vm2, %v10840_v37 }
 0xc93   : > { %9945 = vmatpush3.bf16.msra.mxu0 %v4929_v43  ;;  %9928 = vmatprep.mubr.msk.bf16.mxu0 %vm4672_vm2, %v10841_v38  ;;  %v10866_v38 = vld [vmem:[%s12624_s5 + $0xf8] sm:$0xff]  }
 0xc94   : > { %9946 = vmatprep.subr.bf16.mxu0 %v4930_v34  ;;  %v9966_v50 = vpop.f32.mrb[40].mxu1 }
 0xc95   : > { %v5112_v39 = vpop.f32.mrb[41].mxu1 }
 0xc96   : > { %v9967_v40 = vpop.f32.mrb[42].mxu1 }
 0xc97   : > { %v5128_v41 = vpack.c.bf16 %v9967_v40, %v9966_v50  ;;  %9947 = vmatpush3.bf16.msra.mxu0 %v4930_v34  ;;  %v5115_v42 = vpop.f32.mrb[43].mxu1  ;;  %v10864_v34 = vld [vmem:[%s12624_s5 + $0xe8] sm:$0xff]   ;;  %v10867_v40 = vld [vmem:[%s12624_s5 + $0x100] sm:$0xff]  }
 0xc98   : > { %v5127_v45 = vpack.c.bf16 %v5115_v42, %v5112_v39  ;;  %v10869_v42 = vld [vmem:[%s12624_s5 + $0x110] sm:$0xff]  }
 0xc9a   : > { %9968 = vmatprep.subr.bf16.mxu0 %v5127_v45  ;;  %9929 = vmatmul.mubr.msk.bf16.gmra.mrb[48].mxu0 %vm4672_vm2, %v10842_v19 }
 0xc9b   : > { %9948 = vmatprep.mubr.msk.bf16.mxu0 %vm4672_vm2, %v10843_v44 }
 0xca2   : > { %9949 = vmatmul.mubr.msk.bf16.vlgmr.msra.gmra.mrb[44].mxu0 %vm4672_vm2, %v10844_v46 }
 0xca3   : > { %9969 = vmatpush3.bf16.msra.mxu0 %v5127_v45  ;;  %9952 = vmatprep.mubr.msk.bf16.mxu0 %vm4672_vm2, %v10845_v47  ;;  %v10870_v47 = vld [vmem:[%s12624_s5 + $0x118] sm:$0xff]  }
 0xca4   : > { %9970 = vmatprep.subr.bf16.mxu0 %v5128_v41  ;;  %v9990_v48 = vpop.f32.mrb[44].mxu1 }
 0xca5   : > { %v5310_v49 = vpop.f32.mrb[45].mxu1 }
 0xca6   : > { %v9991_v51 = vpop.f32.mrb[46].mxu1 }
 0xca7   : > { %v5326_v53 = vpack.c.bf16 %v9991_v51, %v9990_v48  ;;  %9971 = vmatpush3.bf16.msra.mxu0 %v5128_v41  ;;  %v5313_v54 = vpop.f32.mrb[47].mxu1  ;;  %v10868_v41 = vld [vmem:[%s12624_s5 + $0x108] sm:$0xff]   ;;  %v10871_v51 = vld [vmem:[%s12624_s5 + $0x120] sm:$0xff]  }
 0xca8   : > { %v5325_v56 = vpack.c.bf16 %v5313_v54, %v5310_v49  ;;  %v10873_v54 = vld [vmem:[%s12624_s5 + $0x130] sm:$0xff]  }
 0xcaa   : > { %9992 = vmatprep.subr.bf16.mxu0 %v5325_v56  ;;  %9953 = vmatmul.mubr.msk.bf16.gmra.mrb[48].mxu0 %vm4672_vm2, %v10846_v52 }
 0xcab   : > { %9972 = vmatprep.mubr.msk.bf16.mxu0 %vm4672_vm2, %v10847_v55 }
 0xcb2   : > { %9973 = vmatmul.mubr.msk.bf16.vlgmr.msra.gmra.mrb[44].mxu0 %vm4672_vm2, %v10848_v58 }
 0xcb3   : > { %9993 = vmatpush3.bf16.msra.mxu0 %v5325_v56  ;;  %9976 = vmatprep.mubr.msk.bf16.mxu0 %vm4672_vm2, %v10849_v59  ;;  %v10874_v59 = vld [vmem:[%s12624_s5 + $0x138] sm:$0xff]  }
 0xcb4   : > { %9994 = vmatprep.subr.bf16.mxu0 %v5326_v53  ;;  %v10014_v60 = vpop.f32.mrb[48].mxu1 }
 0xcb5   : > { %v5508_v61 = vpop.f32.mrb[49].mxu1 }
 0xcb6   : > { %v10015_v63 = vpop.f32.mrb[50].mxu1 }
 0xcb7   : > { %v5524_v1 = vpack.c.bf16 %v10015_v63, %v10014_v60  ;;  %9995 = vmatpush3.bf16.msra.mxu0 %v5326_v53  ;;  %v5511_v2 = vpop.f32.mrb[51].mxu1  ;;  %v10872_v53 = vld [vmem:[%s12624_s5 + $0x128] sm:$0xff]   ;;  %v10875_v63 = vld [vmem:[%s12624_s5 + $0x140] sm:$0xff]  }
 0xcb8   : > { %v5523_v57 = vpack.c.bf16 %v5511_v2, %v5508_v61  ;;  %v10877_v2 = vld [vmem:[%s12624_s5 + $0x150] sm:$0xff]  }
 0xcba   : > { %10016 = vmatprep.subr.bf16.mxu0 %v5523_v57  ;;  %9977 = vmatmul.mubr.msk.bf16.gmra.mrb[48].mxu0 %vm4672_vm2, %v10850_v0 }
 0xcbb   : > { %9996 = vmatprep.mubr.msk.bf16.mxu0 %vm4672_vm2, %v10851_v3 }
 0xcc2   : > { %9997 = vmatmul.mubr.msk.bf16.vlgmr.msra.gmra.mrb[44].mxu0 %vm4672_vm2, %v10852_v4 }
 0xcc3   : > { %10017 = vmatpush3.bf16.msra.mxu0 %v5523_v57  ;;  %10000 = vmatprep.mubr.msk.bf16.mxu0 %vm4672_vm2, %v10853_v5  ;;  %v10878_v5 = vld [vmem:[%s12624_s5 + $0x158] sm:$0xff]  }
 0xcc4   : > { %10018 = vmatprep.subr.bf16.mxu0 %v5524_v1  ;;  %v10038_v28 = vpop.f32.mrb[52].mxu1 }
 0xcc5   : > { %v5706_v25 = vpop.f32.mrb[53].mxu1 }
 0xcc6   : > { %v10039_v6 = vpop.f32.mrb[54].mxu1 }
 0xcc7   : > { %v5722_v36 = vpack.c.bf16 %v10039_v6, %v10038_v28  ;;  %10019 = vmatpush3.bf16.msra.mxu0 %v5524_v1  ;;  %v5709_v7 = vpop.f32.mrb[55].mxu1  ;;  %v10876_v1 = vld [vmem:[%s12624_s5 + $0x148] sm:$0xff]   ;;  %v10879_v6 = vld [vmem:[%s12624_s5 + $0x160] sm:$0xff]  }
 0xcc8   : > { %v5721_v9 = vpack.c.bf16 %v5709_v7, %v5706_v25  ;;  %v10881_v7 = vld [vmem:[%s12624_s5 + $0x170] sm:$0xff]  }
 0xcca   : > { %10040 = vmatprep.subr.bf16.mxu0 %v5721_v9  ;;  %10001 = vmatmul.mubr.msk.bf16.gmra.mrb[48].mxu0 %vm4672_vm2, %v10854_v62 }
 0xccb   : > { %10020 = vmatprep.mubr.msk.bf16.mxu0 %vm4672_vm2, %v10855_v8 }
 0xcd2   : > { %10021 = vmatmul.mubr.msk.bf16.vlgmr.msra.gmra.mrb[44].mxu0 %vm4672_vm2, %v10856_v10 }
 0xcd3   : > { %10041 = vmatpush3.bf16.msra.mxu0 %v5721_v9  ;;  %10024 = vmatprep.mubr.msk.bf16.mxu0 %vm4672_vm2, %v10857_v11  ;;  %v10882_v11 = vld [vmem:[%s12624_s5 + $0x178] sm:$0xff]  }
 0xcd4   : > { %10042 = vmatprep.subr.bf16.mxu0 %v5722_v36  ;;  %v10062_v12 = vpop.f32.mrb[56].mxu1 }
 0xcd5   : > { %v5904_v13 = vpop.f32.mrb[57].mxu1 }
 0xcd6   : > { %v10063_v14 = vpop.f32.mrb[58].mxu1 }
 0xcd7   : > { %v5920_v17 = vpack.c.bf16 %v10063_v14, %v10062_v12  ;;  %10043 = vmatpush3.bf16.msra.mxu0 %v5722_v36  ;;  %v5907_v18 = vpop.f32.mrb[59].mxu1  ;;  %v10880_v36 = vld [vmem:[%s12624_s5 + $0x168] sm:$0xff]   ;;  %v10883_v14 = vld [vmem:[%s12624_s5 + $0x180] sm:$0xff]  }
 0xcd8   : > { %v5919_v24 = vpack.c.bf16 %v5907_v18, %v5904_v13  ;;  %v10885_v18 = vld [vmem:[%s12624_s5 + $0x190] sm:$0xff]  }
 0xcda   : > { %10064 = vmatprep.subr.bf16.mxu0 %v5919_v24  ;;  %10025 = vmatmul.mubr.msk.bf16.gmra.mrb[48].mxu0 %vm4672_vm2, %v10858_v16 }
 0xcdb   : > { %10044 = vmatprep.mubr.msk.bf16.mxu0 %vm4672_vm2, %v10859_v21 }
 0xce2   : > { %10045 = vmatmul.mubr.msk.bf16.vlgmr.msra.gmra.mrb[44].mxu0 %vm4672_vm2, %v10860_v22 }
 0xce3   : > { %10065 = vmatpush3.bf16.msra.mxu0 %v5919_v24  ;;  %10048 = vmatprep.mubr.msk.bf16.mxu0 %vm4672_vm2, %v10861_v15  ;;  %v10886_v15 = vld [vmem:[%s12624_s5 + $0x198] sm:$0xff]  }
 0xce4   : > { %10066 = vmatprep.subr.bf16.mxu0 %v5920_v17  ;;  %v10086_v23 = vpop.f32.mrb[60].mxu1 }
 0xce5   : > { %v6102_v26 = vpop.f32.mrb[61].mxu1 }
 0xce6   : > { %v10087_v27 = vpop.f32.mrb[62].mxu1 }
 0xce7   : > { %v6118_v30 = vpack.c.bf16 %v10087_v27, %v10086_v23  ;;  %10067 = vmatpush3.bf16.msra.mxu0 %v5920_v17  ;;  %v6105_v31 = vpop.f32.mrb[63].mxu1  ;;  %v10884_v17 = vld [vmem:[%s12624_s5 + $0x188] sm:$0xff]   ;;  %v10887_v27 = vld [vmem:[%s12624_s5 + $0x1a0] sm:$0xff]  }
 0xce8   : > { %v6117_v33 = vpack.c.bf16 %v6105_v31, %v6102_v26  ;;  %v10889_v31 = vld [vmem:[%s12624_s5 + $0x1b0] sm:$0xff]  }
 0xcea   : > { %10088 = vmatprep.subr.bf16.mxu0 %v6117_v33  ;;  %10049 = vmatmul.mubr.msk.bf16.gmra.mrb[48].mxu0 %vm4672_vm2, %v10862_v29 }
 0xceb   : > { %10068 = vmatprep.mubr.msk.bf16.mxu0 %vm4672_vm2, %v10863_v32 }
 0xcf2   : > { %10069 = vmatmul.mubr.msk.bf16.vlgmr.msra.gmra.mrb[44].mxu0 %vm4672_vm2, %v10864_v34 }
 0xcf3   : > { %10089 = vmatpush3.bf16.msra.mxu0 %v6117_v33  ;;  %10072 = vmatprep.mubr.msk.bf16.mxu0 %vm4672_vm2, %v10865_v35  ;;  %v10890_v35 = vld [vmem:[%s12624_s5 + $0x1b8] sm:$0xff]  }
 0xcf4   : > { %10090 = vmatprep.subr.bf16.mxu0 %v6118_v30  ;;  %v10110_v20 = vpop.f32.mrb[64].mxu1 }
 0xcf5   : > { %v6300_v43 = vpop.f32.mrb[65].mxu1 }
 0xcf6   : > { %v10111_v37 = vpop.f32.mrb[66].mxu1 }
 0xcf7   : > { %v6316_v50 = vpack.c.bf16 %v10111_v37, %v10110_v20  ;;  %10091 = vmatpush3.bf16.msra.mxu0 %v6118_v30  ;;  %v6303_v39 = vpop.f32.mrb[67].mxu1  ;;  %v10888_v30 = vld [vmem:[%s12624_s5 + $0x1a8] sm:$0xff]   ;;  %v10891_v37 = vld [vmem:[%s12624_s5 + $0x1c0] sm:$0xff]  }
 0xcf8   : > { %v6315_v19 = vpack.c.bf16 %v6303_v39, %v6300_v43  ;;  %v10893_v39 = vld [vmem:[%s12624_s5 + $0x1d0] sm:$0xff]  }
 0xcfa   : > { %10112 = vmatprep.subr.bf16.mxu0 %v6315_v19  ;;  %10073 = vmatmul.mubr.msk.bf16.gmra.mrb[48].mxu0 %vm4672_vm2, %v10866_v38 }
 0xcfb   : > { %10092 = vmatprep.mubr.msk.bf16.mxu0 %vm4672_vm2, %v10867_v40  ;;  %v10894_v40 = vld [vmem:[%s12624_s5 + $0x1d8] sm:$0xff]  }
 0xd02   : > { %10093 = vmatmul.mubr.msk.bf16.vlgmr.msra.gmra.mrb[44].mxu0 %vm4672_vm2, %v10868_v41  ;;  %v10896_v41 = vld [vmem:[%s12624_s5 + $0x1e8] sm:$0xff]  }
 0xd03   : > { %10113 = vmatpush3.bf16.msra.mxu0 %v6315_v19  ;;  %10096 = vmatprep.mubr.msk.bf16.mxu0 %vm4672_vm2, %v10869_v42  ;;  %v10895_v19 = vld [vmem:[%s12624_s5 + $0x1e0] sm:$0xff]   ;;  %v10897_v42 = vld [vmem:[%s12624_s5 + $0x1f0] sm:$0xff]  }
 0xd04   : > { %10114 = vmatprep.subr.bf16.mxu0 %v6316_v50  ;;  %v10134_v44 = vpop.f32.mrb[68].mxu1 }
 0xd05   : > { %v6498_v45 = vpop.f32.mrb[69].mxu1 }
 0xd06   : > { %v10135_v46 = vpop.f32.mrb[70].mxu1 }
 0xd07   : > { %v6514_v48 = vpack.c.bf16 %v10135_v46, %v10134_v44  ;;  %10115 = vmatpush3.bf16.msra.mxu0 %v6316_v50  ;;  %v6501_v49 = vpop.f32.mrb[71].mxu1  ;;  %v10892_v50 = vld [vmem:[%s12624_s5 + $0x1c8] sm:$0xff]   ;;  %v10898_v44 = vld [vmem:[%s12624_s5 + $0x1f8] sm:$0xff]  }
 0xd08   : > { %v6513_v52 = vpack.c.bf16 %v6501_v49, %v6498_v45 }
 0xd0a   : > { %10136 = vmatprep.subr.bf16.mxu0 %v6513_v52  ;;  %10097 = vmatmul.mubr.msk.bf16.gmra.mrb[48].mxu0 %vm4672_vm2, %v10870_v47 }
 0xd0b   : > { %10116 = vmatprep.mubr.msk.bf16.mxu0 %vm4672_vm2, %v10871_v51 }
 0xd12   : > { %10117 = vmatmul.mubr.msk.bf16.vlgmr.msra.gmra.mrb[44].mxu0 %vm4672_vm2, %v10872_v53 }
 0xd13   : > { %10137 = vmatpush3.bf16.msra.mxu0 %v6513_v52  ;;  %10120 = vmatprep.mubr.msk.bf16.mxu0 %vm4672_vm2, %v10873_v54 }
 0xd14   : > { %10138 = vmatprep.subr.bf16.mxu0 %v6514_v48  ;;  %v10158_v55 = vpop.f32.mrb[72].mxu1 }
 0xd15   : > { %v6696_v56 = vpop.f32.mrb[73].mxu1 }
 0xd16   : > { %v10159_v58 = vpop.f32.mrb[74].mxu1 }
 0xd17   : > { %v6712_v60 = vpack.c.bf16 %v10159_v58, %v10158_v55  ;;  %10139 = vmatpush3.bf16.msra.mxu0 %v6514_v48  ;;  %v6699_v61 = vpop.f32.mrb[75].mxu1 }
 0xd18   : > { %v6711_v0 = vpack.c.bf16 %v6699_v61, %v6696_v56 }
 0xd1a   : > { %10160 = vmatprep.subr.bf16.mxu0 %v6711_v0  ;;  %10121 = vmatmul.mubr.msk.bf16.gmra.mrb[48].mxu0 %vm4672_vm2, %v10874_v59 }
 0xd1b   : > { %10140 = vmatprep.mubr.msk.bf16.mxu0 %vm4672_vm2, %v10875_v63 }
 0xd22   : > { %10141 = vmatmul.mubr.msk.bf16.vlgmr.msra.gmra.mrb[44].mxu0 %vm4672_vm2, %v10876_v1 }
 0xd23   : > { %10161 = vmatpush3.bf16.msra.mxu0 %v6711_v0  ;;  %10144 = vmatprep.mubr.msk.bf16.mxu0 %vm4672_vm2, %v10877_v2 }
 0xd24   : > { %10162 = vmatprep.subr.bf16.mxu0 %v6712_v60  ;;  %v10182_v3 = vpop.f32.mrb[76].mxu1 }
 0xd25   : > { %v6894_v57 = vpop.f32.mrb[77].mxu1 }
 0xd26   : > { %v10183_v4 = vpop.f32.mrb[78].mxu1 }
 0xd27   : > { %v6910_v28 = vpack.c.bf16 %v10183_v4, %v10182_v3  ;;  %10163 = vmatpush3.bf16.msra.mxu0 %v6712_v60  ;;  %v6897_v25 = vpop.f32.mrb[79].mxu1 }
 0xd28   : > { %v6909_v62 = vpack.c.bf16 %v6897_v25, %v6894_v57 }
 0xd2a   : > { %10184 = vmatprep.subr.bf16.mxu0 %v6909_v62  ;;  %10145 = vmatmul.mubr.msk.bf16.gmra.mrb[48].mxu0 %vm4672_vm2, %v10878_v5 }
 0xd2b   : > { %10164 = vmatprep.mubr.msk.bf16.mxu0 %vm4672_vm2, %v10879_v6 }
 0xd32   : > { %10165 = vmatmul.mubr.msk.bf16.vlgmr.msra.gmra.mrb[44].mxu0 %vm4672_vm2, %v10880_v36 }
 0xd33   : > { %10185 = vmatpush3.bf16.msra.mxu0 %v6909_v62  ;;  %10168 = vmatprep.mubr.msk.bf16.mxu0 %vm4672_vm2, %v10881_v7 }
 0xd34   : > { %10186 = vmatprep.subr.bf16.mxu0 %v6910_v28  ;;  %v10206_v8 = vpop.f32.mrb[80].mxu1 }
 0xd35   : > { %v7092_v9 = vpop.f32.mrb[81].mxu1 }
 0xd36   : > { %v10207_v10 = vpop.f32.mrb[82].mxu1 }
 0xd37   : > { %v7108_v12 = vpack.c.bf16 %v10207_v10, %v10206_v8  ;;  %10187 = vmatpush3.bf16.msra.mxu0 %v6910_v28  ;;  %v7095_v13 = vpop.f32.mrb[83].mxu1 }
 0xd38   : > { %v7107_v16 = vpack.c.bf16 %v7095_v13, %v7092_v9 }
 0xd3a   : > { %10208 = vmatprep.subr.bf16.mxu0 %v7107_v16  ;;  %10169 = vmatmul.mubr.msk.bf16.gmra.mrb[48].mxu0 %vm4672_vm2, %v10882_v11 }
 0xd3b   : > { %10188 = vmatprep.mubr.msk.bf16.mxu0 %vm4672_vm2, %v10883_v14 }
 0xd42   : > { %10189 = vmatmul.mubr.msk.bf16.vlgmr.msra.gmra.mrb[44].mxu0 %vm4672_vm2, %v10884_v17 }
 0xd43   : > { %10209 = vmatpush3.bf16.msra.mxu0 %v7107_v16  ;;  %10192 = vmatprep.mubr.msk.bf16.mxu0 %vm4672_vm2, %v10885_v18 }
 0xd44   : > { %10210 = vmatprep.subr.bf16.mxu0 %v7108_v12  ;;  %v10230_v21 = vpop.f32.mrb[84].mxu1 }
 0xd45   : > { %v7290_v24 = vpop.f32.mrb[85].mxu1 }
 0xd46   : > { %v10231_v22 = vpop.f32.mrb[86].mxu1 }
 0xd47   : > { %v7306_v23 = vpack.c.bf16 %v10231_v22, %v10230_v21  ;;  %10211 = vmatpush3.bf16.msra.mxu0 %v7108_v12  ;;  %v7293_v26 = vpop.f32.mrb[87].mxu1 }
 0xd48   : > { %v7305_v29 = vpack.c.bf16 %v7293_v26, %v7290_v24 }
 0xd4a   : > { %10232 = vmatprep.subr.bf16.mxu0 %v7305_v29  ;;  %10193 = vmatmul.mubr.msk.bf16.gmra.mrb[48].mxu0 %vm4672_vm2, %v10886_v15 }
 0xd4b   : > { %10212 = vmatprep.mubr.msk.bf16.mxu0 %vm4672_vm2, %v10887_v27 }
 0xd52   : > { %10213 = vmatmul.mubr.msk.bf16.vlgmr.msra.gmra.mrb[44].mxu0 %vm4672_vm2, %v10888_v30 }
 0xd53   : > { %10233 = vmatpush3.bf16.msra.mxu0 %v7305_v29  ;;  %10216 = vmatprep.mubr.msk.bf16.mxu0 %vm4672_vm2, %v10889_v31 }
 0xd54   : > { %10234 = vmatprep.subr.bf16.mxu0 %v7306_v23  ;;  %v10254_v32 = vpop.f32.mrb[88].mxu1 }
 0xd55   : > { %v7488_v33 = vpop.f32.mrb[89].mxu1 }
 0xd56   : > { %v10255_v34 = vpop.f32.mrb[90].mxu1 }
 0xd57   : > { %v7504_v20 = vpack.c.bf16 %v10255_v34, %v10254_v32  ;;  %10235 = vmatpush3.bf16.msra.mxu0 %v7306_v23  ;;  %v7491_v43 = vpop.f32.mrb[91].mxu1 }
 0xd58   : > { %v7503_v38 = vpack.c.bf16 %v7491_v43, %v7488_v33 }
 0xd5a   : > { %10256 = vmatprep.subr.bf16.mxu0 %v7503_v38  ;;  %10217 = vmatmul.mubr.msk.bf16.gmra.mrb[48].mxu0 %vm4672_vm2, %v10890_v35 }
 0xd5b   : > { %10236 = vmatprep.mubr.msk.bf16.mxu0 %vm4672_vm2, %v10891_v37 }
 0xd62   : > { %10237 = vmatmul.mubr.msk.bf16.vlgmr.msra.gmra.mrb[44].mxu0 %vm4672_vm2, %v10892_v50 }
 0xd63   : > { %10257 = vmatpush3.bf16.msra.mxu0 %v7503_v38  ;;  %10240 = vmatprep.mubr.msk.bf16.mxu0 %vm4672_vm2, %v10893_v39 }
 0xd64   : > { %10258 = vmatprep.subr.bf16.mxu0 %v7504_v20 }
 0xd67   : > { %10259 = vmatpush3.bf16.msra.mxu0 %v7504_v20 }
 0xd6a   : > { %10241 = vmatmul.mubr.msk.bf16.gmra.mrb[48].mxu0 %vm4672_vm2, %v10894_v40 }
 0xd6b   : > { %10260 = vmatprep.mubr.msk.bf16.mxu0 %vm4672_vm2, %v10895_v19 }
 0xd72   : > { %10261 = vmatmul.mubr.msk.bf16.vlgmr.msra.gmra.mrb[44].mxu0 %vm4672_vm2, %v10896_v41 }
 0xd73   : > { %10264 = vmatprep.mubr.msk.bf16.mxu0 %vm4672_vm2, %v10897_v42 }
 0xd7a   : > { %10265 = vmatmul.mubr.msk.bf16.gmra.mrb[48].mxu0 %vm4672_vm2, %v10898_v44 }
 0xe45   : > { %v10262_v45 = vpop.f32.mrb[44].mxu0 }
 0xe46   : > { %v7580_v46 = vpop.f32.mrb[45].mxu0  ;;  %v7625_v52 = vsel %vm851_vm0, %v10262_v45, 0.0 }
 0xe47   : > { %v10263_v47 = vpop.f32.mrb[46].mxu0  ;;  %v7619_v48 = vsel %vm851_vm0, %v7580_v46, 0.0 }
 0xe48   : > { %7620 = vadd.xlane.f32.xlu0 %v7619_v48  ;;  %v7583_v49 = vpop.f32.mrb[47].mxu0  ;;  %v7628_v54 = vsel %vm851_vm0, %v10263_v47, 0.0 }
 0xe49   : > { %v7622_v51 = vsel %vm851_vm0, %v7583_v49, 0.0 }
 0xe4a   : > { %7623 = vadd.xlane.f32.xlu1 %v7622_v51 }
 0xe4c   : > { %7626 = vadd.xlane.f32.xlu0 %v7625_v52 }
 0xe4d   : > { %v10266_v53 = vpop.f32.mrb[48].mxu0 }
 0xe4e   : > { %7629 = vadd.xlane.f32.xlu1 %v7628_v54  ;;  %v7596_v55 = vpop.f32.mrb[49].mxu0  ;;  %v7637_v61 = vsel %vm851_vm0, %v10266_v53, 0.0 }
 0xe4f   : > { %v10267_v56 = vpop.f32.mrb[50].mxu0  ;;  %v7631_v58 = vsel %vm851_vm0, %v7596_v55, 0.0 }
 0xe50   : > { %7632 = vadd.xlane.f32.xlu0 %v7631_v58  ;;  %v7599_v59 = vpop.f32.mrb[51].mxu0  ;;  %v7640_v63 = vsel %vm851_vm0, %v10267_v56, 0.0 }
 0xe51   : > { %v7634_v60 = vsel %vm851_vm0, %v7599_v59, 0.0 }
 0xe52   : > { %7635 = vadd.xlane.f32.xlu1 %v7634_v60 }
 0xe54   : > { %7638 = vadd.xlane.f32.xlu0 %v7637_v61 }
 0xe56   : > { %7641 = vadd.xlane.f32.xlu1 %v7640_v63 }
 0xed5   : > { %v7621_v0 = vpop.xlane.xlu0 %7620 }
 0xed6   : > { %v7644_v1 = vmul.f32 0.0625, %v7621_v0 }
 0xed7   : > { %v7624_v2 = vpop.xlane.xlu1 %7623 }
 0xed8   : > { %v12532_v3 = vsub.f32 %v7580_v46, %v7644_v1  ;;  %v7645_v57 = vmul.f32 0.0625, %v7624_v2 }
 0xed9   : > { %v7627_v4 = vpop.xlane.xlu0 %7626 }
 0xeda   : > { %v12534_v5 = vsub.f32 %v7583_v49, %v7645_v57  ;;  %v7646_v28 = vmul.f32 0.0625, %v7627_v4  ;;  %v7660_v25 = vmul.f32 %v12532_v3, %v12532_v3  ;;  %v7732_v57 = vld [vmem:[%s12625_s6] sm:$0xff] }
 0xedb   : > { %v7630_v6 = vpop.xlane.xlu1 %7629 }
 0xedc   : > { %v12538_v62 = vsub.f32 %v10262_v45, %v7646_v28  ;;  %v7647_v36 = vmul.f32 0.0625, %v7630_v6  ;;  %v7668_v7 = vsel %vm851_vm0, %v7660_v25, 0.0  ;;  %v7661_v8 = vmul.f32 %v12534_v5, %v12534_v5  ;;  %v7733_v6 = vld [vmem:[%s12625_s6 + $0x8] sm:$0xff] }
 0xedd   : > { %7669 = vadd.xlane.f32.xlu0 %v7668_v7  ;;  %v7633_v9 = vpop.xlane.xlu0 %7632 }
 0xede   : > { %v12543_v10 = vsub.f32 %v10263_v47, %v7647_v36  ;;  %v7648_v11 = vmul.f32 0.0625, %v7633_v9  ;;  %v7671_v12 = vsel %vm851_vm0, %v7661_v8, 0.0  ;;  %v7662_v13 = vmul.f32 %v12538_v62, %v12538_v62  ;;  %v7734_v9 = vld [vmem:[%s12625_s6 + $0x10] sm:$0xff] }
 0xedf   : > { %7672 = vadd.xlane.f32.xlu1 %v7671_v12  ;;  %v7636_v14 = vpop.xlane.xlu1 %7635 }
 0xee0   : > { %v12548_v16 = vsub.f32 %v7596_v55, %v7648_v11  ;;  %v7649_v17 = vmul.f32 0.0625, %v7636_v14  ;;  %v7674_v18 = vsel %vm851_vm0, %v7662_v13, 0.0  ;;  %v7663_v21 = vmul.f32 %v12543_v10, %v12543_v10 }
 0xee1   : > { %7675 = vadd.xlane.f32.xlu0 %v7674_v18  ;;  %v7639_v24 = vpop.xlane.xlu0 %7638 }
 0xee2   : > { %v12553_v22 = vsub.f32 %v7599_v59, %v7649_v17  ;;  %v7650_v15 = vmul.f32 0.0625, %v7639_v24  ;;  %v7677_v23 = vsel %vm851_vm0, %v7663_v21, 0.0  ;;  %v7664_v26 = vmul.f32 %v12548_v16, %v12548_v16  ;;  %v7735_v17 = vld [vmem:[%s12625_s6 + $0x18] sm:$0xff] }
 0xee3   : > { %7678 = vadd.xlane.f32.xlu1 %v7677_v23  ;;  %v7642_v27 = vpop.xlane.xlu1 %7641  ;;  %v7736_v23 = vld [vmem:[%s12625_s6 + $0x20] sm:$0xff] }
 0xee4   : > { %v12558_v29 = vsub.f32 %v10266_v53, %v7650_v15  ;;  %v7651_v30 = vmul.f32 0.0625, %v7642_v27  ;;  %v7680_v31 = vsel %vm851_vm0, %v7664_v26, 0.0  ;;  %v7665_v32 = vmul.f32 %v12553_v22, %v12553_v22 }
 0xee5   : > { %7681 = vadd.xlane.f32.xlu0 %v7680_v31 }
 0xee6   : > { %v12563_v33 = vsub.f32 %v10267_v56, %v7651_v30  ;;  %v7683_v34 = vsel %vm851_vm0, %v7665_v32, 0.0  ;;  %v7666_v35 = vmul.f32 %v12558_v29, %v12558_v29  ;;  %v7737_v32 = vld [vmem:[%s12625_s6 + $0x28] sm:$0xff] }
 0xee7   : > { %7684 = vadd.xlane.f32.xlu1 %v7683_v34 }
 0xee8   : > { %v7686_v20 = vsel %vm851_vm0, %v7666_v35, 0.0  ;;  %v7667_v43 = vmul.f32 %v12563_v33, %v12563_v33 }
 0xee9   : > { %7687 = vadd.xlane.f32.xlu0 %v7686_v20 }
 0xeea   : > { %v7689_v37 = vsel %vm851_vm0, %v7667_v43, 0.0 }
 0xeeb   : > { %7690 = vadd.xlane.f32.xlu1 %v7689_v37  ;;  %v7738_v37 = vld [vmem:[%s12625_s6 + $0x30] sm:$0xff] }
 0xf6a   : > { %v7670_v38 = vpop.xlane.xlu0 %7669 }
 0xf6b   : > { %v7692_v50 = vmul.f32 0.0625, %v7670_v38 }
 0xf6c   : > { %v7673_v39 = vpop.xlane.xlu1 %7672 }
 0xf6d   : > { %v7700_v40 = vadd.f32 1e-05, %v7692_v50  ;;  %v7693_v19 = vmul.f32 0.0625, %v7673_v39 }
 0xf6e   : > { %v7676_v41 = vpop.xlane.xlu0 %7675 }
 0xf6f   : > { %10911 = vrsqrt.f32 %v7700_v40  ;;  %v7701_v42 = vadd.f32 1e-05, %v7693_v19  ;;  %v7694_v44 = vmul.f32 0.0625, %v7676_v41  ;;  %v7739_v40 = vld [vmem:[%s12625_s6 + $0x38] sm:$0xff] }
 0xf70   : > { %v7679_v45 = vpop.xlane.xlu1 %7678 }
 0xf71   : > { %10913 = vrsqrt.f32 %v7701_v42  ;;  %v7702_v46 = vadd.f32 1e-05, %v7694_v44  ;;  %v7695_v47 = vmul.f32 0.0625, %v7679_v45 }
 0xf72   : > { %v7682_v48 = vpop.xlane.xlu0 %7681 }
 0xf73   : > { %10915 = vrsqrt.f32 %v7702_v46  ;;  %v7703_v49 = vadd.f32 1e-05, %v7695_v47  ;;  %v7696_v51 = vmul.f32 0.0625, %v7682_v48 }
 0xf74   : > { %v7685_v52 = vpop.xlane.xlu1 %7684 }
 0xf75   : > { %10917 = vrsqrt.f32 %v7703_v49  ;;  %v7704_v53 = vadd.f32 1e-05, %v7696_v51  ;;  %v7697_v54 = vmul.f32 0.0625, %v7685_v52 }
 0xf76   : > { %v7688_v55 = vpop.xlane.xlu0 %7687 }
 0xf77   : > { %10919 = vrsqrt.f32 %v7704_v53  ;;  %v7705_v56 = vadd.f32 1e-05, %v7697_v54  ;;  %v7698_v58 = vmul.f32 0.0625, %v7688_v55 }
 0xf78   : > { %v7691_v59 = vpop.xlane.xlu1 %7690 }
 0xf79   : > { %v10912_v60 = vpop.eup %10911  ;;  %10921 = vrsqrt.f32 %v7705_v56  ;;  %v7706_v61 = vadd.f32 1e-05, %v7698_v58  ;;  %v7699_v63 = vmul.f32 0.0625, %v7691_v59 }
 0xf7a   : > { %v7716_v0 = vmul.f32 %v10912_v60, %v12532_v3 }
 0xf7b   : > { %v10914_v1 = vpop.eup %10913  ;;  %10923 = vrsqrt.f32 %v7706_v61  ;;  %v7707_v2 = vadd.f32 1e-05, %v7699_v63 }
 0xf7c   : > { %v7724_v4 = vmax.f32 %v7716_v0, 0.0  ;;  %v7717_v28 = vmul.f32 %v10914_v1, %v12534_v5 }
 0xf7d   : > { %v10916_v25 = vpop.eup %10915  ;;  %10925 = vrsqrt.f32 %v7707_v2 }
 0xf7e   : > { %v7740_v36 = vmul.f32 %v7732_v57, %v7724_v4  ;;  %v7725_v7 = vmax.f32 %v7717_v28, 0.0  ;;  %v7718_v3 = vmul.f32 %v10916_v25, %v12538_v62  ;;  %v7785_v4 = vld [vmem:[#allocation2] sm:$0x1] }
 0xf7f   : > { %v10918_v8 = vpop.eup %10917 }
 0xf80   : > { %v7748_v11 = vsel %vm851_vm0, %v7740_v36, 0.0  ;;  %v7741_v12 = vmul.f32 %v7733_v6, %v7725_v7  ;;  %v7726_v13 = vmax.f32 %v7718_v3, 0.0  ;;  %v7719_v5 = vmul.f32 %v10918_v8, %v12543_v10 }
 0xf81   : > { %v10920_v14 = vpop.eup %10919  ;;  %7749 = vadd.xlane.f32.xlu0 %v7748_v11  ;;  %v7792_v6 = vlaneseq }
 0xf82   : > { %v7751_v18 = vsel %vm851_vm0, %v7741_v12, 0.0  ;;  %v7742_v62 = vmul.f32 %v7734_v9, %v7726_v13  ;;  %v7727_v21 = vmax.f32 %v7719_v5, 0.0  ;;  %v7720_v24 = vmul.f32 %v10920_v14, %v12548_v16 }
 0xf83   : > { %v10922_v15 = vpop.eup %10921  ;;  %7752 = vadd.xlane.f32.xlu1 %v7751_v18  ;;  %v7793_v36 = vshrl.u32 %v7792_v6, 7 }
 0xf84   : > { %v7754_v10 = vsel %vm851_vm0, %v7742_v62, 0.0  ;;  %v7743_v26 = vmul.f32 %v7735_v17, %v7727_v21  ;;  %v7728_v27 = vmax.f32 %v7720_v24, 0.0  ;;  %v7721_v30 = vmul.f32 %v10922_v15, %v12553_v22 }
 0xf85   : > { %v10924_v31 = vpop.eup %10923  ;;  %7755 = vadd.xlane.f32.xlu0 %v7754_v10  ;;  %v7794_v7 = vsub.s32 0, %v7793_v36 }
 0xf86   : > { %v7757_v16 = vsel %vm851_vm0, %v7743_v26, 0.0  ;;  %v7744_v34 = vmul.f32 %v7736_v23, %v7728_v27  ;;  %v7729_v35 = vmax.f32 %v7721_v30, 0.0  ;;  %v7722_v20 = vmul.f32 %v10924_v31, %v12558_v29 }
 0xf87   : > { %v10926_v43 = vpop.eup %10925  ;;  %7758 = vadd.xlane.f32.xlu1 %v7757_v16 }
 0xf88   : > { %v7760_v22 = vsel %vm851_vm0, %v7744_v34, 0.0  ;;  %v7745_v38 = vmul.f32 %v7737_v32, %v7729_v35  ;;  %v7730_v50 = vmax.f32 %v7722_v20, 0.0  ;;  %v7723_v39 = vmul.f32 %v10926_v43, %v12563_v33 }
 0xf89   : > { %7761 = vadd.xlane.f32.xlu0 %v7760_v22 }
 0xf8a   : > { %v7763_v19 = vsel %vm851_vm0, %v7745_v38, 0.0  ;;  %v7746_v29 = vmul.f32 %v7738_v37, %v7730_v50  ;;  %v7731_v41 = vmax.f32 %v7723_v39, 0.0 }
 0xf8b   : > { %7764 = vadd.xlane.f32.xlu1 %v7763_v19 }
 0xf8c   : > { %v7766_v42 = vsel %vm851_vm0, %v7746_v29, 0.0  ;;  %v7747_v44 = vmul.f32 %v7739_v40, %v7731_v41 }
 0xf8d   : > { %7767 = vadd.xlane.f32.xlu0 %v7766_v42 }
 0xf8e   : > { %v7769_v45 = vsel %vm851_vm0, %v7747_v44, 0.0 }
 0xf8f   : > { %7770 = vadd.xlane.f32.xlu1 %v7769_v45 }
0x100e   : > { %v7750_v46 = vpop.xlane.xlu0 %7749 }
0x1010   : > { %v7753_v47 = vpop.xlane.xlu1 %7752 }
0x1011   : > { %v7772_v33 = vadd.f32 %v7753_v47, %v7750_v46 }
0x1012   : > { %v7756_v48 = vpop.xlane.xlu0 %7755 }
0x1013   : > { %v7773_v49 = vadd.f32 %v7772_v33, %v7756_v48 }
0x1014   : > { %v7759_v51 = vpop.xlane.xlu1 %7758 }
0x1015   : > { %v7774_v52 = vadd.f32 %v7773_v49, %v7759_v51 }
0x1016   : > { %v7762_v53 = vpop.xlane.xlu0 %7761 }
0x1017   : > { %v7775_v54 = vadd.f32 %v7774_v52, %v7762_v53 }
0x1018   : > { %v7765_v55 = vpop.xlane.xlu1 %7764 }
0x1019   : > { %v7776_v56 = vadd.f32 %v7775_v54, %v7765_v55 }
0x101a   : > { %v7768_v58 = vpop.xlane.xlu0 %7767 }
0x101b   : > { %v7777_v59 = vadd.f32 %v7776_v56, %v7768_v58 }
0x101c   : > { %v7771_v60 = vpop.xlane.xlu1 %7770 }
0x101d   : > { %v7778_v61 = vadd.f32 %v7777_v59, %v7771_v60 }
0x101f   : > { %v7779_v63 = vrot.slane %v7778_v61, 4 }
0x1021   : > { %v7780_v0 = vadd.f32 %v7779_v63, %v7778_v61 }
0x1023   : > { %v7781_v1 = vrot.slane %v7780_v0, 2 }
0x1025   : > { %v7782_v2 = vadd.f32 %v7781_v1, %v7780_v0 }
0x1027   : > { %v7783_v57 = vrot.slane %v7782_v2, 1 }
0x1029   : > { %v7784_v28 = vadd.f32 %v7783_v57, %v7782_v2 }
0x102b   : > { %v7786_v25 = vadd.f32 %v7785_v4, %v7784_v28 }
0x102d   : > { %7789 = vperm.xlu0 %10457, %v7786_v25  }
0x10ac   : > { %v7790_v3 = vpop.permute.xlu0 %7789 }
0x10ad   : > { %v7795_v8 = vrot.slane %v7790_v3, %v7794_v7 }
0x10af   : > { %7797 = vst [vmem:[%s303_s24] sm:$0x1] %v7795_v8 }
0x10b0 PF: > { %s20_s29 = sadd.s32 1, %s10933_s29  }
0x10b1   : > { %p17_p4 = scmp.ge.s32.totalorder %s20_s29, 4  }
0x10b3   :  { %19 = sbr.rel (!%p17_p4) target bundleno = 3 (0x3), region = 142 }

</bundles_post_ra>
